<compile_context>
chip_gen: v6e
topology: v6e:2x2x1
jax: 0.10.0
libtpu: 0.0.40
codegen_flags: <defaults>
</compile_context>

<pallas_src>
import functools

import jax
import jax.numpy as jnp
from jax.experimental import pallas as pl
from jax.experimental.pallas import tpu as pltpu

# ----------------------------- problem sizes ------------------------------
N_PIX = 256          # number of shaded pixels
S = 128              # num_light_samples (lane axis of all wide intermediates)
HID = 32             # NeuralShader hidden width
FEAT = 14            # normal(3)+albedo(3)+rough(1)+spec(1)+in_dir(3)+out_dir(3)
PIX_PACK = 16        # packed per-pixel slab width (11 features padded to 16)
TNB = 8              # pixels per in-kernel sub-block (one sublane group)
GRP = 8              # HID rows per MAC step (one sublane group)
ENV_W, ENV_H = 64, 32

_HIGHEST = jax.lax.Precision.HIGHEST


# ------------------------------ Pallas kernel ------------------------------
def _shader_kernel(pix_ref, dirs_ref, hdri_ref, w1p_ref, b1c_ref, w1d_ref,
                   w2_ref, b2_ref, out_ref, hpix_scr, cos_scr):
    # pix  : (TN, 16)  [normal 0:3 | albedo 3:6 | rough 6 | spec 7 | out_dir 8:11 | 0-pad]
    # dirs, hdri : (3, S)      w1p : (16, HID)    b1c : (HID, 1)
    # w1d  : (HID, 3)          w2  : (HID, 3)     b2  : SMEM (3,)
    # out  : (TN, 3)           hpix_scr : (TN, HID)    cos_scr : (TN, S)
    tn = pix_ref.shape[0]
    n_chunks = tn // TNB

    pix = pix_ref[...]
    dirs = dirs_ref[...]                                             # (3, S)

    # ---- layer-1 halves + cosine term: full-tile MXU matmuls (preamble) ----
    hpix_scr[...] = jnp.dot(pix, w1p_ref[...], precision=_HIGHEST,
                            preferred_element_type=jnp.float32)      # (TN, HID)
    cos_scr[...] = jnp.maximum(
        jnp.dot(pix[:, 0:3], dirs, precision=_HIGHEST,
                preferred_element_type=jnp.float32), 0.0)            # (TN, S)
    # per-sample half of layer 1 (+ bias): sublanes = HID, lanes = S
    h_smp = (jnp.dot(w1d_ref[...], dirs, precision=_HIGHEST,
                     preferred_element_type=jnp.float32)
             + b1c_ref[...])[None, :, :]                             # (1, HID, S)

    # ---- loop-invariant broadcasts hoisted out of the pixel loop ----
    w2 = w2_ref[...]                                                 # (HID, 3)
    hdri = hdri_ref[...]                                             # (3, S)
    w2b = [jnp.broadcast_to(w2[:, c:c + 1][None, :, :], (1, HID, S))
           for c in range(3)]
    hdrib = [jnp.broadcast_to(hdri[c:c + 1, :], (TNB, S)) for c in range(3)]
    b2s = [b2_ref[c] for c in range(3)]                              # SMEM scalars
    scale = 2.0 * jnp.pi / S

    # ---- fused pixel loop: relu + HID contraction, h never leaves vregs ----
    @pl.loop(0, n_chunks)
    def _(ci):
        n0 = pl.multiple_of(ci * TNB, TNB)
        hp = hpix_scr[pl.ds(n0, TNB), :]                             # (TNB, HID)
        cos = cos_scr[pl.ds(n0, TNB), :]                             # (TNB, S)

        acc = [jnp.zeros((TNB, GRP, S), jnp.float32) for _ in range(3)]
        for g in range(HID // GRP):                                  # static unroll (4)
            lo = g * GRP
            hg = jnp.maximum(hp[:, lo:lo + GRP, None]
                             + h_smp[:, lo:lo + GRP, :], 0.0)        # (TNB, GRP, S)
            acc = [acc[c] + hg * w2b[c][:, lo:lo + GRP, :] for c in range(3)]

        rgb = []
        for c in range(3):
            pre = jnp.sum(acc[c], axis=1) + b2s[c]                   # (TNB, S)
            rad = jax.nn.sigmoid(pre) * cos * hdrib[c]               # (TNB, S)
            rgb.append(jnp.sum(rad, axis=-1, keepdims=True) * scale)  # (TNB, 1)
        out_ref[pl.ds(n0, TNB), :] = jnp.concatenate(
            rgb, axis=-1).astype(out_ref.dtype)


# ------------------------------ host wrapper -------------------------------
def _tile_config(n_pix):
    """One pixel tile per TensorCore: grid=(1,) on single-TC chips (v5e/v6e),
    grid=(2,) with "parallel" semantics on 2-TC chips (v7x)."""
    cores = 1
    try:
        dev = jax.devices()[0]
        kind = str(getattr(dev, "device_kind", "")).lower()
        if "v7" in kind or "7x" in kind:
            cores = 2
        else:
            nc = getattr(dev, "num_cores", None)
            cores = nc if isinstance(nc, int) and nc > 0 else 1
    except Exception:
        cores = 1
    if cores >= 2 and (n_pix // 2) % TNB == 0:
        return n_pix // 2
    return n_pix


@functools.partial(jax.jit, static_argnames=("tn",))
def _forward_impl(pos, normal, albedo, rough, spec, dirs, hdri_samples,
                  w1, b1, w2, b2, *, tn):
    n_pix = pos.shape[0]
    assert n_pix % tn == 0 and tn % TNB == 0

    # out_dirs = normalize(cam_pos - pos), cam_pos == 0 (torch eps = 1e-12),
    # folded into the packed per-pixel slab here -> one DMA, no masking in-kernel.
    v = -pos
    nrm = jnp.sqrt(jnp.sum(v * v, axis=-1, keepdims=True))
    out_dirs = v / jnp.maximum(nrm, 1e-12)
    pix = jnp.concatenate(
        [normal, albedo, rough, spec, out_dirs,
         jnp.zeros((n_pix, PIX_PACK - 11), jnp.float32)], axis=-1)   # (N, 16)

    # w1 rows: [normal,albedo,rough,spec | in_dir | out_dir].  Split & pad so
    # the per-pixel half of layer 1 is a single (TN,16)@(16,HID) matmul.
    w1p = (jnp.zeros((PIX_PACK, HID), jnp.float32)
           .at[0:8, :].set(w1[0:8, :])
           .at[8:11, :].set(w1[11:14, :]))
    w1d = w1[8:11, :].T                    # (HID, 3): in_dir rows
    b1c = b1.reshape(HID, 1)               # bias as an (HID,1) column
    dirs_cs = dirs.T                       # (3, S) lane-dense sample axis
    hdri_cs = hdri_samples.T               # (3, S)
    b2f = b2.reshape(3)                    # SMEM scalars

    grid = (n_pix // tn,)
    fixed = lambda r, c: pl.BlockSpec((r, c), lambda i: (0, 0))
    return pl.pallas_call(
        _shader_kernel,
        out_shape=jax.ShapeDtypeStruct((n_pix, 3), jnp.float32),
        grid_spec=pltpu.PrefetchScalarGridSpec(
            num_scalar_prefetch=0,
            grid=grid,
            in_specs=[
                pl.BlockSpec((tn, PIX_PACK), lambda i: (i, 0)),  # packed pixels
                fixed(3, S),              # sampled directions (3, S)
                fixed(3, S),              # sampled hdri values (3, S)
                fixed(PIX_PACK, HID),     # padded / permuted w1 (per-pixel rows)
                fixed(HID, 1),            # b1 column
                fixed(HID, 3),            # w1 in_dir rows, transposed
                fixed(HID, 3),            # w2
                pl.BlockSpec(memory_space=pltpu.MemorySpace.SMEM),  # b2 scalars
            ],
            out_specs=pl.BlockSpec((tn, 3), lambda i: (i, 0)),
            scratch_shapes=[pltpu.VMEM((tn, HID), jnp.float32),   # h_pix
                            pltpu.VMEM((tn, S), jnp.float32)],    # cos
        ),
        compiler_params=pltpu.CompilerParams(
            dimension_semantics=("parallel",)),
    )(pix, dirs_cs, hdri_cs, w1p, b1c, w1d, w2, b2f)


def neural_renderer_forward(pos, normal, albedo, rough, spec,
                            dirs, hdri_samples, w1, b1, w2, b2):
    tn = _tile_config(pos.shape[0])
    return _forward_impl(pos, normal, albedo, rough, spec, dirs, hdri_samples,
                         w1, b1, w2, b2, tn=tn)


# ------------------------- pure-JAX reference ------------------------------
def _reference(pos, normal, albedo, rough, spec, dirs, hdri, w1, b1, w2, b2):
    v = -pos
    nrm = jnp.sqrt(jnp.sum(v * v, axis=-1, keepdims=True))
    out_dirs = v / jnp.maximum(nrm, 1e-12)
    n_pix, s = pos.shape[0], dirs.shape[0]
    bpix = lambda x: jnp.broadcast_to(x[:, None, :], (n_pix, s, x.shape[-1]))
    bsmp = lambda x: jnp.broadcast_to(x[None, :, :], (n_pix, s, x.shape[-1]))
    feat = jnp.concatenate(
        [bpix(normal), bpix(albedo), bpix(rough), bpix(spec),
         bsmp(dirs), bpix(out_dirs)], axis=-1)
    h = jnp.maximum(
        jnp.dot(feat, w1, precision=jax.lax.Precision.HIGHEST) + b1, 0.0)
    brdf = jax.nn.sigmoid(
        jnp.dot(h, w2, precision=jax.lax.Precision.HIGHEST) + b2)
    cos = jnp.maximum(jnp.einsum('nc,sc->ns', normal, dirs,
                                 precision=jax.lax.Precision.HIGHEST), 0.0)
    radiance = brdf * cos[:, :, None] * hdri[None, :, :]
    return jnp.sum(radiance, axis=1) * (2.0 * jnp.pi / s)


# ---------------------------- env map / sampler ----------------------------
def _env_directions():
    az = ((jnp.arange(ENV_W) + 0.5) / ENV_W - 0.5) * 2.0 * jnp.pi
    el = (jnp.arange(ENV_H) + 0.5) / ENV_H * jnp.pi * 0.5
    el_g, az_g = jnp.meshgrid(el, az, indexing='ij')
    lx = jnp.cos(az_g) * jnp.cos(el_g)
    ly = jnp.sin(el_g)
    lz = jnp.sin(az_g) * jnp.cos(el_g)
    return jnp.stack([lx, ly, lz], axis=-1).reshape(-1, 3)         # (2048, 3)


def uniform_sampling(hdri_map, num_samples):
    # deterministic strided subsample of the env grid (Sampler stand-in)
    ls = _env_directions()
    idx = jnp.arange(num_samples) * (ls.shape[0] // num_samples)
    return hdri_map[idx], ls[idx]                                  # (S,3), (S,3)


# --------------------------------- main ------------------------------------
if __name__ == "__main__":
    key = jax.random.PRNGKey(0)
    ks = jax.random.split(key, 10)

    # render_buffer (pixel buffers, float32)
    pos = jax.random.normal(ks[0], (N_PIX, 3), jnp.float32)
    pos = pos.at[:, 2].add(2.0)                  # keep pixels away from cam origin
    normal = jax.random.normal(ks[1], (N_PIX, 3), jnp.float32)
    normal = normal / jnp.linalg.norm(normal, axis=-1, keepdims=True)
    albedo = jax.random.uniform(ks[2], (N_PIX, 3), jnp.float32)
    rough = jax.random.uniform(ks[3], (N_PIX, 1), jnp.float32)
    spec = jax.random.uniform(ks[4], (N_PIX, 1), jnp.float32)
    hdri_gt = jax.random.uniform(ks[5], (ENV_W * ENV_H, 3), jnp.float32)

    # NeuralShader parameters (deterministic synthetic init)
    w1 = 0.3 * jax.random.normal(ks[6], (FEAT, HID), jnp.float32)
    b1 = 0.1 * jax.random.normal(ks[7], (1, HID), jnp.float32)
    w2 = 0.3 * jax.random.normal(ks[8], (HID, 3), jnp.float32)
    b2 = 0.1 * jax.random.normal(ks[9], (1, 3), jnp.float32)

    hdri_samples, dirs = uniform_sampling(hdri_gt, S)

    out = neural_renderer_forward(pos, normal, albedo, rough, spec,
                                  dirs, hdri_samples, w1, b1, w2, b2)
    out = jax.block_until_ready(out)

    ref = _reference(pos, normal, albedo, rough, spec,
                     dirs, hdri_samples, w1, b1, w2, b2)
    assert out.shape == (N_PIX, 3)
    assert jnp.allclose(out, ref, rtol=1e-2, atol=1e-2), "mismatch vs reference"
    print("KERNEL_OK")
</pallas_src>

<mosaic_0001>
module attributes {stable_mosaic.version = 11 : i64} {
  func.func @_shader_kernel(%arg0: i32, %arg1: memref<256x16xf32, #tpu.memory_space<vmem>>, %arg2: memref<3x128xf32, #tpu.memory_space<vmem>>, %arg3: memref<3x128xf32, #tpu.memory_space<vmem>>, %arg4: memref<16x32xf32, #tpu.memory_space<vmem>>, %arg5: memref<32x1xf32, #tpu.memory_space<vmem>>, %arg6: memref<32x3xf32, #tpu.memory_space<vmem>>, %arg7: memref<32x3xf32, #tpu.memory_space<vmem>>, %arg8: memref<3xf32, #tpu.memory_space<smem>>, %arg9: memref<256x3xf32, #tpu.memory_space<vmem>>, %arg10: memref<256x32xf32, #tpu.memory_space<vmem>>, %arg11: memref<256x128xf32, #tpu.memory_space<vmem>>) attributes {dimension_semantics = [#tpu.dimension_semantics<parallel>], iteration_bounds = array<i64: 1>, scalar_prefetch = 0 : i64, scratch_operands = 2 : i64, tpu.core_type = #tpu.core_type<tc>, window_params = [{transform_indices = @transform_0, window_bounds = array<i64: 256, 16>}, {pipeline_mode = #tpu.pipeline_mode<synchronous>, transform_indices = @transform_1, window_bounds = array<i64: 3, 128>}, {pipeline_mode = #tpu.pipeline_mode<synchronous>, transform_indices = @transform_2, window_bounds = array<i64: 3, 128>}, {pipeline_mode = #tpu.pipeline_mode<synchronous>, transform_indices = @transform_3, window_bounds = array<i64: 16, 32>}, {pipeline_mode = #tpu.pipeline_mode<synchronous>, transform_indices = @transform_4, window_bounds = array<i64: 32, 1>}, {pipeline_mode = #tpu.pipeline_mode<synchronous>, transform_indices = @transform_5, window_bounds = array<i64: 32, 3>}, {pipeline_mode = #tpu.pipeline_mode<synchronous>, transform_indices = @transform_6, window_bounds = array<i64: 32, 3>}, {transform_indices = @transform_7, window_bounds = array<i64: 3>}, {transform_indices = @transform_8, window_bounds = array<i64: 256, 3>}]} {
    %c0 = arith.constant 0 : index
    %c0_0 = arith.constant 0 : index
    %0 = vector.load %arg1[%c0, %c0_0] : memref<256x16xf32, #tpu.memory_space<vmem>>, vector<256x16xf32>
    %c0_1 = arith.constant 0 : index
    %c0_2 = arith.constant 0 : index
    %1 = vector.load %arg2[%c0_1, %c0_2] : memref<3x128xf32, #tpu.memory_space<vmem>>, vector<3x128xf32>
    %c0_3 = arith.constant 0 : index
    %c0_4 = arith.constant 0 : index
    %2 = vector.load %arg4[%c0_3, %c0_4] : memref<16x32xf32, #tpu.memory_space<vmem>>, vector<16x32xf32>
    %cst = arith.constant dense<0.000000e+00> : vector<256x32xf32>
    %3 = tpu.matmul %0, %2, %cst {dimension_numbers = #tpu.dot_dimension_numbers<[1], [0], [0], [1], [0, 0, 1, 1], [], []>, precision = #tpu.contract_precision<fp32>} : vector<256x16xf32>, vector<16x32xf32>, vector<256x32xf32> -> vector<256x32xf32>
    %c0_5 = arith.constant 0 : index
    %c0_6 = arith.constant 0 : index
    %4 = vector.load %arg10[%c0_5, %c0_6] : memref<256x32xf32, #tpu.memory_space<vmem>>, vector<256x32xf32>
    tpu.vector_store %arg10[%c0_5, %c0_6], %3 {strides = array<i32>} : memref<256x32xf32, #tpu.memory_space<vmem>>, vector<256x32xf32>,
    %5 = vector.extract_strided_slice %0 {offsets = [0, 0], sizes = [256, 3], strides = [1, 1]} : vector<256x16xf32> to vector<256x3xf32>
    %cst_7 = arith.constant dense<0.000000e+00> : vector<256x128xf32>
    %6 = tpu.matmul %5, %1, %cst_7 {dimension_numbers = #tpu.dot_dimension_numbers<[1], [0], [0], [1], [0, 0, 1, 1], [], []>, precision = #tpu.contract_precision<fp32>} : vector<256x3xf32>, vector<3x128xf32>, vector<256x128xf32> -> vector<256x128xf32>
    %cst_8 = arith.constant 0.000000e+00 : f32
    %7 = vector.broadcast %cst_8 : f32 to vector<256x128xf32>
    %8 = arith.maximumf %6, %7 : vector<256x128xf32>
    %c0_9 = arith.constant 0 : index
    %c0_10 = arith.constant 0 : index
    %9 = vector.load %arg11[%c0_9, %c0_10] : memref<256x128xf32, #tpu.memory_space<vmem>>, vector<256x128xf32>
    tpu.vector_store %arg11[%c0_9, %c0_10], %8 {strides = array<i32>} : memref<256x128xf32, #tpu.memory_space<vmem>>, vector<256x128xf32>,
    %c0_11 = arith.constant 0 : index
    %c0_12 = arith.constant 0 : index
    %10 = vector.load %arg6[%c0_11, %c0_12] : memref<32x3xf32, #tpu.memory_space<vmem>>, vector<32x3xf32>
    %cst_13 = arith.constant dense<0.000000e+00> : vector<32x128xf32>
    %11 = tpu.matmul %10, %1, %cst_13 {dimension_numbers = #tpu.dot_dimension_numbers<[1], [0], [0], [1], [0, 0, 1, 1], [], []>, precision = #tpu.contract_precision<fp32>} : vector<32x3xf32>, vector<3x128xf32>, vector<32x128xf32> -> vector<32x128xf32>
    %c0_14 = arith.constant 0 : index
    %c0_15 = arith.constant 0 : index
    %12 = vector.load %arg5[%c0_14, %c0_15] : memref<32x1xf32, #tpu.memory_space<vmem>>, vector<32x1xf32>
    %13 = vector.broadcast %12 : vector<32x1xf32> to vector<32x128xf32>
    %14 = arith.addf %11, %13 : vector<32x128xf32>
    %15 = vector.shape_cast %14 : vector<32x128xf32> to vector<1x32x128xf32>
    %c0_16 = arith.constant 0 : index
    %c0_17 = arith.constant 0 : index
    %16 = vector.load %arg7[%c0_16, %c0_17] : memref<32x3xf32, #tpu.memory_space<vmem>>, vector<32x3xf32>
    %c0_18 = arith.constant 0 : index
    %c0_19 = arith.constant 0 : index
    %17 = vector.load %arg3[%c0_18, %c0_19] : memref<3x128xf32, #tpu.memory_space<vmem>>, vector<3x128xf32>
    %18 = vector.extract_strided_slice %16 {offsets = [0, 0], sizes = [32, 1], strides = [1, 1]} : vector<32x3xf32> to vector<32x1xf32>
    %19 = vector.shape_cast %18 : vector<32x1xf32> to vector<1x32x1xf32>
    %20 = vector.shape_cast %19 : vector<1x32x1xf32> to vector<1x32x1xf32>
    %21 = vector.broadcast %20 : vector<1x32x1xf32> to vector<1x32x128xf32>
    %22 = vector.extract_strided_slice %16 {offsets = [0, 1], sizes = [32, 1], strides = [1, 1]} : vector<32x3xf32> to vector<32x1xf32>
    %23 = vector.shape_cast %22 : vector<32x1xf32> to vector<1x32x1xf32>
    %24 = vector.shape_cast %23 : vector<1x32x1xf32> to vector<1x32x1xf32>
    %25 = vector.broadcast %24 : vector<1x32x1xf32> to vector<1x32x128xf32>
    %26 = vector.extract_strided_slice %16 {offsets = [0, 2], sizes = [32, 1], strides = [1, 1]} : vector<32x3xf32> to vector<32x1xf32>
    %27 = vector.shape_cast %26 : vector<32x1xf32> to vector<1x32x1xf32>
    %28 = vector.shape_cast %27 : vector<1x32x1xf32> to vector<1x32x1xf32>
    %29 = vector.broadcast %28 : vector<1x32x1xf32> to vector<1x32x128xf32>
    %30 = vector.extract_strided_slice %17 {offsets = [0, 0], sizes = [1, 128], strides = [1, 1]} : vector<3x128xf32> to vector<1x128xf32>
    %31 = vector.shape_cast %30 : vector<1x128xf32> to vector<1x128xf32>
    %32 = vector.broadcast %31 : vector<1x128xf32> to vector<8x128xf32>
    %33 = vector.extract_strided_slice %17 {offsets = [1, 0], sizes = [1, 128], strides = [1, 1]} : vector<3x128xf32> to vector<1x128xf32>
    %34 = vector.shape_cast %33 : vector<1x128xf32> to vector<1x128xf32>
    %35 = vector.broadcast %34 : vector<1x128xf32> to vector<8x128xf32>
    %36 = vector.extract_strided_slice %17 {offsets = [2, 0], sizes = [1, 128], strides = [1, 1]} : vector<3x128xf32> to vector<1x128xf32>
    %37 = vector.shape_cast %36 : vector<1x128xf32> to vector<1x128xf32>
    %38 = vector.broadcast %37 : vector<1x128xf32> to vector<8x128xf32>
    %c0_20 = arith.constant 0 : index
    %39 = memref.load %arg8[%c0_20] : memref<3xf32, #tpu.memory_space<smem>>
    %c1 = arith.constant 1 : index
    %40 = memref.load %arg8[%c1] : memref<3xf32, #tpu.memory_space<smem>>
    %c2 = arith.constant 2 : index
    %41 = memref.load %arg8[%c2] : memref<3xf32, #tpu.memory_space<smem>>
    %c0_i32 = arith.constant 0 : i32
    %c32_i32 = arith.constant 32 : i32
    %42 = arith.addi %c0_i32, %c32_i32 : i32
    %c1_i32 = arith.constant 1 : i32
    scf.for %arg12 = %c0_i32 to %42 step %c1_i32  : i32 {
      %c1_i32_22 = arith.constant 1 : i32
      %43 = arith.muli %arg12, %c1_i32_22 : i32
      %c0_i32_23 = arith.constant 0 : i32
      %44 = arith.addi %c0_i32_23, %43 : i32
      %c8_i32 = arith.constant 8 : i32
      %45 = arith.muli %44, %c8_i32 : i32
      %46 = tpu.assume_multiple %45, 8 : i32
      %47 = arith.index_cast %46 : i32 to index
      %c0_24 = arith.constant 0 : index
      %48 = vector.load %arg10[%47, %c0_24] : memref<256x32xf32, #tpu.memory_space<vmem>>, vector<8x32xf32>
      %49 = arith.index_cast %46 : i32 to index
      %c0_25 = arith.constant 0 : index
      %50 = vector.load %arg11[%49, %c0_25] : memref<256x128xf32, #tpu.memory_space<vmem>>, vector<8x128xf32>
      %cst_26 = arith.constant 0.000000e+00 : f32
      %51 = vector.broadcast %cst_26 : f32 to vector<8x8x128xf32>
      %cst_27 = arith.constant 0.000000e+00 : f32
      %52 = vector.broadcast %cst_27 : f32 to vector<8x8x128xf32>
      %cst_28 = arith.constant 0.000000e+00 : f32
      %53 = vector.broadcast %cst_28 : f32 to vector<8x8x128xf32>
      %54 = vector.extract_strided_slice %48 {offsets = [0, 0], sizes = [8, 8], strides = [1, 1]} : vector<8x32xf32> to vector<8x8xf32>
      %55 = vector.shape_cast %54 : vector<8x8xf32> to vector<8x8x1xf32>
      %56 = vector.extract_strided_slice %15 {offsets = [0, 0, 0], sizes = [1, 8, 128], strides = [1, 1, 1]} : vector<1x32x128xf32> to vector<1x8x128xf32>
      %57 = vector.broadcast %55 : vector<8x8x1xf32> to vector<8x8x128xf32>
      %58 = vector.broadcast %56 : vector<1x8x128xf32> to vector<8x8x128xf32>
      %59 = arith.addf %57, %58 : vector<8x8x128xf32>
      %cst_29 = arith.constant 0.000000e+00 : f32
      %60 = vector.broadcast %cst_29 : f32 to vector<8x8x128xf32>
      %61 = arith.maximumf %59, %60 : vector<8x8x128xf32>
      %62 = vector.extract_strided_slice %21 {offsets = [0, 0, 0], sizes = [1, 8, 128], strides = [1, 1, 1]} : vector<1x32x128xf32> to vector<1x8x128xf32>
      %63 = vector.broadcast %62 : vector<1x8x128xf32> to vector<8x8x128xf32>
      %64 = arith.mulf %61, %63 : vector<8x8x128xf32>
      %65 = arith.addf %51, %64 : vector<8x8x128xf32>
      %66 = vector.extract_strided_slice %25 {offsets = [0, 0, 0], sizes = [1, 8, 128], strides = [1, 1, 1]} : vector<1x32x128xf32> to vector<1x8x128xf32>
      %67 = vector.broadcast %66 : vector<1x8x128xf32> to vector<8x8x128xf32>
      %68 = arith.mulf %61, %67 : vector<8x8x128xf32>
      %69 = arith.addf %52, %68 : vector<8x8x128xf32>
      %70 = vector.extract_strided_slice %29 {offsets = [0, 0, 0], sizes = [1, 8, 128], strides = [1, 1, 1]} : vector<1x32x128xf32> to vector<1x8x128xf32>
      %71 = vector.broadcast %70 : vector<1x8x128xf32> to vector<8x8x128xf32>
      %72 = arith.mulf %61, %71 : vector<8x8x128xf32>
      %73 = arith.addf %53, %72 : vector<8x8x128xf32>
      %74 = vector.extract_strided_slice %48 {offsets = [0, 8], sizes = [8, 8], strides = [1, 1]} : vector<8x32xf32> to vector<8x8xf32>
      %75 = vector.shape_cast %74 : vector<8x8xf32> to vector<8x8x1xf32>
      %76 = vector.extract_strided_slice %15 {offsets = [0, 8, 0], sizes = [1, 8, 128], strides = [1, 1, 1]} : vector<1x32x128xf32> to vector<1x8x128xf32>
      %77 = vector.broadcast %75 : vector<8x8x1xf32> to vector<8x8x128xf32>
      %78 = vector.broadcast %76 : vector<1x8x128xf32> to vector<8x8x128xf32>
      %79 = arith.addf %77, %78 : vector<8x8x128xf32>
      %cst_30 = arith.constant 0.000000e+00 : f32
      %80 = vector.broadcast %cst_30 : f32 to vector<8x8x128xf32>
      %81 = arith.maximumf %79, %80 : vector<8x8x128xf32>
      %82 = vector.extract_strided_slice %21 {offsets = [0, 8, 0], sizes = [1, 8, 128], strides = [1, 1, 1]} : vector<1x32x128xf32> to vector<1x8x128xf32>
      %83 = vector.broadcast %82 : vector<1x8x128xf32> to vector<8x8x128xf32>
      %84 = arith.mulf %81, %83 : vector<8x8x128xf32>
      %85 = arith.addf %65, %84 : vector<8x8x128xf32>
      %86 = vector.extract_strided_slice %25 {offsets = [0, 8, 0], sizes = [1, 8, 128], strides = [1, 1, 1]} : vector<1x32x128xf32> to vector<1x8x128xf32>
      %87 = vector.broadcast %86 : vector<1x8x128xf32> to vector<8x8x128xf32>
      %88 = arith.mulf %81, %87 : vector<8x8x128xf32>
      %89 = arith.addf %69, %88 : vector<8x8x128xf32>
      %90 = vector.extract_strided_slice %29 {offsets = [0, 8, 0], sizes = [1, 8, 128], strides = [1, 1, 1]} : vector<1x32x128xf32> to vector<1x8x128xf32>
      %91 = vector.broadcast %90 : vector<1x8x128xf32> to vector<8x8x128xf32>
      %92 = arith.mulf %81, %91 : vector<8x8x128xf32>
      %93 = arith.addf %73, %92 : vector<8x8x128xf32>
      %94 = vector.extract_strided_slice %48 {offsets = [0, 16], sizes = [8, 8], strides = [1, 1]} : vector<8x32xf32> to vector<8x8xf32>
      %95 = vector.shape_cast %94 : vector<8x8xf32> to vector<8x8x1xf32>
      %96 = vector.extract_strided_slice %15 {offsets = [0, 16, 0], sizes = [1, 8, 128], strides = [1, 1, 1]} : vector<1x32x128xf32> to vector<1x8x128xf32>
      %97 = vector.broadcast %95 : vector<8x8x1xf32> to vector<8x8x128xf32>
      %98 = vector.broadcast %96 : vector<1x8x128xf32> to vector<8x8x128xf32>
      %99 = arith.addf %97, %98 : vector<8x8x128xf32>
      %cst_31 = arith.constant 0.000000e+00 : f32
      %100 = vector.broadcast %cst_31 : f32 to vector<8x8x128xf32>
      %101 = arith.maximumf %99, %100 : vector<8x8x128xf32>
      %102 = vector.extract_strided_slice %21 {offsets = [0, 16, 0], sizes = [1, 8, 128], strides = [1, 1, 1]} : vector<1x32x128xf32> to vector<1x8x128xf32>
      %103 = vector.broadcast %102 : vector<1x8x128xf32> to vector<8x8x128xf32>
      %104 = arith.mulf %101, %103 : vector<8x8x128xf32>
      %105 = arith.addf %85, %104 : vector<8x8x128xf32>
      %106 = vector.extract_strided_slice %25 {offsets = [0, 16, 0], sizes = [1, 8, 128], strides = [1, 1, 1]} : vector<1x32x128xf32> to vector<1x8x128xf32>
      %107 = vector.broadcast %106 : vector<1x8x128xf32> to vector<8x8x128xf32>
      %108 = arith.mulf %101, %107 : vector<8x8x128xf32>
      %109 = arith.addf %89, %108 : vector<8x8x128xf32>
      %110 = vector.extract_strided_slice %29 {offsets = [0, 16, 0], sizes = [1, 8, 128], strides = [1, 1, 1]} : vector<1x32x128xf32> to vector<1x8x128xf32>
      %111 = vector.broadcast %110 : vector<1x8x128xf32> to vector<8x8x128xf32>
      %112 = arith.mulf %101, %111 : vector<8x8x128xf32>
      %113 = arith.addf %93, %112 : vector<8x8x128xf32>
      %114 = vector.extract_strided_slice %48 {offsets = [0, 24], sizes = [8, 8], strides = [1, 1]} : vector<8x32xf32> to vector<8x8xf32>
      %115 = vector.shape_cast %114 : vector<8x8xf32> to vector<8x8x1xf32>
      %116 = vector.extract_strided_slice %15 {offsets = [0, 24, 0], sizes = [1, 8, 128], strides = [1, 1, 1]} : vector<1x32x128xf32> to vector<1x8x128xf32>
      %117 = vector.broadcast %115 : vector<8x8x1xf32> to vector<8x8x128xf32>
      %118 = vector.broadcast %116 : vector<1x8x128xf32> to vector<8x8x128xf32>
      %119 = arith.addf %117, %118 : vector<8x8x128xf32>
      %cst_32 = arith.constant 0.000000e+00 : f32
      %120 = vector.broadcast %cst_32 : f32 to vector<8x8x128xf32>
      %121 = arith.maximumf %119, %120 : vector<8x8x128xf32>
      %122 = vector.extract_strided_slice %21 {offsets = [0, 24, 0], sizes = [1, 8, 128], strides = [1, 1, 1]} : vector<1x32x128xf32> to vector<1x8x128xf32>
      %123 = vector.broadcast %122 : vector<1x8x128xf32> to vector<8x8x128xf32>
      %124 = arith.mulf %121, %123 : vector<8x8x128xf32>
      %125 = arith.addf %105, %124 : vector<8x8x128xf32>
      %126 = vector.extract_strided_slice %25 {offsets = [0, 24, 0], sizes = [1, 8, 128], strides = [1, 1, 1]} : vector<1x32x128xf32> to vector<1x8x128xf32>
      %127 = vector.broadcast %126 : vector<1x8x128xf32> to vector<8x8x128xf32>
      %128 = arith.mulf %121, %127 : vector<8x8x128xf32>
      %129 = arith.addf %109, %128 : vector<8x8x128xf32>
      %130 = vector.extract_strided_slice %29 {offsets = [0, 24, 0], sizes = [1, 8, 128], strides = [1, 1, 1]} : vector<1x32x128xf32> to vector<1x8x128xf32>
      %131 = vector.broadcast %130 : vector<1x8x128xf32> to vector<8x8x128xf32>
      %132 = arith.mulf %121, %131 : vector<8x8x128xf32>
      %133 = arith.addf %113, %132 : vector<8x8x128xf32>
      %cst_33 = arith.constant dense<0.000000e+00> : vector<8x128xf32>
      %134 = vector.multi_reduction <add>, %125, %cst_33 [1] : vector<8x8x128xf32> to vector<8x128xf32>
      %135 = vector.broadcast %39 : f32 to vector<8x128xf32>
      %136 = arith.addf %134, %135 : vector<8x128xf32>
      %137 = arith.negf %136 : vector<8x128xf32>
      %138 = math.exp %137 : vector<8x128xf32>
      %cst_34 = arith.constant 1.000000e+00 : f32
      %139 = vector.broadcast %cst_34 : f32 to vector<8x128xf32>
      %140 = arith.addf %139, %138 : vector<8x128xf32>
      %141 = arith.divf %139, %140 : vector<8x128xf32>
      %142 = arith.mulf %141, %50 : vector<8x128xf32>
      %143 = arith.mulf %142, %32 : vector<8x128xf32>
      %cst_35 = arith.constant dense<0.000000e+00> : vector<8xf32>
      %144 = vector.multi_reduction <add>, %143, %cst_35 [1] : vector<8x128xf32> to vector<8xf32>
      %145 = vector.shape_cast %144 : vector<8xf32> to vector<8x1xf32>
      %cst_36 = arith.constant 0.0490873866 : f32
      %146 = vector.broadcast %cst_36 : f32 to vector<8x1xf32>
      %147 = arith.mulf %145, %146 : vector<8x1xf32>
      %cst_37 = arith.constant dense<0.000000e+00> : vector<8x128xf32>
      %148 = vector.multi_reduction <add>, %129, %cst_37 [1] : vector<8x8x128xf32> to vector<8x128xf32>
      %149 = vector.broadcast %40 : f32 to vector<8x128xf32>
      %150 = arith.addf %148, %149 : vector<8x128xf32>
      %151 = arith.negf %150 : vector<8x128xf32>
      %152 = math.exp %151 : vector<8x128xf32>
      %cst_38 = arith.constant 1.000000e+00 : f32
      %153 = vector.broadcast %cst_38 : f32 to vector<8x128xf32>
      %154 = arith.addf %153, %152 : vector<8x128xf32>
      %155 = arith.divf %153, %154 : vector<8x128xf32>
      %156 = arith.mulf %155, %50 : vector<8x128xf32>
      %157 = arith.mulf %156, %35 : vector<8x128xf32>
      %cst_39 = arith.constant dense<0.000000e+00> : vector<8xf32>
      %158 = vector.multi_reduction <add>, %157, %cst_39 [1] : vector<8x128xf32> to vector<8xf32>
      %159 = vector.shape_cast %158 : vector<8xf32> to vector<8x1xf32>
      %cst_40 = arith.constant 0.0490873866 : f32
      %160 = vector.broadcast %cst_40 : f32 to vector<8x1xf32>
      %161 = arith.mulf %159, %160 : vector<8x1xf32>
      %cst_41 = arith.constant dense<0.000000e+00> : vector<8x128xf32>
      %162 = vector.multi_reduction <add>, %133, %cst_41 [1] : vector<8x8x128xf32> to vector<8x128xf32>
      %163 = vector.broadcast %41 : f32 to vector<8x128xf32>
      %164 = arith.addf %162, %163 : vector<8x128xf32>
      %165 = arith.negf %164 : vector<8x128xf32>
      %166 = math.exp %165 : vector<8x128xf32>
      %cst_42 = arith.constant 1.000000e+00 : f32
      %167 = vector.broadcast %cst_42 : f32 to vector<8x128xf32>
      %168 = arith.addf %167, %166 : vector<8x128xf32>
      %169 = arith.divf %167, %168 : vector<8x128xf32>
      %170 = arith.mulf %169, %50 : vector<8x128xf32>
      %171 = arith.mulf %170, %38 : vector<8x128xf32>
      %cst_43 = arith.constant dense<0.000000e+00> : vector<8xf32>
      %172 = vector.multi_reduction <add>, %171, %cst_43 [1] : vector<8x128xf32> to vector<8xf32>
      %173 = vector.shape_cast %172 : vector<8xf32> to vector<8x1xf32>
      %cst_44 = arith.constant 0.0490873866 : f32
      %174 = vector.broadcast %cst_44 : f32 to vector<8x1xf32>
      %175 = arith.mulf %173, %174 : vector<8x1xf32>
      %176 = tpu.concatenate %147, %161, %175 in 1 : vector<8x1xf32>, vector<8x1xf32>, vector<8x1xf32> -> vector<8x3xf32>
      %177 = arith.index_cast %46 : i32 to index
      %c0_45 = arith.constant 0 : index
      %178 = vector.load %arg9[%177, %c0_45] : memref<256x3xf32, #tpu.memory_space<vmem>>, vector<8x3xf32>
      tpu.vector_store %arg9[%177, %c0_45], %176 {strides = array<i32>} : memref<256x3xf32, #tpu.memory_space<vmem>>, vector<8x3xf32>,
    }
    %c32_i32_21 = arith.constant 32 : i32
    return
  }
  func.func @transform_0(%arg0: i32) -> (i32, i32) {
    %c0_i32 = arith.constant 0 : i32
    %c0_i32_0 = arith.constant 0 : i32
    return %arg0, %c0_i32 : i32, i32
  }
  func.func @transform_1(%arg0: i32) -> (i32, i32) {
    %c0_i32 = arith.constant 0 : i32
    %c0_i32_0 = arith.constant 0 : i32
    %c0_i32_1 = arith.constant 0 : i32
    return %c0_i32, %c0_i32_0 : i32, i32
  }
  func.func @transform_2(%arg0: i32) -> (i32, i32) {
    %c0_i32 = arith.constant 0 : i32
    %c0_i32_0 = arith.constant 0 : i32
    %c0_i32_1 = arith.constant 0 : i32
    return %c0_i32, %c0_i32_0 : i32, i32
  }
  func.func @transform_3(%arg0: i32) -> (i32, i32) {
    %c0_i32 = arith.constant 0 : i32
    %c0_i32_0 = arith.constant 0 : i32
    %c0_i32_1 = arith.constant 0 : i32
    return %c0_i32, %c0_i32_0 : i32, i32
  }
  func.func @transform_4(%arg0: i32) -> (i32, i32) {
    %c0_i32 = arith.constant 0 : i32
    %c0_i32_0 = arith.constant 0 : i32
    %c0_i32_1 = arith.constant 0 : i32
    return %c0_i32, %c0_i32_0 : i32, i32
  }
  func.func @transform_5(%arg0: i32) -> (i32, i32) {
    %c0_i32 = arith.constant 0 : i32
    %c0_i32_0 = arith.constant 0 : i32
    %c0_i32_1 = arith.constant 0 : i32
    return %c0_i32, %c0_i32_0 : i32, i32
  }
  func.func @transform_6(%arg0: i32) -> (i32, i32) {
    %c0_i32 = arith.constant 0 : i32
    %c0_i32_0 = arith.constant 0 : i32
    %c0_i32_1 = arith.constant 0 : i32
    return %c0_i32, %c0_i32_0 : i32, i32
  }
  func.func @transform_7(%arg0: i32) -> i32 {
    %c0_i32 = arith.constant 0 : i32
    %c0_i32_0 = arith.constant 0 : i32
    return %c0_i32 : i32
  }
  func.func @transform_8(%arg0: i32) -> (i32, i32) {
    %c0_i32 = arith.constant 0 : i32
    %c0_i32_0 = arith.constant 0 : i32
    return %arg0, %c0_i32 : i32, i32
  }
}

</mosaic_0001>

<bundles_post_ra>
// kernel: _forward_impl.1
= control target key start
LH: loop header
LB: loop body
LE: loop exit
PB: predicated region body
PF: predicated region fallthrough
CT: control target
= control target key end

     0   :  { %13 = vsyncpa [#allocation5], 0  ;;  %s9329_s0 = inlined_call_operand.vmem [shape: f32[256,16], index: 0, kind: input, shape index: {}]   ;;  %s9330_s1 = inlined_call_operand.vmem [shape: f32[3,128], index: 1, kind: input, shape index: {}]   ;;  %s9331_s2 = inlined_call_operand.vmem [shape: f32[3,128], index: 2, kind: input, shape index: {}]   ;;  %s9332_s3 = inlined_call_operand.vmem [shape: f32[16,32], index: 3, kind: input, shape index: {}]   ;;  %s9333_s4 = inlined_call_operand.vmem [shape: f32[32,1], index: 4, kind: input, shape index: {}]   ;;  %s9334_s5 = inlined_call_operand.vmem [shape: f32[32,3], index: 5, kind: input, shape index: {}]   ;;  %s9335_s6 = inlined_call_operand.vmem [shape: f32[32,3], index: 6, kind: input, shape index: {}]   ;;  %s9336_s7 = inlined_call_operand.vmem [shape: f32[3], index: 7, kind: input, shape index: {}]   ;;  %s9337_s8 = inlined_call_operand.vmem [shape: f32[256,3], index: 8, kind: output, shape index: {}]  }
   0x1   :  { %s34_s29 = sshll.u32 %s9336_s7, 4  ;;  %s35_s29 = int_to_ptr.vmem [resolvable:$true] %s34_s29 }
   0x2   :  { %s6743_s30 = scalar_lea.vmem %s35_s29, 16  ;;  %p6748_p1 = scmp.lt.s32.totalorder %s35_s29, %s35_s29 }
   0x3   :  { %p6744_p0 = scmp.ne.s32.totalorder %s35_s29, %s6743_s30  ;;  %p6749_p2 = scmp.lt.s32.totalorder %s6743_s30, %s6743_s30 }
   0x5   :  { %p6750_p3 = por %p6749_p2, %p6748_p1 }
   0x7   :  { %p6751_p4 = pnand %p6750_p3, %p6744_p0 }
   0x9   :  { %6754 = shalt.err (!%p6751_p4)
}
   0xa   :  { %s6765_s9 = smov [#allocation4]  }
   0xb   :  { %37 = dma.vmem_to_smem %s35_s29, 16, %s6765_s9, [#allocation5]  }
   0xc   :  { %6759 = dma.done.wait [#allocation5], 16  }
   0xd   :  { %6760 = vsyncadd [#allocation5], 4294967280 }
   0xe   :  { %41 = sfence }
   0xf   :  { %v76_v0 = vld [vmem:[%s9332_s3 + $0x8] sm:$0xff]  ;;  %v75_v1 = vld [vmem:[%s9332_s3] sm:$0xff]  ;;  %vm77_vm0 = vcmask 130048   ;;  %v6843_v7 = vld [vmem:[%s9329_s0 + $0x10] sm:$0xff]  ;;  %vm2064_vm1 = vcmask 1042432   ;;  %vm1999_vm2 = vcmask 23552  }
  0x10   :  { %v6827_v2 = vld [vmem:[%s9329_s0] sm:$0xff]  ;;  %v6829_v3 = vand.u32 4294901760, %v76_v0  ;;  %v6831_v4 = vand.u32 4294901760, %v75_v1  ;;  %v6838_v6 = vld [vmem:[%s9329_s0 + $0x8] sm:$0xff]  ;;  %9524 = vst [vmem:[#allocation9_spill] sm:$0xff] %v6843_v7  ;;  %v6852_v10 = vld [vmem:[%s9329_s0 + $0x18] sm:$0xff] }
  0x11   :  { %9522 = vst [vmem:[#allocation7_spill] sm:$0xff] %v6827_v2  ;;  %v79_v5 = vsel %vm77_vm0, %v6827_v2, 0  ;;  %9523 = vst [vmem:[#allocation8_spill] sm:$0xff] %v6838_v6  ;;  %v82_v9 = vsel %vm77_vm0, %v6838_v6, 0  ;;  %v6857_v11 = vld [vmem:[%s9329_s0 + $0x20] sm:$0xff]  ;;  %v85_v16 = vsel %vm77_vm0, %v6843_v7, 0 }
  0x12   :  { %v6845_v8 = vand.u32 4294901760, %v79_v5  ;;  %9525 = vst [vmem:[#allocation10_spill] sm:$0xff] %v6852_v10  ;;  %9526 = vst [vmem:[#allocation11_spill] sm:$0xff] %v6857_v11  ;;  %5962 = vmatprep.subr.mxu0 %v6829_v3  ;;  %v591_v12 = vsub.f32 %v76_v0, %v6829_v3  ;;  %v6861_v13 = vand.u32 4294901760, %v82_v9  ;;  %v6864_v14 = vsub.f32 %v75_v1, %v6831_v4  ;;  %v6880_v19 = vld [vmem:[%s9329_s0 + $0x28] sm:$0xff]  ;;  %v6920_v35 = vld [vmem:[%s9329_s0 + $0x30] sm:$0xff] }
  0x13   :  { %5963 = vmatpush3.msra.mxu0 %v6829_v3  ;;  %v88_v17 = vsel %vm77_vm0, %v6852_v10, 0  ;;  %v91_v18 = vsel %vm77_vm0, %v6857_v11, 0  ;;  %9527 = vst [vmem:[#allocation12_spill] sm:$0xff] %v6880_v19  ;;  %v6893_v24 = vand.u32 4294901760, %v85_v16  ;;  %v94_v30 = vsel %vm77_vm0, %v6880_v19, 0  ;;  %9529 = vst [vmem:[#allocation14_spill] sm:$0xff] %v6920_v35 }
  0x14   :  { %v6868_v15 = vsub.f32 %v79_v5, %v6845_v8  ;;  %6018 = vmatprep.mubr.f32.mxu1 %v6845_v8  ;;  %5964 = vmatprep.subr.mxu0 %v6831_v4  ;;  %v6883_v20 = vand.u32 4294901760, %v591_v12  ;;  %v6886_v21 = vsub.f32 %v82_v9, %v6861_v13  ;;  %v6889_v22 = vand.u32 4294901760, %v6864_v14  ;;  %v6925_v36 = vld [vmem:[%s9329_s0 + $0x38] sm:$0xff]  ;;  %v6938_v45 = vld [vmem:[%s9329_s0 + $0x40] sm:$0xff]  ;;  %v6943_v46 = vld [vmem:[%s9329_s0 + $0x48] sm:$0xff]  ;;  %s8715_s28 = sld [smem:[#allocation4 + $0x2]] }
  0x15   :  { %5965 = vmatpush3.msra.mxu0 %v6831_v4  ;;  %v6895_v25 = vand.u32 4294901760, %v88_v17  ;;  %v6897_v26 = vand.u32 4294901760, %v91_v18  ;;  %v6909_v32 = vsub.f32 %v85_v16, %v6893_v24  ;;  %9530 = vst [vmem:[#allocation15_spill] sm:$0xff] %v6925_v36  ;;  %v6930_v40 = vand.u32 4294901760, %v94_v30  ;;  %9532 = vst [vmem:[#allocation17_spill] sm:$0xff] %v6938_v45  ;;  %v6966_v55 = vld [vmem:[%s9329_s0 + $0x50] sm:$0xff] }
  0x16   :  { %v9348_v23 = vand.u32 4294901760, %v6868_v15  ;;  %v593_v27 = vsub.f32 %v591_v12, %v6883_v20  ;;  %v9346_v28 = vand.u32 4294901760, %v6886_v21  ;;  %v600_v29 = vsub.f32 %v6864_v14, %v6889_v22  ;;  %6066 = vmatprep.subr.mxu0 %v591_v12  ;;  %9533 = vst [vmem:[#allocation18_spill] sm:$0xff] %v6943_v46  ;;  %9535 = vst [vmem:[#allocation20_spill] sm:$0xff] %v6966_v55  ;;  %v6978_v60 = vld [vmem:[%s9329_s0 + $0x58] sm:$0xff]  ;;  %v6983_v61 = vld [vmem:[%s9329_s0 + $0x60] sm:$0xff] }
  0x17   :  { %9528 = vst [vmem:[#allocation13_spill] sm:$0xff] %v6897_v26  ;;  %v6912_v33 = vsub.f32 %v88_v17, %v6895_v25  ;;  %v6915_v34 = vsub.f32 %v91_v18, %v6897_v26  ;;  %9531 = vst [vmem:[#allocation16_spill] sm:$0xff] %v6930_v40  ;;  %v9345_v42 = vand.u32 4294901760, %v6909_v32  ;;  %v6946_v48 = vsub.f32 %v94_v30, %v6930_v40  ;;  %v7011_v30 = vld [vmem:[%s9329_s0 + $0x68] sm:$0xff] }
  0x18   :  { %v244_v31 = vsub.f32 %v6868_v15, %v9348_v23  ;;  %v594_v37 = vand.u32 4294901760, %v593_v27  ;;  %v254_v38 = vsub.f32 %v6886_v21, %v9346_v28  ;;  %v601_v39 = vand.u32 4294901760, %v600_v29  ;;  %9537 = vst [vmem:[#allocation22_spill] sm:$0xff] %v6978_v60  ;;  %9538 = vst [vmem:[#allocation23_spill] sm:$0xff] %v6983_v61 }
  0x19   :  { %v9344_v43 = vand.u32 4294901760, %v6912_v33  ;;  %v9343_v44 = vand.u32 4294901760, %v6915_v34  ;;  %v97_v49 = vsel %vm77_vm0, %v6920_v35, 0  ;;  %v100_v50 = vsel %vm77_vm0, %v6925_v36, 0  ;;  %9541 = vst [vmem:[#allocation26_spill] sm:$0xff] %v7011_v30 }
  0x1a   :  { %v245_v41 = vand.u32 4294901760, %v244_v31  ;;  %6014 = vmatprep.subr.mxu1 %v594_v37  ;;  %v255_v47 = vand.u32 4294901760, %v254_v38  ;;  %v264_v51 = vsub.f32 %v6909_v32, %v9345_v42  ;;  %v6961_v54 = vand.u32 4294901760, %v97_v49 }
  0x1b   :  { %6015 = vmatpush3.msra.mxu1 %v594_v37  ;;  %v274_v52 = vsub.f32 %v6912_v33, %v9344_v43  ;;  %v284_v53 = vsub.f32 %v6915_v34, %v9343_v44  ;;  %v9342_v56 = vand.u32 4294901760, %v6946_v48  ;;  %v6969_v57 = vand.u32 4294901760, %v100_v50 }
  0x1c   :  { %5966 = vmatprep.mubr.f32.mxu0 %v245_v41  ;;  %9534 = vst [vmem:[#allocation19_spill] sm:$0xff] %v6961_v54  ;;  %6016 = vmatprep.subr.mxu1 %v601_v39  ;;  %v103_v58 = vsel %vm77_vm0, %v6938_v45, 0  ;;  %v106_v59 = vsel %vm77_vm0, %v6943_v46, 0  ;;  %v265_v62 = vand.u32 4294901760, %v264_v51  ;;  %v6986_v1 = vsub.f32 %v97_v49, %v6961_v54 }
  0x1d   :  { %5967 = vmatmul.mubr.f32.vlgmr.msra.gmra.mxu0 %v255_v47  ;;  %9536 = vst [vmem:[#allocation21_spill] sm:$0xff] %v6969_v57  ;;  %6017 = vmatpush3.msra.mxu1 %v601_v39  ;;  %v275_v63 = vand.u32 4294901760, %v274_v52  ;;  %v285_v0 = vand.u32 4294901760, %v284_v53  ;;  %v294_v5 = vsub.f32 %v6946_v48, %v9342_v56  ;;  %v6994_v9 = vsub.f32 %v100_v50, %v6969_v57 }
  0x1e   :  { %6067 = vmatpush3.msra.mxu0 %v591_v12  ;;  %6019 = vmatmul.mubr.f32.vlgmr.msra.gmra.mxu1 %v6861_v13  ;;  %v6996_v16 = vand.u32 4294901760, %v103_v58  ;;  %v6998_v12 = vand.u32 4294901760, %v106_v59  ;;  %v9341_v17 = vand.u32 4294901760, %v6986_v1  ;;  %v109_v18 = vsel %vm77_vm0, %v6966_v55, 0 }
  0x1f   :  { %6118 = vmatprep.subr.mxu1 %v6829_v3  ;;  %5969 = vmatprep.mubr.f32.mxu0 %v265_v62  ;;  %v112_v27 = vsel %vm77_vm0, %v6978_v60, 0  ;;  %v115_v29 = vsel %vm77_vm0, %v6983_v61, 0  ;;  %v295_v31 = vand.u32 4294901760, %v294_v5  ;;  %v9338_v37 = vand.u32 4294901760, %v6994_v9 }
  0x20   :  { %9539 = vst [vmem:[#allocation24_spill] sm:$0xff] %v6996_v16  ;;  %9540 = vst [vmem:[#allocation25_spill] sm:$0xff] %v6998_v12  ;;  %6119 = vmatpush3.msra.mxu1 %v6829_v3  ;;  %6021 = vmatprep.mubr.f32.mxu1 %v6893_v24  ;;  %v7016_v38 = vsub.f32 %v103_v58, %v6996_v16  ;;  %v7019_v39 = vsub.f32 %v106_v59, %v6998_v12  ;;  %v7024_v47 = vand.u32 4294901760, %v109_v18  ;;  %v7042_v59 = vld [vmem:[%s9329_s0 + $0x70] sm:$0xff]  ;;  %vm1966_vm3 = vcmask 261120  }
  0x21   :  { %5970 = vmatmul.mubr.f32.gmra.mxu0 %v275_v63  ;;  %v304_v41 = vsub.f32 %v6986_v1, %v9341_v17  ;;  %v7026_v49 = vand.u32 4294901760, %v112_v27  ;;  %v7028_v50 = vand.u32 4294901760, %v115_v29  ;;  %6068 = vmatprep.subr.mxu0 %v6864_v14  ;;  %v314_v51 = vsub.f32 %v6994_v9, %v9338_v37  ;;  %9545 = vst [vmem:[#allocation30_spill] sm:$0xff] %v7042_v59 }
  0x22   :  { %5972 = vmatprep.mubr.f32.mxu0 %v285_v0  ;;  %9542 = vst [vmem:[#allocation27_spill] sm:$0xff] %v7024_v47  ;;  %6022 = vmatmul.mubr.f32.gmra.mxu1 %v6895_v25  ;;  %v9339_v52 = vand.u32 4294901760, %v7016_v38  ;;  %v9340_v53 = vand.u32 4294901760, %v7019_v39  ;;  %v118_v58 = vsel %vm77_vm0, %v7011_v30, 0  ;;  %v7047_v63 = vsub.f32 %v109_v18, %v7024_v47 }
  0x23   :  { %9543 = vst [vmem:[#allocation28_spill] sm:$0xff] %v7026_v49  ;;  %9544 = vst [vmem:[#allocation29_spill] sm:$0xff] %v7028_v50  ;;  %6069 = vmatpush3.msra.mxu0 %v6864_v14  ;;  %6024 = vmatprep.mubr.f32.mxu1 %v6897_v26  ;;  %v305_v62 = vand.u32 4294901760, %v304_v41  ;;  %v7050_v0 = vsub.f32 %v112_v27, %v7026_v49  ;;  %v7053_v5 = vsub.f32 %v115_v29, %v7028_v50  ;;  %v7067_v27 = vld [vmem:[%s9329_s0 + $0x78] sm:$0xff] }
  0x24   :  { %6120 = vmatprep.subr.mxu1 %v6831_v4  ;;  %v315_v37 = vand.u32 4294901760, %v314_v51  ;;  %v324_v14 = vsub.f32 %v7016_v38, %v9339_v52  ;;  %v334_v41 = vsub.f32 %v7019_v39, %v9340_v53  ;;  %v7062_v18 = vand.u32 4294901760, %v118_v58  ;;  %9547 = vst [vmem:[#allocation32_spill] sm:$0xff] %v7067_v27  ;;  %v7078_v53 = vld [vmem:[%s9329_s0 + $0x80] sm:$0xff]  ;;  %6170 = vmatprep.subr.mxu0 %v6883_v20 }
  0x25   :  { %5973 = vmatmul.mubr.f32.gmra.mxu0 %v295_v31  ;;  %6121 = vmatpush3.msra.mxu1 %v6831_v4  ;;  %v9347_v29 = vand.u32 4294901760, %v7047_v63  ;;  %v9349_v31 = vand.u32 4294901760, %v7050_v0  ;;  %v9350_v51 = vand.u32 4294901760, %v7053_v5  ;;  %v121_v52 = vsel %vm77_vm0, %v7042_v59, 0  ;;  %9548 = vst [vmem:[#allocation33_spill] sm:$0xff] %v7078_v53 }
  0x26   :  { %9546 = vst [vmem:[#allocation31_spill] sm:$0xff] %v7062_v18  ;;  %5975 = vmatprep.mubr.f32.mxu0 %v305_v62  ;;  %6025 = vmatmul.mubr.f32.gmra.mxu1 %v6930_v40  ;;  %v325_v17 = vand.u32 4294901760, %v324_v14  ;;  %v335_v62 = vand.u32 4294901760, %v334_v41  ;;  %v7083_v56 = vsub.f32 %v118_v58, %v7062_v18  ;;  %v7085_v44 = vand.u32 4294901760, %v121_v52  ;;  %v7103_v41 = vld [vmem:[%s9329_s0 + $0x88] sm:$0xff] }
  0x27   :  { %6222 = vmatprep.subr.mxu1 %v6829_v3  ;;  %6027 = vmatprep.mubr.f32.mxu1 %v6961_v54  ;;  %v344_v43 = vsub.f32 %v7047_v63, %v9347_v29  ;;  %v354_v42 = vsub.f32 %v7050_v0, %v9349_v31  ;;  %v364_v14 = vsub.f32 %v7053_v5, %v9350_v51  ;;  %v124_v58 = vsel %vm77_vm0, %v7067_v27, 0  ;;  %v7116_v51 = vld [vmem:[%s9329_s0 + $0x90] sm:$0xff] }
  0x28   :  { %9549 = vst [vmem:[#allocation34_spill] sm:$0xff] %v7085_v44  ;;  %9550 = vst [vmem:[#allocation35_spill] sm:$0xff] %v7103_v41  ;;  %v7107_v29 = vsub.f32 %v121_v52, %v7085_v44  ;;  %v7109_v23 = vand.u32 4294901760, %v124_v58  ;;  %v127_v31 = vsel %vm77_vm0, %v7078_v53, 0  ;;  %v130_v28 = vsel %vm77_vm0, %v7103_v41, 0  ;;  %v7130_v53 = vld [vmem:[%s9329_s0 + $0x98] sm:$0xff] }
  0x29   :  { %5976 = vmatmul.mubr.f32.gmra.mxu0 %v315_v37  ;;  %9552 = vst [vmem:[#allocation37_spill] sm:$0xff] %v7116_v51  ;;  %v345_v27 = vand.u32 4294901760, %v344_v43  ;;  %v7118_v59 = vand.u32 4294901760, %v127_v31  ;;  %9554 = vst [vmem:[#allocation39_spill] sm:$0xff] %v7130_v53  ;;  %v355_v43 = vand.u32 4294901760, %v354_v42  ;;  %v7136_v30 = vand.u32 4294901760, %v130_v28 }
  0x2a   :  { %9551 = vst [vmem:[#allocation36_spill] sm:$0xff] %v7109_v23  ;;  %5978 = vmatprep.mubr.f32.mxu0 %v325_v17  ;;  %6028 = vmatmul.mubr.f32.gmra.mxu1 %v6969_v57  ;;  %v7123_v52 = vsub.f32 %v124_v58, %v7109_v23  ;;  %v133_v58 = vsel %vm77_vm0, %v7116_v51, 0  ;;  %v365_v37 = vand.u32 4294901760, %v364_v14  ;;  %v9556_v41 = vand.u32 4294901760, %v7083_v56  ;;  %v7158_v14 = vld [vmem:[%s9329_s0 + $0xa0] sm:$0xff]  ;;  %v7179_v51 = vld [vmem:[%s9329_s0 + $0xb0] sm:$0xff] }
  0x2b   :  { %9553 = vst [vmem:[#allocation38_spill] sm:$0xff] %v7118_v59  ;;  %6030 = vmatprep.mubr.f32.mxu1 %v6996_v16  ;;  %v7134_v17 = vsub.f32 %v127_v31, %v7118_v59  ;;  %9555 = vst [vmem:[#allocation40_spill] sm:$0xff] %v7136_v30  ;;  %v9557_v60 = vand.u32 4294901760, %v7107_v29  ;;  %v7149_v46 = vsub.f32 %v130_v28, %v7136_v30  ;;  %v7151_v45 = vand.u32 4294901760, %v133_v58 }
  0x2c   :  { %v374_v61 = vsub.f32 %v7083_v56, %v9556_v41  ;;  %v9365_v42 = vand.u32 4294901760, %v7123_v52  ;;  %9559 = vst [vmem:[#allocation42_spill] sm:$0xff] %v7158_v14  ;;  %9562 = vst [vmem:[#allocation45_spill] sm:$0xff] %v7179_v51  ;;  %v139_v35 = vsel %vm77_vm0, %v7158_v14, 0 }
  0x2d   :  { %5979 = vmatmul.mubr.f32.gmra.mxu0 %v335_v62  ;;  %v384_v55 = vsub.f32 %v7107_v29, %v9557_v60  ;;  %9558 = vst [vmem:[#allocation41_spill] sm:$0xff] %v7151_v45  ;;  %v136_v62 = vsel %vm77_vm0, %v7130_v53, 0  ;;  %v7163_v60 = vld [vmem:[%s9329_s0 + $0xa8] sm:$0xff]  ;;  %v7174_v31 = vsub.f32 %v133_v58, %v7151_v45  ;;  %v9563_v58 = vand.u32 4294901760, %v7134_v17 }
  0x2e   :  { %5981 = vmatprep.mubr.f32.mxu0 %v345_v27  ;;  %9560 = vst [vmem:[#allocation43_spill] sm:$0xff] %v7163_v60  ;;  %6031 = vmatmul.mubr.f32.gmra.mxu1 %v6998_v12  ;;  %v7166_v27 = vand.u32 4294901760, %v136_v62  ;;  %v394_v28 = vsub.f32 %v7123_v52, %v9365_v42  ;;  %v375_v53 = vand.u32 4294901760, %v374_v61  ;;  %v142_v42 = vsel %vm77_vm0, %v7163_v60, 0  ;;  %v7197_v61 = vld [vmem:[%s9329_s0 + $0xb8] sm:$0xff] }
  0x2f   :  { %6033 = vmatprep.mubr.f32.mxu1 %v7024_v47  ;;  %v385_v41 = vand.u32 4294901760, %v384_v55  ;;  %v404_v19 = vsub.f32 %v7134_v17, %v9563_v58  ;;  %v7192_v10 = vand.u32 4294901760, %v139_v35  ;;  %9564 = vst [vmem:[#allocation46_spill] sm:$0xff] %v7197_v61  ;;  %v7203_v55 = vand.u32 4294901760, %v142_v42 }
  0x30   :  { %9561 = vst [vmem:[#allocation44_spill] sm:$0xff] %v7166_v27  ;;  %v7182_v36 = vsub.f32 %v136_v62, %v7166_v27  ;;  %v145_v62 = vsel %vm77_vm0, %v7179_v51, 0  ;;  %v395_v58 = vand.u32 4294901760, %v394_v28  ;;  %v7222_v51 = vld [vmem:[%s9329_s0 + $0xc0] sm:$0xff] }
  0x31   :  { %5982 = vmatmul.mubr.f32.gmra.mxu0 %v355_v43  ;;  %v9565_v43 = vand.u32 4294901760, %v7149_v46  ;;  %9566 = vst [vmem:[#allocation47_spill] sm:$0xff] %v7203_v55  ;;  %v7209_v11 = vsub.f32 %v139_v35, %v7192_v10  ;;  %v7213_v60 = vsub.f32 %v142_v42, %v7203_v55  ;;  %v7215_v7 = vand.u32 4294901760, %v145_v62  ;;  %9567 = vst [vmem:[#allocation48_spill] sm:$0xff] %v7222_v51  ;;  %v7227_v35 = vld [vmem:[%s9329_s0 + $0xc8] sm:$0xff] }
  0x32   :  { %5984 = vmatprep.mubr.f32.mxu0 %v365_v37  ;;  %6034 = vmatmul.mubr.f32.gmra.mxu1 %v7026_v49  ;;  %9568 = vst [vmem:[#allocation49_spill] sm:$0xff] %v7227_v35  ;;  %v9569_v42 = vand.u32 4294901760, %v7174_v31 }
  0x33   :  { %v414_v37 = vsub.f32 %v7149_v46, %v9565_v43  ;;  %6036 = vmatprep.mubr.f32.mxu1 %v7028_v50  ;;  %v148_v43 = vsel %vm77_vm0, %v7197_v61, 0  ;;  %v7237_v2 = vsub.f32 %v145_v62, %v7215_v7  ;;  %v7242_v50 = vld [vmem:[%s9329_s0 + $0xd0] sm:$0xff]  ;;  %v9571_v62 = vand.u32 4294901760, %v7182_v36 }
  0x34   :  { %v424_v28 = vsub.f32 %v7174_v31, %v9569_v42  ;;  %v7233_v6 = vand.u32 4294901760, %v148_v43  ;;  %9570 = vst [vmem:[#allocation50_spill] sm:$0xff] %v7242_v50  ;;  %v151_v42 = vsel %vm77_vm0, %v7222_v51, 0  ;;  %v7278_v51 = vld [vmem:[%s9329_s0 + $0xe0] sm:$0xff] }
  0x35   :  { %5985 = vmatmul.mubr.f32.gmra.mxu0 %v375_v53  ;;  %v405_v53 = vand.u32 4294901760, %v404_v19  ;;  %v415_v61 = vand.u32 4294901760, %v414_v37  ;;  %v154_v37 = vsel %vm77_vm0, %v7227_v35, 0  ;;  %v434_v14 = vsub.f32 %v7182_v36, %v9571_v62  ;;  %9574 = vst [vmem:[#allocation52_spill] sm:$0xff] %v7278_v51 }
  0x36   :  { %5987 = vmatprep.mubr.f32.mxu0 %v385_v41  ;;  %6037 = vmatmul.mubr.f32.gmra.mxu1 %v7062_v18  ;;  %v7247_v41 = vsub.f32 %v148_v43, %v7233_v6  ;;  %v7257_v49 = vand.u32 4294901760, %v151_v42  ;;  %v7264_v43 = vld [vmem:[%s9329_s0 + $0xd8] sm:$0xff]  ;;  %v425_v19 = vand.u32 4294901760, %v424_v28  ;;  %v9573_v35 = vand.u32 4294901760, %v7209_v11 }
  0x37   :  { %6039 = vmatprep.mubr.f32.mxu1 %v7085_v44  ;;  %v7259_v44 = vand.u32 4294901760, %v154_v37  ;;  %9572 = vst [vmem:[#allocation51_spill] sm:$0xff] %v7264_v43  ;;  %v157_v62 = vsel %vm77_vm0, %v7242_v50, 0  ;;  %v160_v50 = vsel %vm77_vm0, %v7264_v43, 0 }
  0x38   :  { %v7273_v18 = vsub.f32 %v151_v42, %v7257_v49  ;;  %v7285_v47 = vand.u32 4294901760, %v157_v62  ;;  %v435_v42 = vand.u32 4294901760, %v434_v14 }
  0x39   :  { %5988 = vmatmul.mubr.f32.gmra.mxu0 %v395_v58  ;;  %v444_v58 = vsub.f32 %v7209_v11, %v9573_v35  ;;  %v7293_v16 = vsub.f32 %v154_v37, %v7259_v44 }
  0x3a   :  { %5990 = vmatprep.mubr.f32.mxu0 %v405_v53  ;;  %6040 = vmatmul.mubr.f32.gmra.mxu1 %v7109_v23  ;;  %v9575_v53 = vand.u32 4294901760, %v7213_v60  ;;  %v9576_v23 = vand.u32 4294901760, %v7237_v2  ;;  %v7304_v14 = vsub.f32 %v157_v62, %v7285_v47 }
  0x3b   :  { %6042 = vmatprep.mubr.f32.mxu1 %v7118_v59  ;;  %v7295_v59 = vand.u32 4294901760, %v160_v50  ;;  %v445_v35 = vand.u32 4294901760, %v444_v58  ;;  %v9416_v57 = vand.u32 4294901760, %v7293_v16 }
  0x3c   :  { %v454_v28 = vsub.f32 %v7213_v60, %v9575_v53  ;;  %v464_v12 = vsub.f32 %v7237_v2, %v9576_v23  ;;  %v7300_v53 = vld [vmem:[%s9329_s0 + $0xe8] sm:$0xff]  ;;  %v163_v23 = vsel %vm77_vm0, %v7278_v51, 0  ;;  %v7325_v51 = vld [vmem:[%s9329_s0 + $0xf8] sm:$0xff]  ;;  %v9582_v26 = vand.u32 4294901760, %v7304_v14 }
  0x3d   :  { %5991 = vmatmul.mubr.f32.gmra.mxu0 %v415_v61  ;;  %9577 = vst [vmem:[#allocation53_spill] sm:$0xff] %v7300_v53  ;;  %v7312_v61 = vld [vmem:[%s9329_s0 + $0xf0] sm:$0xff]  ;;  %v7318_v43 = vand.u32 4294901760, %v163_v23  ;;  %v166_v62 = vsel %vm77_vm0, %v7300_v53, 0  ;;  %9580 = vst [vmem:[#allocation55_spill] sm:$0xff] %v7325_v51  ;;  %s8713_s0 = sld [smem:[#allocation4 + $0x1]] }
  0x3e   :  { %5993 = vmatprep.mubr.f32.mxu0 %v425_v19  ;;  %6043 = vmatmul.mubr.f32.gmra.mxu1 %v7136_v30  ;;  %9578 = vst [vmem:[#allocation54_spill] sm:$0xff] %v7312_v61  ;;  %v455_v37 = vand.u32 4294901760, %v454_v28  ;;  %v9579_v19 = vand.u32 4294901760, %v7247_v41  ;;  %v465_v30 = vand.u32 4294901760, %v464_v12  ;;  %v7329_v28 = vsub.f32 %v160_v50, %v7295_v59 }
  0x3f   :  { %6045 = vmatprep.mubr.f32.mxu1 %v7151_v45  ;;  %v7331_v45 = vand.u32 4294901760, %v166_v62  ;;  %v7338_v40 = vsub.f32 %v163_v23, %v7318_v43  ;;  %v169_v12 = vsel %vm77_vm0, %v7312_v61, 0  ;;  %v172_v50 = vsel %vm77_vm0, %v7325_v51, 0 }
  0x40   :  { %v474_v58 = vsub.f32 %v7247_v41, %v9579_v19  ;;  %v9581_v19 = vand.u32 4294901760, %v7273_v18  ;;  %v9420_v23 = vand.u32 4294901760, %v7329_v28  ;;  %v7355_v61 = vand.u32 4294901760, %v172_v50 }
  0x41   :  { %5994 = vmatmul.mubr.f32.gmra.mxu0 %v435_v42  ;;  %v7343_v42 = vand.u32 4294901760, %v169_v12  ;;  %v7353_v53 = vsub.f32 %v166_v62, %v7331_v45  ;;  %v504_v51 = vsub.f32 %v7304_v14, %v9582_v26 }
  0x42   :  { %5996 = vmatprep.mubr.f32.mxu0 %v445_v35  ;;  %v484_v54 = vsub.f32 %v7273_v18, %v9581_v19  ;;  %6046 = vmatmul.mubr.f32.gmra.mxu1 %v7166_v27  ;;  %v475_v35 = vand.u32 4294901760, %v474_v58  ;;  %v494_v19 = vsub.f32 %v7293_v16, %v9416_v57  ;;  %v9419_v58 = vand.u32 4294901760, %v7338_v40 }
  0x43   :  { %6048 = vmatprep.mubr.f32.mxu1 %v7192_v10  ;;  %v7371_v57 = vsub.f32 %v172_v50, %v7355_v61  ;;  %v505_v26 = vand.u32 4294901760, %v504_v51 }
  0x44   :  { %v485_v27 = vand.u32 4294901760, %v484_v54  ;;  %v495_v62 = vand.u32 4294901760, %v494_v19  ;;  %v9421_v54 = vand.u32 4294901760, %v7353_v53 }
  0x45   :  { %5997 = vmatmul.mubr.f32.gmra.mxu0 %v455_v37  ;;  %v7362_v37 = vsub.f32 %v169_v12, %v7343_v42  ;;  %v524_v12 = vsub.f32 %v7338_v40, %v9419_v58 }
  0x46   :  { %5999 = vmatprep.mubr.f32.mxu0 %v465_v30  ;;  %6049 = vmatmul.mubr.f32.gmra.mxu1 %v7203_v55  ;;  %v514_v30 = vsub.f32 %v7329_v28, %v9420_v23  ;;  %v534_v51 = vsub.f32 %v7353_v53, %v9421_v54 }
  0x47   :  { %6051 = vmatprep.mubr.f32.mxu1 %v7215_v7  ;;  %v543_v55 = vand.u32 4294901760, %v7362_v37  ;;  %v525_v19 = vand.u32 4294901760, %v524_v12 }
  0x48   :  { %v515_v50 = vand.u32 4294901760, %v514_v30 }
  0x49   :  { %6000 = vmatmul.mubr.f32.gmra.mxu0 %v475_v35  ;;  %v74_v35 = vld [vmem:[%s9330_s1] sm:$0x7]  ;;  %v544_v58 = vsub.f32 %v7362_v37, %v543_v55 }
  0x4a   :  { %6002 = vmatprep.mubr.f32.mxu0 %v485_v27  ;;  %6052 = vmatmul.mubr.f32.gmra.mxu1 %v7233_v6  ;;  %v553_v27 = vand.u32 4294901760, %v7371_v57  ;;  %v2066_v23 = vsel %vm2064_vm1, %v74_v35, 0 }
  0x4b   :  { %6054 = vmatprep.mubr.f32.mxu1 %v7257_v49  ;;  %v7394_v54 = vand.u32 4294901760, %v2066_v23 }
  0x4c   :  { %v554_v30 = vsub.f32 %v7371_v57, %v553_v27 }
  0x4d   :  { %6003 = vmatmul.mubr.f32.gmra.mxu0 %v495_v62  ;;  %v535_v62 = vand.u32 4294901760, %v534_v51  ;;  %v7399_v35 = vsub.f32 %v2066_v23, %v7394_v54  ;;  %v9586_v51 = vand.u32 4294901760, %v6886_v21 }
  0x4e   :  { %6005 = vmatprep.mubr.f32.mxu0 %v505_v26  ;;  %6055 = vmatmul.mubr.f32.gmra.mxu1 %v7259_v44  ;;  %v545_v26 = vand.u32 4294901760, %v544_v58  ;;  %v555_v12 = vand.u32 4294901760, %v554_v30  ;;  %v9585_v58 = vand.u32 4294901760, %v6868_v15  ;;  %v9630_v30 = vld [vmem:[#allocation44_spill] sm:$0xff] }
  0x4f   :  { %6057 = vmatprep.mubr.f32.mxu1 %v7285_v47  ;;  %9583 = vst [vmem:[#allocation56_spill] sm:$0xff] %v7399_v35 }
  0x51   :  { %6006 = vmatmul.mubr.f32.gmra.mxu0 %v515_v50  ;;  %v7404_v50 = vand.u32 4294901760, %v7399_v35 }
  0x52   :  { %6008 = vmatprep.mubr.f32.mxu0 %v525_v19  ;;  %6058 = vmatmul.mubr.f32.gmra.mxu1 %v7295_v59  ;;  %v9587_v19 = vand.u32 4294901760, %v6909_v32 }
  0x53   :  { %6060 = vmatprep.mubr.f32.mxu1 %v7318_v43  ;;  %9584 = vst [vmem:[#allocation57_spill] sm:$0xff] %v7404_v50  ;;  %v2488_v23 = vsub.f32 %v7399_v35, %v7404_v50 }
  0x55   :  { %6009 = vmatmul.mubr.f32.gmra.mxu0 %v535_v62  ;;  %v9629_v62 = vld [vmem:[#allocation41_spill] sm:$0xff] }
  0x56   :  { %6011 = vmatprep.mubr.f32.mxu0 %v545_v26  ;;  %6061 = vmatmul.mubr.f32.gmra.mxu1 %v7331_v45  ;;  %v9631_v26 = vld [vmem:[#allocation7_spill] sm:$0xff] }
  0x57   :  { %6063 = vmatprep.mubr.f32.mxu1 %v7343_v42 }
  0x59   :  { %6012 = vmatmul.mubr.f32.gmra.mxu0 %v555_v12  ;;  %v2000_v12 = vsel %vm1999_vm2, %v9631_v26, 0 }
  0x5a   :  { %6070 = vmatprep.mubr.f32.mxu0 %v6868_v15  ;;  %6064 = vmatmul.mubr.f32.gmra.mxu1 %v7355_v61  ;;  %v7423_v15 = vand.u32 4294901760, %v2488_v23  ;;  %v7564_v23 = vand.u32 4294901760, %v2000_v12 }
  0x5b   :  { %6122 = vmatprep.mubr.f32.mxu1 %v9585_v58  ;;  %v9632_v58 = vld [vmem:[#allocation47_spill] sm:$0xff] }
  0x5d   :  { %6071 = vmatmul.mubr.f32.vlgmr.msra.gmra.mxu0 %v6886_v21  ;;  %v9590_v21 = vand.u32 4294901760, %v6946_v48 }
  0x5e   :  { %6171 = vmatpush3.msra.mxu0 %v6883_v20  ;;  %6073 = vmatprep.mubr.f32.mxu0 %v6909_v32  ;;  %v9588_v20 = vand.u32 4294901760, %v6912_v33  ;;  %v9592_v32 = vand.u32 4294901760, %v6994_v9 }
  0x5f   :  { %6123 = vmatmul.mubr.f32.vlgmr.msra.gmra.mxu1 %v9586_v51  ;;  %6172 = vmatprep.subr.mxu0 %v6889_v22  ;;  %v9634_v51 = vld [vmem:[#allocation8_spill] sm:$0xff] }
  0x60   :  { %6223 = vmatpush3.msra.mxu1 %v6829_v3  ;;  %6125 = vmatprep.mubr.f32.mxu1 %v9587_v19  ;;  %v9589_v3 = vand.u32 4294901760, %v6915_v34  ;;  %v2002_v19 = vsel %vm1999_vm2, %v9634_v51, 0 }
  0x61   :  { %6074 = vmatmul.mubr.f32.gmra.mxu0 %v6912_v33  ;;  %6224 = vmatprep.subr.mxu1 %v6831_v4  ;;  %v9594_v33 = vand.u32 4294901760, %v7019_v39 }
  0x62   :  { %6076 = vmatprep.mubr.f32.mxu0 %v6915_v34  ;;  %6173 = vmatpush3.msra.mxu0 %v6889_v22  ;;  %v9591_v22 = vand.u32 4294901760, %v6986_v1  ;;  %v9595_v34 = vand.u32 4294901760, %v7047_v63 }
  0x63   :  { %6126 = vmatmul.mubr.f32.gmra.mxu1 %v9588_v20  ;;  %6274 = vmatprep.subr.mxu0 %v7394_v54  ;;  %v9635_v20 = vld [vmem:[#allocation9_spill] sm:$0xff] }
  0x64   :  { %6128 = vmatprep.mubr.f32.mxu1 %v9589_v3  ;;  %6225 = vmatpush3.msra.mxu1 %v6831_v4  ;;  %v9593_v4 = vand.u32 4294901760, %v7016_v38  ;;  %v2004_v3 = vsel %vm1999_vm2, %v9635_v20, 0 }
  0x65   :  { %6077 = vmatmul.mubr.f32.gmra.mxu0 %v6946_v48  ;;  %6324 = vmatprep.subr.mxu1 %v7423_v15  ;;  %v9596_v48 = vand.u32 4294901760, %v7050_v0 }
  0x66   :  { %6079 = vmatprep.mubr.f32.mxu0 %v6986_v1  ;;  %v9597_v1 = vand.u32 4294901760, %v7053_v5 }
  0x67   :  { %6129 = vmatmul.mubr.f32.gmra.mxu1 %v9590_v21  ;;  %v7573_v21 = vand.u32 4294901760, %v2002_v19 }
  0x68   :  { %6131 = vmatprep.mubr.f32.mxu1 %v9591_v22  ;;  %v9638_v22 = vld [vmem:[#allocation10_spill] sm:$0xff] }
  0x69   :  { %6080 = vmatmul.mubr.f32.gmra.mxu0 %v6994_v9  ;;  %v9598_v9 = vand.u32 4294901760, %v7083_v56 }
  0x6a   :  { %6082 = vmatprep.mubr.f32.mxu0 %v7016_v38  ;;  %v9599_v38 = vand.u32 4294901760, %v7107_v29 }
  0x6b   :  { %6132 = vmatmul.mubr.f32.gmra.mxu1 %v9592_v32  ;;  %v2006_v32 = vsel %vm1999_vm2, %v9638_v22, 0 }
  0x6c   :  { %6134 = vmatprep.mubr.f32.mxu1 %v9593_v4  ;;  %v7582_v4 = vsub.f32 %v2000_v12, %v7564_v23  ;;  %v9655_v12 = vld [vmem:[#allocation23_spill] sm:$0xff] }
  0x6d   :  { %6083 = vmatmul.mubr.f32.gmra.mxu0 %v7019_v39  ;;  %v9600_v39 = vand.u32 4294901760, %v7123_v52 }
  0x6e   :  { %6085 = vmatprep.mubr.f32.mxu0 %v7047_v63  ;;  %v9601_v63 = vand.u32 4294901760, %v7134_v17 }
  0x6f   :  { %6135 = vmatmul.mubr.f32.gmra.mxu1 %v9594_v33  ;;  %v9639_v33 = vld [vmem:[#allocation11_spill] sm:$0xff] }
  0x70   :  { %6137 = vmatprep.mubr.f32.mxu1 %v9595_v34  ;;  %v2008_v34 = vsel %vm1999_vm2, %v9639_v33, 0 }
  0x71   :  { %6086 = vmatmul.mubr.f32.gmra.mxu0 %v7050_v0  ;;  %v9603_v0 = vand.u32 4294901760, %v7174_v31 }
  0x72   :  { %6088 = vmatprep.mubr.f32.mxu0 %v7053_v5  ;;  %v9604_v5 = vand.u32 4294901760, %v7182_v36 }
  0x73   :  { %6138 = vmatmul.mubr.f32.gmra.mxu1 %v9596_v48  ;;  %v9641_v48 = vld [vmem:[#allocation12_spill] sm:$0xff] }
  0x74   :  { %6140 = vmatprep.mubr.f32.mxu1 %v9597_v1  ;;  %v2010_v1 = vsel %vm1999_vm2, %v9641_v48, 0 }
  0x75   :  { %6089 = vmatmul.mubr.f32.gmra.mxu0 %v7083_v56  ;;  %v9602_v56 = vand.u32 4294901760, %v7149_v46 }
  0x76   :  { %6091 = vmatprep.mubr.f32.mxu0 %v7107_v29  ;;  %v9605_v29 = vand.u32 4294901760, %v7209_v11 }
  0x77   :  { %6141 = vmatmul.mubr.f32.gmra.mxu1 %v9598_v9  ;;  %v7593_v9 = vsub.f32 %v2002_v19, %v7573_v21 }
  0x78   :  { %6143 = vmatprep.mubr.f32.mxu1 %v9599_v38 }
  0x79   :  { %6092 = vmatmul.mubr.f32.gmra.mxu0 %v7123_v52  ;;  %v9607_v52 = vand.u32 4294901760, %v7237_v2 }
  0x7a   :  { %6094 = vmatprep.mubr.f32.mxu0 %v7134_v17  ;;  %v9610_v17 = vand.u32 4294901760, %v7293_v16 }
  0x7b   :  { %6144 = vmatmul.mubr.f32.gmra.mxu1 %v9600_v39  ;;  %v7599_v39 = vand.u32 4294901760, %v2008_v34 }
  0x7c   :  { %6146 = vmatprep.mubr.f32.mxu1 %v9601_v63  ;;  %v9643_v63 = vld [vmem:[#allocation14_spill] sm:$0xff] }
  0x7d   :  { %6095 = vmatmul.mubr.f32.gmra.mxu0 %v7149_v46  ;;  %v9606_v46 = vand.u32 4294901760, %v7213_v60 }
  0x7e   :  { %6097 = vmatprep.mubr.f32.mxu0 %v7174_v31  ;;  %v9612_v31 = vand.u32 4294901760, %v7329_v28 }
  0x7f   :  { %6147 = vmatmul.mubr.f32.gmra.mxu1 %v9602_v56  ;;  %v7606_v56 = vand.u32 4294901760, %v2010_v1 }
  0x80   :  { %6149 = vmatprep.mubr.f32.mxu1 %v9603_v0 }
  0x81   :  { %6098 = vmatmul.mubr.f32.gmra.mxu0 %v7182_v36  ;;  %v9608_v36 = vand.u32 4294901760, %v7247_v41 }
  0x82   :  { %6100 = vmatprep.mubr.f32.mxu0 %v7209_v11  ;;  %v9609_v11 = vand.u32 4294901760, %v7273_v18 }
  0x83   :  { %6150 = vmatmul.mubr.f32.gmra.mxu1 %v9604_v5 }
  0x84   :  { %6152 = vmatprep.mubr.f32.mxu1 %v9605_v29  ;;  %v9646_v29 = vld [vmem:[#allocation15_spill] sm:$0xff] }
  0x85   :  { %6101 = vmatmul.mubr.f32.gmra.mxu0 %v7213_v60  ;;  %v9620_v60 = vld [vmem:[#allocation25_spill] sm:$0xff] }
  0x86   :  { %6103 = vmatprep.mubr.f32.mxu0 %v7237_v2  ;;  %v9611_v2 = vand.u32 4294901760, %v7304_v14  ;;  %9644 = vst [vmem:[#allocation25_spill] sm:$0xff] %v7606_v56 }
  0x87   :  { %6153 = vmatmul.mubr.f32.gmra.mxu1 %v9606_v46  ;;  %v2014_v46 = vsel %vm1999_vm2, %v9646_v29, 0 }
  0x88   :  { %6155 = vmatprep.mubr.f32.mxu1 %v9607_v52  ;;  %v9431_v52 = vand.u32 4294901760, %v7593_v9 }
  0x89   :  { %6104 = vmatmul.mubr.f32.gmra.mxu0 %v7247_v41  ;;  %v9623_v41 = vld [vmem:[#allocation29_spill] sm:$0xff] }
  0x8a   :  { %6106 = vmatprep.mubr.f32.mxu0 %v7273_v18  ;;  %v9613_v18 = vand.u32 4294901760, %v7338_v40 }
  0x8b   :  { %6156 = vmatmul.mubr.f32.gmra.mxu1 %v9608_v36 }
  0x8c   :  { %6158 = vmatprep.mubr.f32.mxu1 %v9609_v11  ;;  %v7628_v11 = vsub.f32 %v2010_v1, %v7606_v56  ;;  %v9659_v1 = vld [vmem:[#allocation30_spill] sm:$0xff] }
  0x8d   :  { %6107 = vmatmul.mubr.f32.gmra.mxu0 %v7293_v16  ;;  %v9614_v16 = vand.u32 4294901760, %v7353_v53 }
  0x8e   :  { %6109 = vmatprep.mubr.f32.mxu0 %v7304_v14  ;;  %v9625_v14 = vld [vmem:[#allocation34_spill] sm:$0xff] }
  0x8f   :  { %6159 = vmatmul.mubr.f32.gmra.mxu1 %v9610_v17  ;;  %v7630_v17 = vand.u32 4294901760, %v2014_v46 }
  0x90   :  { %6161 = vmatprep.mubr.f32.mxu1 %v9611_v2  ;;  %v9648_v2 = vld [vmem:[#allocation17_spill] sm:$0xff] }
  0x91   :  { %6110 = vmatmul.mubr.f32.gmra.mxu0 %v7329_v28  ;;  %v9626_v28 = vld [vmem:[#allocation36_spill] sm:$0xff] }
  0x92   :  { %6112 = vmatprep.mubr.f32.mxu0 %v7338_v40  ;;  %v9615_v40 = vld [vmem:[#allocation13_spill] sm:$0xff] }
  0x93   :  { %6162 = vmatmul.mubr.f32.gmra.mxu1 %v9612_v31  ;;  %9633 = vst [vmem:[#allocation13_spill] sm:$0xff] %v7564_v23  ;;  %v2016_v31 = vsel %vm1999_vm2, %v9648_v2, 0 }
  0x94   :  { %6164 = vmatprep.mubr.f32.mxu1 %v9613_v18 }
  0x95   :  { %6113 = vmatmul.mubr.f32.gmra.mxu0 %v7353_v53  ;;  %v9624_v53 = vld [vmem:[#allocation31_spill] sm:$0xff] }
  0x96   :  { %6115 = vmatprep.mubr.f32.mxu0 %v7362_v37  ;;  %v9627_v37 = vld [vmem:[#allocation38_spill] sm:$0xff] }
  0x97   :  { %6165 = vmatmul.mubr.f32.gmra.mxu1 %v9614_v16 }
  0x98   :  { %6167 = vmatprep.mubr.f32.mxu1 %v543_v55  ;;  %v9622_v55 = vld [vmem:[#allocation28_spill] sm:$0xff] }
  0x99   :  { %6116 = vmatmul.mubr.f32.gmra.mxu0 %v7371_v57  ;;  %v9617_v57 = vld [vmem:[#allocation19_spill] sm:$0xff]  ;;  %9647 = vst [vmem:[#allocation28_spill] sm:$0xff] %v7630_v17 }
  0x9a   :  { %6174 = vmatprep.mubr.f32.mxu0 %v6845_v8 }
  0x9b   :  { %6168 = vmatmul.mubr.f32.gmra.mxu1 %v553_v27  ;;  %v9628_v27 = vld [vmem:[#allocation40_spill] sm:$0xff] }
  0x9c   :  { %6226 = vmatprep.mubr.f32.mxu1 %v6845_v8  ;;  %v9616_v8 = vld [vmem:[#allocation16_spill] sm:$0xff] }
  0x9d   :  { %6175 = vmatmul.mubr.f32.vlgmr.msra.gmra.mxu0 %v6861_v13  ;;  %9636 = vst [vmem:[#allocation16_spill] sm:$0xff] %v7573_v21 }
  0x9e   :  { %6275 = vmatpush3.msra.mxu0 %v7394_v54  ;;  %6177 = vmatprep.mubr.f32.mxu0 %v6893_v24 }
  0x9f   :  { %6227 = vmatmul.mubr.f32.vlgmr.msra.gmra.mxu1 %v6861_v13  ;;  %6374 = vmatprep.subr.mxu0 %v7399_v35  ;;  %v9618_v13 = vld [vmem:[#allocation21_spill] sm:$0xff] }
  0xa0   :  { %6325 = vmatpush3.msra.mxu1 %v7423_v15  ;;  %6229 = vmatprep.mubr.f32.mxu1 %v6893_v24  ;;  %v9619_v24 = vld [vmem:[#allocation24_spill] sm:$0xff] }
  0xa1   :  { %6178 = vmatmul.mubr.f32.gmra.mxu0 %v6895_v25  ;;  %6424 = vmatprep.subr.mxu1 %v7394_v54  ;;  %9642 = vst [vmem:[#allocation24_spill] sm:$0xff] %v7599_v39 }
  0xa2   :  { %6180 = vmatprep.mubr.f32.mxu0 %v9615_v40 }
  0xa3   :  { %6230 = vmatmul.mubr.f32.gmra.mxu1 %v6895_v25  ;;  %v9621_v25 = vld [vmem:[#allocation27_spill] sm:$0xff] }
  0xa4   :  { %6232 = vmatprep.mubr.f32.mxu1 %v9615_v40 }
  0xa5   :  { %6181 = vmatmul.mubr.f32.gmra.mxu0 %v9616_v8 }
  0xa6   :  { %6183 = vmatprep.mubr.f32.mxu0 %v9617_v57 }
  0xa7   :  { %6233 = vmatmul.mubr.f32.gmra.mxu1 %v9616_v8 }
  0xa8   :  { %6235 = vmatprep.mubr.f32.mxu1 %v9617_v57  ;;  %v9649_v57 = vld [vmem:[#allocation18_spill] sm:$0xff] }
  0xa9   :  { %6184 = vmatmul.mubr.f32.gmra.mxu0 %v9618_v13 }
  0xaa   :  { %6186 = vmatprep.mubr.f32.mxu0 %v9619_v24 }
  0xab   :  { %6236 = vmatmul.mubr.f32.gmra.mxu1 %v9618_v13 }
  0xac   :  { %6238 = vmatprep.mubr.f32.mxu1 %v9619_v24  ;;  %v7650_v24 = vand.u32 4294901760, %v2016_v31 }
  0xad   :  { %6187 = vmatmul.mubr.f32.gmra.mxu0 %v9620_v60 }
  0xae   :  { %6189 = vmatprep.mubr.f32.mxu0 %v9621_v25  ;;  %9650 = vst [vmem:[#allocation29_spill] sm:$0xff] %v7650_v24 }
  0xaf   :  { %6239 = vmatmul.mubr.f32.gmra.mxu1 %v9620_v60  ;;  %v9425_v60 = vand.u32 4294901760, %v7628_v11 }
  0xb0   :  { %6241 = vmatprep.mubr.f32.mxu1 %v9621_v25  ;;  %v7655_v25 = vsub.f32 %v2014_v46, %v7630_v17 }
  0xb1   :  { %6190 = vmatmul.mubr.f32.gmra.mxu0 %v9622_v55  ;;  %v2187_v51 = vsub.f32 %v7628_v11, %v9425_v60 }
  0xb2   :  { %6192 = vmatprep.mubr.f32.mxu0 %v9623_v41  ;;  %v9423_v19 = vand.u32 4294901760, %v7655_v25 }
  0xb3   :  { %6242 = vmatmul.mubr.f32.gmra.mxu1 %v9622_v55  ;;  %v9651_v55 = vld [vmem:[#allocation20_spill] sm:$0xff] }
  0xb4   :  { %6244 = vmatprep.mubr.f32.mxu1 %v9623_v41  ;;  %v2020_v41 = vsel %vm1999_vm2, %v9651_v55, 0 }
  0xb5   :  { %6193 = vmatmul.mubr.f32.gmra.mxu0 %v9624_v53 }
  0xb6   :  { %6195 = vmatprep.mubr.f32.mxu0 %v9625_v14 }
  0xb7   :  { %6245 = vmatmul.mubr.f32.gmra.mxu1 %v9624_v53 }
  0xb8   :  { %6247 = vmatprep.mubr.f32.mxu1 %v9625_v14 }
  0xb9   :  { %6196 = vmatmul.mubr.f32.gmra.mxu0 %v9626_v28 }
  0xba   :  { %6198 = vmatprep.mubr.f32.mxu0 %v9627_v37 }
  0xbb   :  { %6248 = vmatmul.mubr.f32.gmra.mxu1 %v9626_v28 }
  0xbc   :  { %6250 = vmatprep.mubr.f32.mxu1 %v9627_v37 }
  0xbd   :  { %6199 = vmatmul.mubr.f32.gmra.mxu0 %v9628_v27 }
  0xbe   :  { %6201 = vmatprep.mubr.f32.mxu0 %v9629_v62 }
  0xbf   :  { %6251 = vmatmul.mubr.f32.gmra.mxu1 %v9628_v27 }
  0xc0   :  { %6253 = vmatprep.mubr.f32.mxu1 %v9629_v62  ;;  %v7671_v62 = vsub.f32 %v2016_v31, %v7650_v24  ;;  %v2188_v31 = vand.u32 4294901760, %v2187_v51 }
  0xc1   :  { %6202 = vmatmul.mubr.f32.gmra.mxu0 %v9630_v30 }
  0xc2   :  { %6204 = vmatprep.mubr.f32.mxu0 %v7192_v10  ;;  %v9422_v29 = vand.u32 4294901760, %v7671_v62 }
  0xc3   :  { %6254 = vmatmul.mubr.f32.gmra.mxu1 %v9630_v30  ;;  %v9654_v30 = vld [vmem:[#allocation22_spill] sm:$0xff] }
  0xc4   :  { %6256 = vmatprep.mubr.f32.mxu1 %v7192_v10  ;;  %v7576_v10 = vand.u32 4294901760, %v2004_v3  ;;  %v2022_v26 = vsel %vm1999_vm2, %v9654_v30, 0  ;;  %v2217_v51 = vsub.f32 %v7671_v62, %v9422_v29 }
  0xc5   :  { %6205 = vmatmul.mubr.f32.gmra.mxu0 %v9632_v58  ;;  %v7691_v33 = vand.u32 4294901760, %v2022_v26 }
  0xc6   :  { %6207 = vmatprep.mubr.f32.mxu0 %v7215_v7  ;;  %9637 = vst [vmem:[#allocation19_spill] sm:$0xff] %v7576_v10  ;;  %v7597_v38 = vsub.f32 %v2004_v3, %v7576_v10 }
  0xc7   :  { %6257 = vmatmul.mubr.f32.gmra.mxu1 %v9632_v58  ;;  %v2024_v58 = vsel %vm1999_vm2, %v9655_v12, 0  ;;  %9656 = vst [vmem:[#allocation36_spill] sm:$0xff] %v7691_v33 }
  0xc8   :  { %6259 = vmatprep.mubr.f32.mxu1 %v7215_v7  ;;  %v7588_v7 = vand.u32 4294901760, %v2006_v32  ;;  %v9429_v36 = vand.u32 4294901760, %v7597_v38 }
  0xc9   :  { %6208 = vmatmul.mubr.f32.gmra.mxu0 %v7233_v6 }
  0xca   :  { %6210 = vmatprep.mubr.f32.mxu0 %v7257_v49  ;;  %9640 = vst [vmem:[#allocation21_spill] sm:$0xff] %v7588_v7  ;;  %v7610_v0 = vsub.f32 %v2006_v32, %v7588_v7  ;;  %v2157_v40 = vsub.f32 %v7597_v38, %v9429_v36 }
  0xcb   :  { %6260 = vmatmul.mubr.f32.gmra.mxu1 %v7233_v6  ;;  %v2012_v6 = vsel %vm1999_vm2, %v9643_v63, 0  ;;  %v2028_v63 = vsel %vm1999_vm2, %v9659_v1, 0 }
  0xcc   :  { %6262 = vmatprep.mubr.f32.mxu1 %v7257_v49  ;;  %v9432_v49 = vand.u32 4294901760, %v7582_v4  ;;  %v7612_v5 = vand.u32 4294901760, %v2012_v6  ;;  %v9428_v18 = vand.u32 4294901760, %v7610_v0  ;;  %v2158_v37 = vand.u32 4294901760, %v2157_v40 }
  0xcd   :  { %6211 = vmatmul.mubr.f32.gmra.mxu0 %v7259_v44 }
  0xce   :  { %6213 = vmatprep.mubr.f32.mxu0 %v7285_v47  ;;  %9645 = vst [vmem:[#allocation27_spill] sm:$0xff] %v7612_v5  ;;  %v7637_v16 = vsub.f32 %v2012_v6, %v7612_v5  ;;  %v2167_v53 = vsub.f32 %v7610_v0, %v9428_v18  ;;  %v9673_v18 = vld [vmem:[#allocation37_spill] sm:$0xff] }
  0xcf   :  { %6263 = vmatmul.mubr.f32.gmra.mxu1 %v7259_v44  ;;  %v7620_v44 = vsub.f32 %v2008_v34, %v7599_v39  ;;  %v9658_v34 = vld [vmem:[#allocation26_spill] sm:$0xff]  ;;  %v2036_v36 = vsel %vm1999_vm2, %v9673_v18, 0 }
  0xd0   :  { %6265 = vmatprep.mubr.f32.mxu1 %v7285_v47  ;;  %v2137_v47 = vsub.f32 %v7582_v4, %v9432_v49  ;;  %v9424_v14 = vand.u32 4294901760, %v7637_v16  ;;  %v2168_v20 = vand.u32 4294901760, %v2167_v53  ;;  %v2026_v48 = vsel %vm1999_vm2, %v9658_v34, 0 }
  0xd1   :  { %6214 = vmatmul.mubr.f32.gmra.mxu0 %v7295_v59  ;;  %v9427_v8 = vand.u32 4294901760, %v7620_v44 }
  0xd2   :  { %6216 = vmatprep.mubr.f32.mxu0 %v7318_v43  ;;  %v2138_v13 = vand.u32 4294901760, %v2137_v47  ;;  %v2197_v3 = vsub.f32 %v7637_v16, %v9424_v14 }
  0xd3   :  { %6266 = vmatmul.mubr.f32.gmra.mxu1 %v7295_v59  ;;  %v2147_v59 = vsub.f32 %v7593_v9, %v9431_v52  ;;  %v2177_v27 = vsub.f32 %v7620_v44, %v9427_v8 }
  0xd4   :  { %6268 = vmatprep.mubr.f32.mxu1 %v7318_v43  ;;  %v2018_v43 = vsel %vm1999_vm2, %v9649_v57, 0  ;;  %v2198_v57 = vand.u32 4294901760, %v2197_v3  ;;  %v9665_v3 = vld [vmem:[#allocation33_spill] sm:$0xff] }
  0xd5   :  { %6217 = vmatmul.mubr.f32.gmra.mxu0 %v7331_v45  ;;  %v7664_v28 = vand.u32 4294901760, %v2018_v43  ;;  %v2178_v6 = vand.u32 4294901760, %v2177_v27  ;;  %v9663_v27 = vld [vmem:[#allocation32_spill] sm:$0xff] }
  0xd6   :  { %6219 = vmatprep.mubr.f32.mxu0 %v7343_v42  ;;  %v2030_v30 = vsel %vm1999_vm2, %v9663_v27, 0 }
  0xd7   :  { %6269 = vmatmul.mubr.f32.gmra.mxu1 %v7331_v45  ;;  %9652 = vst [vmem:[#allocation31_spill] sm:$0xff] %v7664_v28  ;;  %v2148_v45 = vand.u32 4294901760, %v2147_v59  ;;  %v7689_v22 = vsub.f32 %v2018_v43, %v7664_v28  ;;  %v2207_v59 = vsub.f32 %v7655_v25, %v9423_v19  ;;  %v7713_v43 = vand.u32 4294901760, %v2026_v48 }
  0xd8   :  { %6271 = vmatprep.mubr.f32.mxu1 %v7343_v42  ;;  %v7673_v42 = vand.u32 4294901760, %v2020_v41  ;;  %v7747_v27 = vand.u32 4294901760, %v2030_v30 }
  0xd9   :  { %6220 = vmatmul.mubr.f32.gmra.mxu0 %v7355_v61  ;;  %9661 = vst [vmem:[#allocation41_spill] sm:$0xff] %v7713_v43  ;;  %v9426_v53 = vand.u32 4294901760, %v7689_v22 }
  0xda   :  { %6276 = vmatprep.mubr.f32.mxu0 %v2138_v13  ;;  %9653 = vst [vmem:[#allocation34_spill] sm:$0xff] %v7673_v42  ;;  %v7702_v46 = vsub.f32 %v2020_v41, %v7673_v42  ;;  %v7715_v13 = vand.u32 4294901760, %v2028_v63  ;;  %9668 = vst [vmem:[#allocation8_spill] sm:$0xff] %v7747_v27 }
  0xdb   :  { %6272 = vmatmul.mubr.f32.gmra.mxu1 %v7355_v61  ;;  %v7693_v61 = vand.u32 4294901760, %v2024_v58 }
  0xdc   :  { %6326 = vmatprep.mubr.f32.mxu1 %v7564_v23  ;;  %9662 = vst [vmem:[#allocation44_spill] sm:$0xff] %v7715_v13 }
  0xdd   :  { %v5968_v32 = vpop.f32.mrf.mxu0  ;;  %6277 = vmatmul.mubr.f32.vlgmr.msra.gmra.mxu0 %v2148_v45  ;;  %9657 = vst [vmem:[#allocation38_spill] sm:$0xff] %v7693_v61  ;;  %v7719_v45 = vsub.f32 %v2022_v26, %v7691_v33  ;;  %v2032_v26 = vsel %vm1999_vm2, %v9665_v3, 0 }
  0xde   :  { %6375 = vmatpush3.msra.mxu0 %v7399_v35  ;;  %6279 = vmatprep.mubr.f32.mxu0 %v2158_v37  ;;  %v6020_v2 = vpop.f32.mrf.mxu1  ;;  %v7722_v37 = vsub.f32 %v2024_v58, %v7693_v61 }
  0xdf   :  { %v247_v47 = vpop.f32.mrf.mxu0  ;;  %6327 = vmatmul.mubr.f32.vlgmr.msra.gmra.mxu1 %v7573_v21  ;;  %6474 = vmatprep.subr.mxu0 %v7404_v50  ;;  %v7709_v40 = vadd.f32 %v6020_v2, %v5968_v32  ;;  %v9666_v32 = vld [vmem:[#allocation35_spill] sm:$0xff]  ;;  %v2208_v2 = vand.u32 4294901760, %v2207_v59  ;;  %v9435_v59 = vand.u32 4294901760, %v7719_v45  ;;  %v9712_v21 = vld [vmem:[#allocation53_spill] sm:$0xff] }
  0xe0   :  { %6425 = vmatpush3.msra.mxu1 %v7394_v54  ;;  %6329 = vmatprep.mubr.f32.mxu1 %v7576_v10  ;;  %v638_v41 = vpop.f32.mrf.mxu1  ;;  %v2034_v58 = vsel %vm1999_vm2, %v9666_v32, 0  ;;  %v2227_v32 = vsub.f32 %v7689_v22, %v9426_v53 }
  0xe1   :  { %9660 = vst [vmem:[#allocation40_spill] sm:$0xff] %v7709_v40  ;;  %v5971_v55 = vpop.f32.mrf.mxu0  ;;  %6280 = vmatmul.mubr.f32.gmra.mxu0 %v2168_v20  ;;  %6524 = vmatprep.subr.mxu1 %v7394_v54  ;;  %v7727_v12 = vadd.f32 %v638_v41, %v247_v47  ;;  %v9430_v20 = vand.u32 4294901760, %v7702_v46  ;;  %v7745_v41 = vsub.f32 %v2028_v63, %v7715_v13  ;;  %v2218_v63 = vand.u32 4294901760, %v2217_v51 }
  0xe2   :  { %6282 = vmatprep.mubr.f32.mxu0 %v2178_v6  ;;  %v6023_v1 = vpop.f32.mrf.mxu1  ;;  %v7742_v6 = vsub.f32 %v2026_v48, %v7713_v43  ;;  %v7761_v14 = vand.u32 4294901760, %v2034_v58  ;;  %v2228_v52 = vand.u32 4294901760, %v2227_v32  ;;  %v2247_v49 = vsub.f32 %v7719_v45, %v9435_v59 }
  0xe3   :  { %9664 = vst [vmem:[#allocation7_spill] sm:$0xff] %v7727_v12  ;;  %v267_v34 = vpop.f32.mrf.mxu0  ;;  %6330 = vmatmul.mubr.f32.gmra.mxu1 %v7588_v7  ;;  %v7738_v47 = vadd.f32 %v6023_v1, %v5971_v55  ;;  %v9438_v55 = vand.u32 4294901760, %v7722_v37  ;;  %v7754_v1 = vand.u32 4294901760, %v2032_v26  ;;  %v2237_v19 = vsub.f32 %v7702_v46, %v9430_v20 }
  0xe4   :  { %6332 = vmatprep.mubr.f32.mxu1 %v7599_v39  ;;  %v650_v29 = vpop.f32.mrf.mxu1  ;;  %9671 = vst [vmem:[#allocation11_spill] sm:$0xff] %v7761_v14  ;;  %v7787_v51 = vand.u32 4294901760, %v2036_v36 }
  0xe5   :  { %9667 = vst [vmem:[#allocation47_spill] sm:$0xff] %v7738_v47  ;;  %v5974_v3 = vpop.f32.mrf.mxu0  ;;  %6283 = vmatmul.mubr.f32.gmra.mxu0 %v2188_v31  ;;  %9669 = vst [vmem:[#allocation9_spill] sm:$0xff] %v7754_v1  ;;  %v7756_v48 = vadd.f32 %v650_v29, %v267_v34  ;;  %v9672_v31 = vld [vmem:[#allocation39_spill] sm:$0xff]  ;;  %v7774_v34 = vsub.f32 %v2030_v30, %v7747_v27  ;;  %v2257_v18 = vsub.f32 %v7722_v37, %v9438_v55 }
  0xe6   :  { %6285 = vmatprep.mubr.f32.mxu0 %v2198_v57  ;;  %v2038_v60 = vsel %vm1999_vm2, %v9672_v31, 0  ;;  %v6026_v8 = vpop.f32.mrf.mxu1  ;;  %v2238_v30 = vand.u32 4294901760, %v2237_v19  ;;  %9676 = vst [vmem:[#allocation15_spill] sm:$0xff] %v7787_v51  ;;  %v9681_v19 = vand.u32 4294901760, %v7742_v6 }
  0xe7   :  { %9670 = vst [vmem:[#allocation10_spill] sm:$0xff] %v7756_v48  ;;  %v287_v53 = vpop.f32.mrf.mxu0  ;;  %6333 = vmatmul.mubr.f32.gmra.mxu1 %v7606_v56  ;;  %v7768_v29 = vadd.f32 %v6026_v8, %v5974_v3  ;;  %v7783_v8 = vsub.f32 %v2032_v26, %v7754_v1  ;;  %v7789_v57 = vand.u32 4294901760, %v2038_v60  ;;  %v9679_v56 = vld [vmem:[#allocation42_spill] sm:$0xff]  ;;  %v9704_v48 = vld [vmem:[#allocation51_spill] sm:$0xff] }
  0xe8   :  { %6335 = vmatprep.mubr.f32.mxu1 %v7612_v5  ;;  %v662_v31 = vpop.f32.mrf.mxu1  ;;  %v2040_v55 = vsel %vm1999_vm2, %v9679_v56, 0 }
  0xe9   :  { %9674 = vst [vmem:[#allocation12_spill] sm:$0xff] %v7768_v29  ;;  %v5977_v20 = vpop.f32.mrf.mxu0  ;;  %6286 = vmatmul.mubr.f32.gmra.mxu0 %v2208_v2  ;;  %v7785_v3 = vadd.f32 %v662_v31, %v287_v53  ;;  %9677 = vst [vmem:[#allocation17_spill] sm:$0xff] %v7789_v57  ;;  %v9678_v2 = vld [vmem:[#allocation43_spill] sm:$0xff]  ;;  %v2267_v53 = vsub.f32 %v7742_v6, %v9681_v19  ;;  %v7813_v19 = vsub.f32 %v2036_v36, %v7787_v51 }
  0xea   :  { %6288 = vmatprep.mubr.f32.mxu0 %v2218_v63  ;;  %v2042_v32 = vsel %vm1999_vm2, %v9678_v2, 0  ;;  %v6029_v59 = vpop.f32.mrf.mxu1  ;;  %v9682_v63 = vand.u32 4294901760, %v7745_v41  ;;  %v9690_v29 = vand.u32 4294901760, %v7783_v8 }
  0xeb   :  { %9675 = vst [vmem:[#allocation14_spill] sm:$0xff] %v7785_v3  ;;  %v307_v5 = vpop.f32.mrf.mxu0  ;;  %6336 = vmatmul.mubr.f32.gmra.mxu1 %v7630_v17  ;;  %v7796_v26 = vadd.f32 %v6029_v59, %v5977_v20  ;;  %v2248_v17 = vand.u32 4294901760, %v2247_v49  ;;  %v2258_v3 = vand.u32 4294901760, %v2257_v18  ;;  %v7808_v20 = vsub.f32 %v2034_v58, %v7761_v14  ;;  %v9687_v49 = vld [vmem:[#allocation46_spill] sm:$0xff] }
  0xec   :  { %6338 = vmatprep.mubr.f32.mxu1 %v7650_v24  ;;  %v2277_v31 = vsub.f32 %v7745_v41, %v9682_v63  ;;  %v674_v7 = vpop.f32.mrf.mxu1  ;;  %v7815_v24 = vand.u32 4294901760, %v2040_v55  ;;  %v9685_v63 = vld [vmem:[#allocation45_spill] sm:$0xff]  ;;  %v9689_v58 = vand.u32 4294901760, %v7774_v34 }
  0xed   :  { %9680 = vst [vmem:[#allocation18_spill] sm:$0xff] %v7796_v26  ;;  %v5980_v39 = vpop.f32.mrf.mxu0  ;;  %6289 = vmatmul.mubr.f32.gmra.mxu0 %v2228_v52  ;;  %v7810_v59 = vadd.f32 %v674_v7, %v307_v5  ;;  %v2044_v2 = vsel %vm1999_vm2, %v9685_v63, 0  ;;  %v7819_v26 = vand.u32 4294901760, %v2042_v32  ;;  %v2046_v52 = vsel %vm1999_vm2, %v9687_v49, 0 }
  0xee   :  { %6291 = vmatprep.mubr.f32.mxu0 %v2238_v30  ;;  %9684 = vst [vmem:[#allocation22_spill] sm:$0xff] %v7815_v24  ;;  %v6032_v56 = vpop.f32.mrf.mxu1  ;;  %v2268_v5 = vand.u32 4294901760, %v2267_v53  ;;  %v2278_v36 = vand.u32 4294901760, %v2277_v31  ;;  %v2287_v30 = vsub.f32 %v7774_v34, %v9689_v58  ;;  %v2297_v49 = vsub.f32 %v7783_v8, %v9690_v29 }
  0xef   :  { %9683 = vst [vmem:[#allocation20_spill] sm:$0xff] %v7810_v59  ;;  %9686 = vst [vmem:[#allocation23_spill] sm:$0xff] %v7819_v26  ;;  %v327_v18 = vpop.f32.mrf.mxu0  ;;  %6339 = vmatmul.mubr.f32.gmra.mxu1 %v7664_v28  ;;  %v7824_v7 = vadd.f32 %v6032_v56, %v5980_v39  ;;  %v7835_v39 = vsub.f32 %v2038_v60, %v7789_v57  ;;  %v7837_v56 = vand.u32 4294901760, %v2044_v2  ;;  %v7847_v28 = vand.u32 4294901760, %v2046_v52  ;;  %v9695_v60 = vld [vmem:[#allocation49_spill] sm:$0xff] }
  0xf0   :  { %6341 = vmatprep.mubr.f32.mxu1 %v7673_v42  ;;  %v686_v59 = vpop.f32.mrf.mxu1  ;;  %v7843_v58 = vsub.f32 %v2040_v55, %v7815_v24  ;;  %v7856_v55 = vsub.f32 %v2042_v32, %v7819_v26  ;;  %v9701_v32 = vand.u32 4294901760, %v7813_v19 }
  0xf1   :  { %9688 = vst [vmem:[#allocation26_spill] sm:$0xff] %v7824_v7  ;;  %v5983_v63 = vpop.f32.mrf.mxu0  ;;  %6292 = vmatmul.mubr.f32.gmra.mxu0 %v2248_v17  ;;  %9691 = vst [vmem:[#allocation30_spill] sm:$0xff] %v7837_v56  ;;  %v7839_v53 = vadd.f32 %v686_v59, %v327_v18  ;;  %v9693_v17 = vld [vmem:[#allocation48_spill] sm:$0xff]  ;;  %v2050_v7 = vsel %vm1999_vm2, %v9695_v60, 0  ;;  %v7863_v10 = vsub.f32 %v2044_v2, %v7837_v56  ;;  %v9703_v2 = vld [vmem:[#allocation50_spill] sm:$0xff] }
  0xf2   :  { %6294 = vmatprep.mubr.f32.mxu0 %v2258_v3  ;;  %v2048_v42 = vsel %vm1999_vm2, %v9693_v17, 0  ;;  %9694 = vst [vmem:[#allocation33_spill] sm:$0xff] %v7847_v28  ;;  %v6035_v35 = vpop.f32.mrf.mxu1  ;;  %v2288_v3 = vand.u32 4294901760, %v2287_v30  ;;  %v9697_v17 = vand.u32 4294901760, %v7808_v20  ;;  %v2298_v30 = vand.u32 4294901760, %v2297_v49 }
  0xf3   :  { %9692 = vst [vmem:[#allocation32_spill] sm:$0xff] %v7839_v53  ;;  %v347_v29 = vpop.f32.mrf.mxu0  ;;  %6342 = vmatmul.mubr.f32.gmra.mxu1 %v7691_v33  ;;  %v7852_v59 = vadd.f32 %v6035_v35, %v5983_v63  ;;  %9698 = vst [vmem:[#allocation39_spill] sm:$0xff] %v7863_v10  ;;  %v7865_v35 = vand.u32 4294901760, %v2048_v42  ;;  %v2317_v60 = vsub.f32 %v7813_v19, %v9701_v32  ;;  %v2052_v33 = vsel %vm1999_vm2, %v9703_v2, 0 }
  0xf4   :  { %6344 = vmatprep.mubr.f32.mxu1 %v7693_v61  ;;  %v698_v31 = vpop.f32.mrf.mxu1  ;;  %v2307_v53 = vsub.f32 %v7808_v20, %v9697_v17  ;;  %v7873_v61 = vand.u32 4294901760, %v2050_v7  ;;  %v9715_v23 = vand.u32 4294901760, %v7863_v10 }
  0xf5   :  { %9696 = vst [vmem:[#allocation35_spill] sm:$0xff] %v7852_v59  ;;  %v5986_v18 = vpop.f32.mrf.mxu0  ;;  %6295 = vmatmul.mubr.f32.gmra.mxu0 %v2268_v5  ;;  %9699 = vst [vmem:[#allocation37_spill] sm:$0xff] %v7865_v35  ;;  %v7867_v63 = vadd.f32 %v698_v31, %v347_v29  ;;  %v2054_v31 = vsel %vm1999_vm2, %v9704_v48, 0  ;;  %v7885_v29 = vsub.f32 %v2046_v52, %v7847_v28  ;;  %v9708_v52 = vand.u32 4294901760, %v7843_v58 }
  0xf6   :  { %6297 = vmatprep.mubr.f32.mxu0 %v2278_v36  ;;  %9702 = vst [vmem:[#allocation42_spill] sm:$0xff] %v7873_v61  ;;  %v6038_v59 = vpop.f32.mrf.mxu1  ;;  %v7892_v48 = vsub.f32 %v2048_v42, %v7865_v35 }
  0xf7   :  { %9700 = vst [vmem:[#allocation43_spill] sm:$0xff] %v7867_v63  ;;  %v367_v17 = vpop.f32.mrf.mxu0  ;;  %6345 = vmatmul.mubr.f32.gmra.mxu1 %v7713_v43  ;;  %v7880_v36 = vadd.f32 %v6038_v59, %v5986_v18  ;;  %v2308_v63 = vand.u32 4294901760, %v2307_v53  ;;  %v9706_v43 = vand.u32 4294901760, %v7835_v39  ;;  %v2318_v18 = vand.u32 4294901760, %v2317_v60 }
  0xf8   :  { %6347 = vmatprep.mubr.f32.mxu1 %v7715_v13  ;;  %v710_v5 = vpop.f32.mrf.mxu1  ;;  %v2337_v49 = vsub.f32 %v7843_v58, %v9708_v52  ;;  %v7899_v13 = vand.u32 4294901760, %v2052_v33  ;;  %v7901_v53 = vand.u32 4294901760, %v2054_v31  ;;  %v9714_v60 = vand.u32 4294901760, %v7856_v55 }
  0xf9   :  { %9705 = vst [vmem:[#allocation45_spill] sm:$0xff] %v7880_v36  ;;  %v5989_v32 = vpop.f32.mrf.mxu0  ;;  %6298 = vmatmul.mubr.f32.gmra.mxu0 %v2288_v3  ;;  %v2327_v2 = vsub.f32 %v7835_v39, %v9706_v43  ;;  %v7894_v59 = vadd.f32 %v710_v5, %v367_v17  ;;  %v9711_v43 = vld [vmem:[#allocation52_spill] sm:$0xff]  ;;  %v2058_v5 = vsel %vm1999_vm2, %v9712_v21, 0 }
  0xfa   :  { %6300 = vmatprep.mubr.f32.mxu0 %v2298_v30  ;;  %9709 = vst [vmem:[#allocation48_spill] sm:$0xff] %v7899_v13  ;;  %9710 = vst [vmem:[#allocation49_spill] sm:$0xff] %v7901_v53  ;;  %v6041_v36 = vpop.f32.mrf.mxu1  ;;  %v2056_v42 = vsel %vm1999_vm2, %v9711_v43, 0  ;;  %v2347_v17 = vsub.f32 %v7856_v55, %v9714_v60  ;;  %v2357_v43 = vsub.f32 %v7863_v10, %v9715_v23  ;;  %v9719_v23 = vld [vmem:[#allocation54_spill] sm:$0xff] }
  0xfb   :  { %9707 = vst [vmem:[#allocation46_spill] sm:$0xff] %v7894_v59  ;;  %v387_v3 = vpop.f32.mrf.mxu0  ;;  %6348 = vmatmul.mubr.f32.gmra.mxu1 %v7747_v27  ;;  %v7908_v30 = vadd.f32 %v6041_v36, %v5989_v32  ;;  %v2328_v27 = vand.u32 4294901760, %v2327_v2  ;;  %v7920_v36 = vsub.f32 %v2050_v7, %v7873_v61  ;;  %v7925_v60 = vsub.f32 %v2052_v33, %v7899_v13  ;;  %v9720_v7 = vld [vmem:[#allocation55_spill] sm:$0xff] }
  0xfc   :  { %6350 = vmatprep.mubr.f32.mxu1 %v7754_v1  ;;  %v722_v47 = vpop.f32.mrf.mxu1  ;;  %v2338_v1 = vand.u32 4294901760, %v2337_v49  ;;  %v7927_v52 = vand.u32 4294901760, %v2056_v42  ;;  %v2060_v21 = vsel %vm1999_vm2, %v9719_v23, 0  ;;  %v2348_v33 = vand.u32 4294901760, %v2347_v17 }
  0xfd   :  { %9713 = vst [vmem:[#allocation50_spill] sm:$0xff] %v7908_v30  ;;  %v5992_v59 = vpop.f32.mrf.mxu0  ;;  %6301 = vmatmul.mubr.f32.gmra.mxu0 %v2308_v63  ;;  %v7922_v32 = vadd.f32 %v722_v47, %v387_v3  ;;  %v7929_v63 = vand.u32 4294901760, %v2058_v5  ;;  %v2062_v47 = vsel %vm1999_vm2, %v9720_v7, 0  ;;  %v9721_v49 = vand.u32 4294901760, %v7885_v29 }
  0xfe   :  { %6303 = vmatprep.mubr.f32.mxu0 %v2318_v18  ;;  %9717 = vst [vmem:[#allocation52_spill] sm:$0xff] %v7927_v52  ;;  %v6044_v30 = vpop.f32.mrf.mxu1  ;;  %v2358_v40 = vand.u32 4294901760, %v2357_v43  ;;  %v7953_v7 = vsub.f32 %v2056_v42, %v7927_v52  ;;  %v9726_v42 = vand.u32 4294901760, %v7920_v36 }
  0xff   :  { %9716 = vst [vmem:[#allocation51_spill] sm:$0xff] %v7922_v32  ;;  %9718 = vst [vmem:[#allocation53_spill] sm:$0xff] %v7929_v63  ;;  %v407_v2 = vpop.f32.mrf.mxu0  ;;  %6351 = vmatmul.mubr.f32.gmra.mxu1 %v7761_v14  ;;  %v7936_v3 = vadd.f32 %v6044_v30, %v5992_v59  ;;  %v2367_v18 = vsub.f32 %v7885_v29, %v9721_v49  ;;  %v9722_v14 = vand.u32 4294901760, %v7892_v48  ;;  %v7955_v49 = vand.u32 4294901760, %v2060_v21 }
 0x100   :  { %6353 = vmatprep.mubr.f32.mxu1 %v7787_v51  ;;  %v734_v12 = vpop.f32.mrf.mxu1  ;;  %v7947_v59 = vsub.f32 %v2054_v31, %v7901_v53  ;;  %v2387_v17 = vsub.f32 %v7920_v36, %v9726_v42 }
 0x101   :  { %v5995_v32 = vpop.f32.mrf.mxu0  ;;  %6304 = vmatmul.mubr.f32.gmra.mxu0 %v2328_v27  ;;  %v2377_v23 = vsub.f32 %v7892_v48, %v9722_v14  ;;  %v7949_v30 = vadd.f32 %v734_v12, %v407_v2  ;;  %9724 = vst [vmem:[#allocation55_spill] sm:$0xff] %v7955_v49  ;;  %v7958_v14 = vand.u32 4294901760, %v2062_v47  ;;  %v2368_v12 = vand.u32 4294901760, %v2367_v18 }
 0x102   :  { %6306 = vmatprep.mubr.f32.mxu0 %v2338_v1  ;;  %v6047_v43 = vpop.f32.mrf.mxu1  ;;  %v9485_v51 = vand.u32 4294901760, %v7947_v59 }
 0x103   :  { %9723 = vst [vmem:[#allocation54_spill] sm:$0xff] %v7949_v30  ;;  %v427_v27 = vpop.f32.mrf.mxu0  ;;  %6354 = vmatmul.mubr.f32.gmra.mxu1 %v7789_v57  ;;  %9725 = vst [vmem:[#allocation58_spill] sm:$0xff] %v7958_v14  ;;  %v7960_v10 = vadd.f32 %v6047_v43, %v5995_v32  ;;  %v2378_v2 = vand.u32 4294901760, %v2377_v23  ;;  %v7968_v30 = vsub.f32 %v2058_v5, %v7929_v63  ;;  %v9727_v32 = vand.u32 4294901760, %v7925_v60 }
 0x104   :  { %6356 = vmatprep.mubr.f32.mxu1 %v7815_v24  ;;  %v746_v1 = vpop.f32.mrf.mxu1 }
 0x105   :  { %v5998_v31 = vpop.f32.mrf.mxu0  ;;  %6307 = vmatmul.mubr.f32.gmra.mxu0 %v2348_v33  ;;  %v7970_v57 = vadd.f32 %v746_v1, %v427_v27  ;;  %v2397_v18 = vsub.f32 %v7925_v60, %v9727_v32  ;;  %v7977_v33 = vsub.f32 %v2060_v21, %v7955_v49  ;;  %v2407_v1 = vsub.f32 %v7947_v59, %v9485_v51 }
 0x106   :  { %6309 = vmatprep.mubr.f32.mxu0 %v2358_v40  ;;  %v6050_v24 = vpop.f32.mrf.mxu1  ;;  %v2388_v40 = vand.u32 4294901760, %v2387_v17  ;;  %v7988_v21 = vsub.f32 %v2062_v47, %v7958_v14 }
 0x107   :  { %v447_v23 = vpop.f32.mrf.mxu0  ;;  %6357 = vmatmul.mubr.f32.gmra.mxu1 %v7819_v26  ;;  %v7980_v42 = vadd.f32 %v6050_v24, %v5998_v31  ;;  %v2398_v24 = vand.u32 4294901760, %v2397_v18  ;;  %v9730_v31 = vand.u32 4294901760, %v7953_v7 }
 0x108   :  { %6359 = vmatprep.mubr.f32.mxu1 %v7837_v56  ;;  %v758_v27 = vpop.f32.mrf.mxu1 }
 0x109   :  { %9728 = vst [vmem:[#allocation59_spill] sm:$0xff] %v7980_v42  ;;  %v6001_v5 = vpop.f32.mrf.mxu0  ;;  %6310 = vmatmul.mubr.f32.gmra.mxu0 %v2368_v12  ;;  %v7990_v43 = vadd.f32 %v758_v27, %v447_v23  ;;  %v2417_v56 = vsub.f32 %v7953_v7, %v9730_v31  ;;  %v2408_v23 = vand.u32 4294901760, %v2407_v1  ;;  %v9768_v42 = vand.u32 4294901760, %v7856_v55 }
 0x10a   :  { %6312 = vmatprep.mubr.f32.mxu0 %v2378_v2  ;;  %v6053_v26 = vpop.f32.mrf.mxu1  ;;  %v9732_v2 = vand.u32 4294901760, %v7968_v30 }
 0x10b   :  { %9729 = vst [vmem:[#allocation60_spill] sm:$0xff] %v7990_v43  ;;  %v467_v17 = vpop.f32.mrf.mxu0  ;;  %6360 = vmatmul.mubr.f32.gmra.mxu1 %v7847_v28  ;;  %v7997_v51 = vadd.f32 %v6053_v26, %v6001_v5  ;;  %v2418_v12 = vand.u32 4294901760, %v2417_v56  ;;  %v9734_v28 = vand.u32 4294901760, %v7977_v33 }
 0x10c   :  { %6362 = vmatprep.mubr.f32.mxu1 %v7865_v35  ;;  %v770_v32 = vpop.f32.mrf.mxu1  ;;  %v2427_v18 = vsub.f32 %v7968_v30, %v9732_v2 }
 0x10d   :  { %9731 = vst [vmem:[#allocation61_spill] sm:$0xff] %v7997_v51  ;;  %v6004_v47 = vpop.f32.mrf.mxu0  ;;  %6313 = vmatmul.mubr.f32.gmra.mxu0 %v2388_v40  ;;  %v8004_v31 = vadd.f32 %v770_v32, %v467_v17  ;;  %v2437_v26 = vsub.f32 %v7977_v33, %v9734_v28  ;;  %v9736_v32 = vand.u32 4294901760, %v7988_v21 }
 0x10e   :  { %6315 = vmatprep.mubr.f32.mxu0 %v2398_v24  ;;  %v6056_v35 = vpop.f32.mrf.mxu1  ;;  %v2428_v27 = vand.u32 4294901760, %v2427_v18 }
 0x10f   :  { %9733 = vst [vmem:[#allocation62_spill] sm:$0xff] %v8004_v31  ;;  %v487_v5 = vpop.f32.mrf.mxu0  ;;  %6363 = vmatmul.mubr.f32.gmra.mxu1 %v7873_v61  ;;  %v8010_v40 = vadd.f32 %v6056_v35, %v6004_v47  ;;  %v2447_v56 = vsub.f32 %v7988_v21, %v9736_v32  ;;  %v2438_v28 = vand.u32 4294901760, %v2437_v26 }
 0x110   :  { %6365 = vmatprep.mubr.f32.mxu1 %v7899_v13  ;;  %v782_v2 = vpop.f32.mrf.mxu1 }
 0x111   :  { %9735 = vst [vmem:[#allocation63_spill] sm:$0xff] %v8010_v40  ;;  %v6007_v1 = vpop.f32.mrf.mxu0  ;;  %6316 = vmatmul.mubr.f32.gmra.mxu0 %v2408_v23  ;;  %v8016_v24 = vadd.f32 %v782_v2, %v487_v5  ;;  %v2448_v23 = vand.u32 4294901760, %v2447_v56  ;;  %v9743_v56 = vand.u32 4294901760, %v7582_v4  ;;  %v9763_v40 = vand.u32 4294901760, %v7835_v39 }
 0x112   :  { %6318 = vmatprep.mubr.f32.mxu0 %v2418_v12  ;;  %v6059_v31 = vpop.f32.mrf.mxu1 }
 0x113   :  { %9737 = vst [vmem:[#allocation64_spill] sm:$0xff] %v8016_v24  ;;  %v507_v17 = vpop.f32.mrf.mxu0  ;;  %6366 = vmatmul.mubr.f32.gmra.mxu1 %v7901_v53  ;;  %v8019_v35 = vadd.f32 %v6059_v31, %v6007_v1  ;;  %v9757_v53 = vand.u32 4294901760, %v7742_v6 }
 0x114   :  { %6368 = vmatprep.mubr.f32.mxu1 %v7927_v52  ;;  %v794_v13 = vpop.f32.mrf.mxu1  ;;  %v9755_v52 = vand.u32 4294901760, %v7719_v45 }
 0x115   :  { %9738 = vst [vmem:[#allocation65_spill] sm:$0xff] %v8019_v35  ;;  %v6010_v47 = vpop.f32.mrf.mxu0  ;;  %6319 = vmatmul.mubr.f32.gmra.mxu0 %v2428_v27  ;;  %v8022_v18 = vadd.f32 %v794_v13, %v507_v17  ;;  %v9761_v35 = vand.u32 4294901760, %v7808_v20 }
 0x116   :  { %6321 = vmatprep.mubr.f32.mxu0 %v2438_v28  ;;  %v6062_v5 = vpop.f32.mrf.mxu1 }
 0x117   :  { %9739 = vst [vmem:[#allocation66_spill] sm:$0xff] %v8022_v18  ;;  %v527_v32 = vpop.f32.mrf.mxu0  ;;  %6369 = vmatmul.mubr.f32.gmra.mxu1 %v7929_v63  ;;  %v8025_v12 = vadd.f32 %v6062_v5, %v6010_v47  ;;  %v9745_v5 = vand.u32 4294901760, %v7593_v9  ;;  %v9753_v63 = vand.u32 4294901760, %v7689_v22  ;;  %v9759_v18 = vand.u32 4294901760, %v7774_v34 }
 0x118   :  { %6371 = vmatprep.mubr.f32.mxu1 %v7955_v49  ;;  %v806_v31 = vpop.f32.mrf.mxu1  ;;  %v9751_v49 = vand.u32 4294901760, %v7655_v25 }
 0x119   :  { %9740 = vst [vmem:[#allocation67_spill] sm:$0xff] %v8025_v12  ;;  %v6013_v26 = vpop.f32.mrf.mxu0  ;;  %6322 = vmatmul.mubr.f32.gmra.mxu0 %v2448_v23  ;;  %v8028_v1 = vadd.f32 %v806_v31, %v527_v32 }
 0x11a   :  { %6376 = vmatprep.mubr.f32.mxu0 %v7582_v4  ;;  %v6065_v2 = vpop.f32.mrf.mxu1  ;;  %v9746_v4 = vand.u32 4294901760, %v7597_v38 }
 0x11b   :  { %9741 = vst [vmem:[#allocation68_spill] sm:$0xff] %v8028_v1  ;;  %v547_v27 = vpop.f32.mrf.mxu0  ;;  %6372 = vmatmul.mubr.f32.gmra.mxu1 %v7958_v14  ;;  %v8032_v13 = vadd.f32 %v6065_v2, %v6013_v26  ;;  %v9747_v2 = vand.u32 4294901760, %v7610_v0 }
 0x11c   :  { %6426 = vmatprep.mubr.f32.mxu1 %v9743_v56  ;;  %v818_v28 = vpop.f32.mrf.mxu1 }
 0x11d   :  { %9742 = vst [vmem:[#allocation69_spill] sm:$0xff] %v8032_v13  ;;  %v8036_v17 = vpop.f32.mrf.mxu0  ;;  %6377 = vmatmul.mubr.f32.vlgmr.msra.gmra.mxu0 %v7593_v9  ;;  %v8039_v47 = vadd.f32 %v818_v28, %v547_v27 }
 0x11e   :  { %6475 = vmatpush3.msra.mxu0 %v7404_v50  ;;  %6379 = vmatprep.mubr.f32.mxu0 %v7597_v38  ;;  %v9748_v38 = vand.u32 4294901760, %v7620_v44  ;;  %v9749_v50 = vand.u32 4294901760, %v7628_v11 }
 0x11f   :  { %9744 = vst [vmem:[#allocation70_spill] sm:$0xff] %v8039_v47  ;;  %v8043_v23 = vpop.f32.mrf.mxu0  ;;  %v8045_v32 = vpop.f32.mrf.mxu1  ;;  %6427 = vmatmul.mubr.f32.vlgmr.msra.gmra.mxu1 %v9745_v5  ;;  %6574 = vmatprep.subr.mxu0 %v7394_v54 }
 0x120   :  { %6525 = vmatpush3.msra.mxu1 %v7394_v54  ;;  %6429 = vmatprep.mubr.f32.mxu1 %v9746_v4 }
 0x121   :  { %v8053_v26 = vpop.f32.mrf.mxu0  ;;  %v8055_v31 = vpop.f32.mrf.mxu1  ;;  %6380 = vmatmul.mubr.f32.gmra.mxu0 %v7610_v0  ;;  %6582 = vmatprep.subr.mxu1 %v7423_v15  ;;  %v9750_v0 = vand.u32 4294901760, %v7637_v16 }
 0x122   :  { %6382 = vmatprep.mubr.f32.mxu0 %v7620_v44 }
 0x123   :  { %v8060_v27 = vpop.f32.mrf.mxu0  ;;  %v8062_v9 = vpop.f32.mrf.mxu1  ;;  %6430 = vmatmul.mubr.f32.gmra.mxu1 %v9747_v2 }
 0x124   :  { %6432 = vmatprep.mubr.f32.mxu1 %v9748_v38 }
 0x125   :  { %v8068_v56 = vpop.f32.mrf.mxu0  ;;  %v8070_v28 = vpop.f32.mrf.mxu1  ;;  %6383 = vmatmul.mubr.f32.gmra.mxu0 %v7628_v11 }
 0x126   :  { %6385 = vmatprep.mubr.f32.mxu0 %v7637_v16 }
 0x127   :  { %v8074_v5 = vpop.f32.mrf.mxu0  ;;  %v8076_v4 = vpop.f32.mrf.mxu1  ;;  %6433 = vmatmul.mubr.f32.gmra.mxu1 %v9749_v50  ;;  %v9752_v50 = vand.u32 4294901760, %v7671_v62 }
 0x128   :  { %6435 = vmatprep.mubr.f32.mxu1 %v9750_v0 }
 0x129   :  { %v8082_v44 = vpop.f32.mrf.mxu0  ;;  %v8084_v2 = vpop.f32.mrf.mxu1  ;;  %6386 = vmatmul.mubr.f32.gmra.mxu0 %v7655_v25  ;;  %v9754_v25 = vand.u32 4294901760, %v7702_v46 }
 0x12a   :  { %6388 = vmatprep.mubr.f32.mxu0 %v7671_v62 }
 0x12b   :  { %v8088_v38 = vpop.f32.mrf.mxu0  ;;  %v8090_v14 = vpop.f32.mrf.mxu1  ;;  %6436 = vmatmul.mubr.f32.gmra.mxu1 %v9751_v49 }
 0x12c   :  { %6438 = vmatprep.mubr.f32.mxu1 %v9752_v50 }
 0x12d   :  { %v8096_v11 = vpop.f32.mrf.mxu0  ;;  %v8098_v16 = vpop.f32.mrf.mxu1  ;;  %6389 = vmatmul.mubr.f32.gmra.mxu0 %v7689_v22  ;;  %v9756_v22 = vand.u32 4294901760, %v7722_v37 }
 0x12e   :  { %6391 = vmatprep.mubr.f32.mxu0 %v7702_v46 }
 0x12f   :  { %v8102_v0 = vpop.f32.mrf.mxu0  ;;  %v8104_v47 = vpop.f32.mrf.mxu1  ;;  %6439 = vmatmul.mubr.f32.gmra.mxu1 %v9753_v63 }
 0x130   :  { %6441 = vmatprep.mubr.f32.mxu1 %v9754_v25 }
 0x131   :  { %v8110_v62 = vpop.f32.mrf.mxu0  ;;  %v8112_v49 = vpop.f32.mrf.mxu1  ;;  %6392 = vmatmul.mubr.f32.gmra.mxu0 %v7719_v45  ;;  %v9758_v45 = vand.u32 4294901760, %v7745_v41 }
 0x132   :  { %6394 = vmatprep.mubr.f32.mxu0 %v7722_v37 }
 0x133   :  { %v8116_v50 = vpop.f32.mrf.mxu0  ;;  %v8118_v13 = vpop.f32.mrf.mxu1  ;;  %6442 = vmatmul.mubr.f32.gmra.mxu1 %v9755_v52 }
 0x134   :  { %6444 = vmatprep.mubr.f32.mxu1 %v9756_v22 }
 0x135   :  { %v8124_v46 = vpop.f32.mrf.mxu0  ;;  %v8126_v63 = vpop.f32.mrf.mxu1  ;;  %6395 = vmatmul.mubr.f32.gmra.mxu0 %v7742_v6  ;;  %v9760_v6 = vand.u32 4294901760, %v7783_v8 }
 0x136   :  { %6397 = vmatprep.mubr.f32.mxu0 %v7745_v41 }
 0x137   :  { %v8130_v25 = vpop.f32.mrf.mxu0  ;;  %v8132_v1 = vpop.f32.mrf.mxu1  ;;  %6445 = vmatmul.mubr.f32.gmra.mxu1 %v9757_v53 }
 0x138   :  { %6447 = vmatprep.mubr.f32.mxu1 %v9758_v45 }
 0x139   :  { %v8138_v37 = vpop.f32.mrf.mxu0  ;;  %v8140_v52 = vpop.f32.mrf.mxu1  ;;  %6398 = vmatmul.mubr.f32.gmra.mxu0 %v7774_v34  ;;  %v9762_v34 = vand.u32 4294901760, %v7813_v19 }
 0x13a   :  { %6400 = vmatprep.mubr.f32.mxu0 %v7783_v8 }
 0x13b   :  { %v8144_v22 = vpop.f32.mrf.mxu0  ;;  %v8146_v12 = vpop.f32.mrf.mxu1  ;;  %6448 = vmatmul.mubr.f32.gmra.mxu1 %v9759_v18 }
 0x13c   :  { %6450 = vmatprep.mubr.f32.mxu1 %v9760_v6 }
 0x13d   :  { %v8152_v41 = vpop.f32.mrf.mxu0  ;;  %v8154_v53 = vpop.f32.mrf.mxu1  ;;  %6401 = vmatmul.mubr.f32.gmra.mxu0 %v7808_v20  ;;  %v9764_v20 = vand.u32 4294901760, %v7843_v58 }
 0x13e   :  { %6403 = vmatprep.mubr.f32.mxu0 %v7813_v19 }
 0x13f   :  { %v8158_v45 = vpop.f32.mrf.mxu0  ;;  %v8160_v61 = vpop.f32.mrf.mxu1  ;;  %6451 = vmatmul.mubr.f32.gmra.mxu1 %v9761_v35 }
 0x140   :  { %6453 = vmatprep.mubr.f32.mxu1 %v9762_v34  ;;  %v9766_v34 = vld [vmem:[#allocation39_spill] sm:$0xff] }
 0x141   :  { %v8166_v8 = vpop.f32.mrf.mxu0  ;;  %v8168_v18 = vpop.f32.mrf.mxu1  ;;  %6404 = vmatmul.mubr.f32.gmra.mxu0 %v7835_v39  ;;  %v9769_v39 = vand.u32 4294901760, %v9766_v34 }
 0x142   :  { %6406 = vmatprep.mubr.f32.mxu0 %v7843_v58 }
 0x143   :  { %v8172_v6 = vpop.f32.mrf.mxu0  ;;  %v8174_v24 = vpop.f32.mrf.mxu1  ;;  %6454 = vmatmul.mubr.f32.gmra.mxu1 %v9763_v40 }
 0x144   :  { %6456 = vmatprep.mubr.f32.mxu1 %v9764_v20 }
 0x145   :  { %v8180_v19 = vpop.f32.mrf.mxu0  ;;  %v8182_v35 = vpop.f32.mrf.mxu1  ;;  %6407 = vmatmul.mubr.f32.gmra.mxu0 %v7856_v55  ;;  %v9773_v55 = vand.u32 4294901760, %v7892_v48 }
 0x146   :  { %9765 = vst [vmem:[#allocation71_spill] sm:$0xff] %v8182_v35  ;;  %6409 = vmatprep.mubr.f32.mxu0 %v9766_v34 }
 0x147   :  { %v8186_v51 = vpop.f32.mrf.mxu0  ;;  %v8188_v43 = vpop.f32.mrf.mxu1  ;;  %6457 = vmatmul.mubr.f32.gmra.mxu1 %v9768_v42 }
 0x148   :  { %9767 = vst [vmem:[#allocation39_spill] sm:$0xff] %v8188_v43  ;;  %6459 = vmatprep.mubr.f32.mxu1 %v9769_v39  ;;  %v9772_v43 = vand.u32 4294901760, %v7885_v29 }
 0x149   :  { %v8194_v58 = vpop.f32.mrf.mxu0  ;;  %v8196_v40 = vpop.f32.mrf.mxu1  ;;  %6410 = vmatmul.mubr.f32.gmra.mxu0 %v7885_v29  ;;  %v9777_v29 = vand.u32 4294901760, %v7925_v60 }
 0x14a   :  { %9770 = vst [vmem:[#allocation72_spill] sm:$0xff] %v8196_v40  ;;  %6412 = vmatprep.mubr.f32.mxu0 %v7892_v48 }
 0x14b   :  { %v8200_v20 = vpop.f32.mrf.mxu0  ;;  %v8202_v35 = vpop.f32.mrf.mxu1  ;;  %6460 = vmatmul.mubr.f32.gmra.mxu1 %v9772_v43 }
 0x14c   :  { %9771 = vst [vmem:[#allocation73_spill] sm:$0xff] %v8202_v35  ;;  %6462 = vmatprep.mubr.f32.mxu1 %v9773_v55  ;;  %v9776_v35 = vand.u32 4294901760, %v7920_v36 }
 0x14d   :  { %v8208_v42 = vpop.f32.mrf.mxu0  ;;  %v8210_v34 = vpop.f32.mrf.mxu1  ;;  %6413 = vmatmul.mubr.f32.gmra.mxu0 %v7920_v36  ;;  %v9782_v36 = vand.u32 4294901760, %v7953_v7 }
 0x14e   :  { %9774 = vst [vmem:[#allocation74_spill] sm:$0xff] %v8210_v34  ;;  %6415 = vmatprep.mubr.f32.mxu0 %v7925_v60 }
 0x14f   :  { %v8214_v39 = vpop.f32.mrf.mxu0  ;;  %v8216_v40 = vpop.f32.mrf.mxu1  ;;  %6463 = vmatmul.mubr.f32.gmra.mxu1 %v9776_v35 }
 0x150   :  { %9775 = vst [vmem:[#allocation75_spill] sm:$0xff] %v8216_v40  ;;  %6465 = vmatprep.mubr.f32.mxu1 %v9777_v29  ;;  %v9781_v40 = vand.u32 4294901760, %v7947_v59 }
 0x151   :  { %v8222_v48 = vpop.f32.mrf.mxu0  ;;  %v8224_v43 = vpop.f32.mrf.mxu1  ;;  %6416 = vmatmul.mubr.f32.gmra.mxu0 %v7947_v59  ;;  %v9788_v59 = vld [vmem:[#allocation40_spill] sm:$0xff] }
 0x152   :  { %9778 = vst [vmem:[#allocation76_spill] sm:$0xff] %v8224_v43  ;;  %6418 = vmatprep.mubr.f32.mxu0 %v7953_v7  ;;  %v9789_v7 = vand.u32 4294901760, %v7977_v33 }
 0x153   :  { %v8228_v55 = vpop.f32.mrf.mxu0  ;;  %v8230_v34 = vpop.f32.mrf.mxu1  ;;  %6466 = vmatmul.mubr.f32.gmra.mxu1 %v9781_v40  ;;  %v908_v40 = vadd.f32 %v8036_v17, %v9788_v59 }
 0x154   :  { %9779 = vst [vmem:[#allocation77_spill] sm:$0xff] %v8228_v55  ;;  %9780 = vst [vmem:[#allocation78_spill] sm:$0xff] %v8230_v34  ;;  %6468 = vmatprep.mubr.f32.mxu1 %v9782_v36  ;;  %v9787_v34 = vand.u32 4294901760, %v7968_v30  ;;  %v9792_v55 = vld [vmem:[#allocation13_spill] sm:$0xff] }
 0x155   :  { %v8236_v60 = vpop.f32.mrf.mxu0  ;;  %v8238_v35 = vpop.f32.mrf.mxu1  ;;  %6419 = vmatmul.mubr.f32.gmra.mxu0 %v7968_v30  ;;  %v1201_v59 = vadd.f32 %v8045_v32, %v908_v40 }
 0x156   :  { %9783 = vst [vmem:[#allocation79_spill] sm:$0xff] %v8236_v60  ;;  %9784 = vst [vmem:[#allocation80_spill] sm:$0xff] %v8238_v35  ;;  %6421 = vmatprep.mubr.f32.mxu0 %v7977_v33  ;;  %v9791_v60 = vld [vmem:[#allocation7_spill] sm:$0xff]  ;;  %v9796_v33 = vand.u32 4294901760, %v7988_v21 }
 0x157   :  { %v8242_v29 = vpop.f32.mrf.mxu0  ;;  %v8244_v43 = vpop.f32.mrf.mxu1  ;;  %6469 = vmatmul.mubr.f32.gmra.mxu1 %v9787_v34 }
 0x158   :  { %9785 = vst [vmem:[#allocation81_spill] sm:$0xff] %v8242_v29  ;;  %9786 = vst [vmem:[#allocation82_spill] sm:$0xff] %v8244_v43  ;;  %6471 = vmatprep.mubr.f32.mxu1 %v9789_v7  ;;  %v901_v29 = vadd.f32 %v8043_v23, %v9791_v60  ;;  %v9793_v43 = vld [vmem:[#allocation47_spill] sm:$0xff]  ;;  %v9798_v23 = vld [vmem:[#allocation16_spill] sm:$0xff]  ;;  %v6766_v60 = vmov 0  }
 0x159   :  { %v8252_v36 = vpop.f32.mrf.mxu0  ;;  %v8254_v35 = vpop.f32.mrf.mxu1  ;;  %6422 = vmatmul.mubr.f32.gmra.mxu0 %v7988_v21  ;;  %v922_v30 = vadd.f32 %v8053_v26, %v9793_v43  ;;  %6635 = vset.pattern.permute.xlu0 %v6766_v60  ;;  %v9799_v43 = vld [vmem:[#allocation10_spill] sm:$0xff]  ;;  %v9800_v21 = vld [vmem:[#allocation19_spill] sm:$0xff] }
 0x15a   :  { %9790 = vst [vmem:[#allocation40_spill] sm:$0xff] %v8254_v35  ;;  %6476 = vmatprep.mubr.f32.mxu0 %v9792_v55  ;;  %v1193_v26 = vadd.f32 %v8055_v31, %v901_v29  ;;  %v3915_v31 = vld [vmem:[%s9333_s4] sm:$0xff]  ;;  %v9802_v29 = vld [vmem:[#allocation12_spill] sm:$0xff]  ;;  %6636 = vset.pattern.permute.xlu1 %v6766_v60 }
 0x15b   :  { %v8262_v34 = vpop.f32.mrf.mxu0  ;;  %v8264_v17 = vpop.f32.mrf.mxu1  ;;  %6472 = vmatmul.mubr.f32.gmra.mxu1 %v9796_v33  ;;  %v1217_v32 = vadd.f32 %v8062_v9, %v922_v30  ;;  %v9801_v33 = vld [vmem:[#allocation56_spill] sm:$0xff]  ;;  %v9803_v9 = vld [vmem:[#allocation14_spill] sm:$0xff]  ;;  %3921 = vperm.xlu0 %6635, %v3915_v31  }
 0x15c   :  { %9794 = vst [vmem:[#allocation7_spill] sm:$0xff] %v8262_v34  ;;  %9795 = vst [vmem:[#allocation13_spill] sm:$0xff] %v8264_v17  ;;  %6526 = vmatprep.mubr.f32.mxu1 %v9792_v55  ;;  %v915_v34 = vadd.f32 %v8060_v27, %v9799_v43  ;;  %v936_v27 = vadd.f32 %v8068_v56, %v9802_v29  ;;  %v929_v30 = vadd.f32 %v8074_v5, %v9803_v9  ;;  %v9806_v5 = vld [vmem:[#allocation18_spill] sm:$0xff]  ;;  %v3916_v29 = vld [vmem:[%s9333_s4 + $0x8] sm:$0xff] }
 0x15d   :  { %v8270_v7 = vpop.f32.mrf.mxu1  ;;  %v6176_v35 = vpop.f32.mrf.mxu0  ;;  %6477 = vmatmul.mubr.f32.vlgmr.msra.gmra.mxu0 %v9798_v23  ;;  %v9808_v60 = vld [vmem:[#allocation20_spill] sm:$0xff] }
 0x15e   :  { %9797 = vst [vmem:[#allocation47_spill] sm:$0xff] %v8270_v7  ;;  %v1524_v17 = vadd.f32 %v6176_v35, %v1201_v59  ;;  %6575 = vmatpush3.msra.mxu0 %v7394_v54  ;;  %6479 = vmatprep.mubr.f32.mxu0 %v9800_v21  ;;  %v9804_v7 = vld [vmem:[#allocation21_spill] sm:$0xff]  ;;  %v1209_v56 = vadd.f32 %v8070_v28, %v915_v34 }
 0x15f   :  { %v1517_v55 = vpop.f32.mrf.mxu0  ;;  %v6228_v40 = vpop.f32.mrf.mxu1  ;;  %6527 = vmatmul.mubr.f32.vlgmr.msra.gmra.mxu1 %v9798_v23  ;;  %6590 = vmatprep.subr.mxu0 %v9801_v33  ;;  %v3917_v33 = vld [vmem:[%s9333_s4 + $0x10] sm:$0xff]  ;;  %v1233_v28 = vadd.f32 %v8076_v4, %v936_v27  ;;  %v943_v4 = vadd.f32 %v8088_v38, %v9808_v60 }
 0x160   :  { %v1518_v35 = vadd.f32 %v1517_v55, %v1193_v26  ;;  %v1783_v59 = vadd.f32 %v6228_v40, %v1524_v17  ;;  %6583 = vmatpush3.msra.mxu1 %v7423_v15  ;;  %6529 = vmatprep.mubr.f32.mxu1 %v9800_v21  ;;  %v9805_v26 = vld [vmem:[#allocation24_spill] sm:$0xff]  ;;  %v950_v21 = vadd.f32 %v8082_v44, %v9806_v5 }
 0x161   :  { %v6179_v43 = vpop.f32.mrf.mxu0  ;;  %v1776_v23 = vpop.f32.mrf.mxu1  ;;  %6480 = vmatmul.mubr.f32.gmra.mxu0 %v9804_v7  ;;  %6598 = vmatprep.subr.mxu1 %v7394_v54  ;;  %v1225_v44 = vadd.f32 %v8084_v2, %v929_v30  ;;  %v9811_v5 = vld [vmem:[#allocation28_spill] sm:$0xff] }
 0x162   :  { %1968 = vst.msk [vmem:[#allocation2 + $0x8] sm:$0xff] %vm1966_vm3, %v1783_v59  ;;  %v1536_v15 = vadd.f32 %v6179_v43, %v1217_v32  ;;  %v1777_v17 = vadd.f32 %v1776_v23, %v1518_v35  ;;  %6482 = vmatprep.mubr.f32.mxu0 %v9805_v26  ;;  %3931 = vperm.xlu1 %6636, %v3917_v33   ;;  %v9807_v59 = vld [vmem:[#allocation25_spill] sm:$0xff]  ;;  %v9809_v43 = vld [vmem:[#allocation27_spill] sm:$0xff]  ;;  %v9810_v23 = vld [vmem:[#allocation26_spill] sm:$0xff] }
 0x163   :  { %v1529_v55 = vpop.f32.mrf.mxu0  ;;  %v6231_v40 = vpop.f32.mrf.mxu1  ;;  %6530 = vmatmul.mubr.f32.gmra.mxu1 %v9804_v7  ;;  %v3918_v7 = vld [vmem:[%s9333_s4 + $0x18] sm:$0xff]  ;;  %3926 = vperm.xlu0 %6635, %v3916_v29   ;;  %v1249_v2 = vadd.f32 %v8090_v14, %v950_v21  ;;  %v1241_v14 = vadd.f32 %v8098_v16, %v943_v4  ;;  %v9812_v21 = vld [vmem:[#allocation32_spill] sm:$0xff]  ;;  %v9813_v29 = vld [vmem:[#allocation29_spill] sm:$0xff] }
 0x164   :  { %1967 = vst.msk [vmem:[#allocation2] sm:$0xff] %vm1966_vm3, %v1777_v17  ;;  %v1530_v34 = vadd.f32 %v1529_v55, %v1209_v56  ;;  %v1795_v32 = vadd.f32 %v6231_v40, %v1536_v15  ;;  %6532 = vmatprep.mubr.f32.mxu1 %v9805_v26  ;;  %v964_v56 = vadd.f32 %v8096_v11, %v9810_v23  ;;  %v9816_v4 = vld [vmem:[#allocation43_spill] sm:$0xff] }
 0x165   :  { %v6182_v31 = vpop.f32.mrf.mxu0  ;;  %v1788_v35 = vpop.f32.mrf.mxu1  ;;  %6483 = vmatmul.mubr.f32.gmra.mxu0 %v9807_v59  ;;  %v957_v55 = vadd.f32 %v8102_v0, %v9812_v21 }
 0x166   :  { %1970 = vst.msk [vmem:[#allocation2 + $0x18] sm:$0xff] %vm1966_vm3, %v1795_v32  ;;  %v1548_v27 = vadd.f32 %v6182_v31, %v1233_v28  ;;  %v1789_v9 = vadd.f32 %v1788_v35, %v1530_v34  ;;  %6485 = vmatprep.mubr.f32.mxu0 %v9809_v43  ;;  %3936 = vperm.xlu1 %6636, %v3918_v7   ;;  %v9815_v7 = vld [vmem:[#allocation31_spill] sm:$0xff] }
 0x167   :  { %v1541_v33 = vpop.f32.mrf.mxu0  ;;  %v6234_v30 = vpop.f32.mrf.mxu1  ;;  %6533 = vmatmul.mubr.f32.gmra.mxu1 %v9807_v59  ;;  %v1265_v32 = vadd.f32 %v8104_v47, %v964_v56  ;;  %v1257_v60 = vadd.f32 %v8112_v49, %v957_v55 }
 0x168   :  { %1969 = vst.msk [vmem:[#allocation2 + $0x10] sm:$0xff] %vm1966_vm3, %v1789_v9  ;;  %v1542_v15 = vadd.f32 %v1541_v33, %v1225_v44  ;;  %v1807_v38 = vadd.f32 %v6234_v30, %v1548_v27  ;;  %6535 = vmatprep.mubr.f32.mxu1 %v9809_v43  ;;  %v9814_v44 = vld [vmem:[#allocation35_spill] sm:$0xff]  ;;  %v971_v27 = vadd.f32 %v8116_v50, %v9816_v4  ;;  %v9818_v30 = vld [vmem:[#allocation45_spill] sm:$0xff] }
 0x169   :  { %v6185_v17 = vpop.f32.mrf.mxu0  ;;  %v1800_v26 = vpop.f32.mrf.mxu1  ;;  %6486 = vmatmul.mubr.f32.gmra.mxu0 %v9811_v5  ;;  %v978_v31 = vadd.f32 %v8110_v62, %v9814_v44  ;;  %v9817_v62 = vld [vmem:[#allocation34_spill] sm:$0xff]  ;;  %v992_v23 = vadd.f32 %v8124_v46, %v9818_v30 }
 0x16a   :  { %1972 = vst.msk [vmem:[#allocation2 + $0x28] sm:$0xff] %vm1966_vm3, %v1807_v38  ;;  %v1560_v40 = vadd.f32 %v6185_v17, %v1249_v2  ;;  %v1801_v11 = vadd.f32 %v1800_v26, %v1542_v15  ;;  %6488 = vmatprep.mubr.f32.mxu0 %v9813_v29  ;;  %v9819_v38 = vld [vmem:[#allocation36_spill] sm:$0xff]  ;;  %v1273_v17 = vadd.f32 %v8126_v63, %v971_v27  ;;  %v9820_v26 = vld [vmem:[#allocation46_spill] sm:$0xff] }
 0x16b   :  { %v1553_v28 = vpop.f32.mrf.mxu0  ;;  %v6237_v34 = vpop.f32.mrf.mxu1  ;;  %6536 = vmatmul.mubr.f32.gmra.mxu1 %v9811_v5  ;;  %v1281_v33 = vadd.f32 %v8118_v13, %v978_v31  ;;  %v985_v5 = vadd.f32 %v8130_v25, %v9820_v26  ;;  %v9821_v46 = vld [vmem:[#allocation38_spill] sm:$0xff]  ;;  %v9824_v31 = vld [vmem:[#allocation51_spill] sm:$0xff] }
 0x16c   :  { %1971 = vst.msk [vmem:[#allocation2 + $0x20] sm:$0xff] %vm1966_vm3, %v1801_v11  ;;  %v1554_v16 = vadd.f32 %v1553_v28, %v1241_v14  ;;  %v1819_v35 = vadd.f32 %v6237_v34, %v1560_v40  ;;  %6538 = vmatprep.mubr.f32.mxu1 %v9813_v29  ;;  %v1297_v40 = vadd.f32 %v8132_v1, %v992_v23  ;;  %v9822_v11 = vld [vmem:[#allocation50_spill] sm:$0xff] }
 0x16d   :  { %v6188_v0 = vpop.f32.mrf.mxu0  ;;  %v1812_v59 = vpop.f32.mrf.mxu1  ;;  %6489 = vmatmul.mubr.f32.gmra.mxu0 %v9815_v7  ;;  %v1006_v29 = vadd.f32 %v8138_v37, %v9822_v11  ;;  %v1289_v44 = vadd.f32 %v8140_v52, %v985_v5  ;;  %v9825_v37 = vld [vmem:[#allocation44_spill] sm:$0xff]  ;;  %v1034_v23 = vadd.f32 %v8166_v8, %v7960_v10  ;;  %v9830_v10 = vld [vmem:[#allocation15_spill] sm:$0xff] }
 0x16e   :  { %1974 = vst.msk [vmem:[#allocation2 + $0x38] sm:$0xff] %vm1966_vm3, %v1819_v35  ;;  %v1572_v47 = vadd.f32 %v6188_v0, %v1265_v32  ;;  %v1813_v9 = vadd.f32 %v1812_v59, %v1554_v16  ;;  %6491 = vmatprep.mubr.f32.mxu0 %v9817_v62  ;;  %v9823_v32 = vld [vmem:[#allocation41_spill] sm:$0xff]  ;;  %v999_v16 = vadd.f32 %v8144_v22, %v9824_v31  ;;  %v3911_v8 = vld [vmem:[%s9334_s5] sm:$0xff] }
 0x16f   :  { %v1565_v43 = vpop.f32.mrf.mxu0  ;;  %v6240_v2 = vpop.f32.mrf.mxu1  ;;  %6539 = vmatmul.mubr.f32.gmra.mxu1 %v9815_v7  ;;  %v1313_v7 = vadd.f32 %v8146_v12, %v1006_v29  ;;  %v9833_v11 = vld [vmem:[#allocation71_spill] sm:$0xff] }
 0x170   :  { %1973 = vst.msk [vmem:[#allocation2 + $0x30] sm:$0xff] %vm1966_vm3, %v1813_v9  ;;  %v1566_v49 = vadd.f32 %v1565_v43, %v1257_v60  ;;  %v1831_v56 = vadd.f32 %v6240_v2, %v1572_v47  ;;  %6541 = vmatprep.mubr.f32.mxu1 %v9817_v62  ;;  %v1020_v60 = vadd.f32 %v8152_v41, %v7936_v3  ;;  %v9826_v47 = vld [vmem:[#allocation8_spill] sm:$0xff]  ;;  %v9827_v62 = vld [vmem:[#allocation54_spill] sm:$0xff]  ;;  %v9828_v3 = vld [vmem:[#allocation9_spill] sm:$0xff] }
 0x171   :  { %v6191_v50 = vpop.f32.mrf.mxu0  ;;  %v1824_v15 = vpop.f32.mrf.mxu1  ;;  %6492 = vmatmul.mubr.f32.gmra.mxu0 %v9819_v38  ;;  %v1305_v9 = vadd.f32 %v8154_v53, %v999_v16  ;;  %v1013_v43 = vadd.f32 %v8158_v45, %v9827_v62  ;;  %v9836_v16 = vld [vmem:[#allocation39_spill] sm:$0xff] }
 0x172   :  { %1976 = vst.msk [vmem:[#allocation2 + $0x48] sm:$0xff] %vm1966_vm3, %v1831_v56  ;;  %v1584_v13 = vadd.f32 %v6191_v50, %v1281_v33  ;;  %v1825_v14 = vadd.f32 %v1824_v15, %v1566_v49  ;;  %6494 = vmatprep.mubr.f32.mxu0 %v9821_v46  ;;  %v1329_v30 = vadd.f32 %v8160_v61, %v1020_v60  ;;  %v9829_v50 = vld [vmem:[#allocation11_spill] sm:$0xff] }
 0x173   :  { %v1577_v21 = vpop.f32.mrf.mxu0  ;;  %v6243_v55 = vpop.f32.mrf.mxu1  ;;  %6542 = vmatmul.mubr.f32.gmra.mxu1 %v9819_v38  ;;  %v1321_v15 = vadd.f32 %v8168_v18, %v1013_v43  ;;  %v1027_v38 = vadd.f32 %v8172_v6, %v7970_v57  ;;  %v9831_v18 = vld [vmem:[#allocation59_spill] sm:$0xff] }
 0x174   :  { %1975 = vst.msk [vmem:[#allocation2 + $0x40] sm:$0xff] %vm1966_vm3, %v1825_v14  ;;  %v1578_v63 = vadd.f32 %v1577_v21, %v1273_v17  ;;  %v1843_v28 = vadd.f32 %v6243_v55, %v1584_v13  ;;  %6544 = vmatprep.mubr.f32.mxu1 %v9821_v46  ;;  %v1345_v13 = vadd.f32 %v8174_v24, %v1034_v23  ;;  %v9832_v55 = vld [vmem:[#allocation17_spill] sm:$0xff]  ;;  %v9838_v60 = vld [vmem:[#allocation23_spill] sm:$0xff] }
 0x175   :  { %v6194_v25 = vpop.f32.mrf.mxu0  ;;  %v1836_v34 = vpop.f32.mrf.mxu1  ;;  %6495 = vmatmul.mubr.f32.gmra.mxu0 %v9823_v32  ;;  %v1048_v14 = vadd.f32 %v8180_v19, %v9831_v18  ;;  %v1337_v29 = vadd.f32 %v9833_v11, %v1027_v38  ;;  %v9843_v23 = vld [vmem:[#allocation63_spill] sm:$0xff]  ;;  %v9847_v18 = vld [vmem:[#allocation37_spill] sm:$0xff] }
 0x176   :  { %1978 = vst.msk [vmem:[#allocation2 + $0x58] sm:$0xff] %vm1966_vm3, %v1843_v28  ;;  %v1596_v1 = vadd.f32 %v6194_v25, %v1297_v40  ;;  %v1837_v35 = vadd.f32 %v1836_v34, %v1578_v63  ;;  %6497 = vmatprep.mubr.f32.mxu0 %v9825_v37  ;;  %v3940_v40 = vsel %vm1999_vm2, %v3911_v8, 0  ;;  %v9834_v63 = vld [vmem:[#allocation60_spill] sm:$0xff]  ;;  %v9835_v25 = vld [vmem:[#allocation22_spill] sm:$0xff] }
 0x177   :  { %v1589_v0 = vpop.f32.mrf.mxu0  ;;  %v6246_v59 = vpop.f32.mrf.mxu1  ;;  %6545 = vmatmul.mubr.f32.gmra.mxu1 %v9823_v32  ;;  %v1041_v24 = vadd.f32 %v8186_v51, %v9834_v63  ;;  %v3912_v34 = vld [vmem:[%s9334_s5 + $0x8] sm:$0xff]  ;;  %v3913_v32 = vld [vmem:[%s9334_s5 + $0x10] sm:$0xff]  ;;  %v1361_v51 = vadd.f32 %v9836_v16, %v1048_v14  ;;  %v9850_v63 = vld [vmem:[#allocation42_spill] sm:$0xff] }
 0x178   :  { %1977 = vst.msk [vmem:[#allocation2 + $0x50] sm:$0xff] %vm1966_vm3, %v1837_v35  ;;  %v1590_v52 = vadd.f32 %v1589_v0, %v1289_v44  ;;  %v1855_v4 = vadd.f32 %v6246_v59, %v1596_v1  ;;  %6547 = vmatprep.mubr.f32.mxu1 %v9825_v37  ;;  %v9837_v1 = vld [vmem:[#allocation61_spill] sm:$0xff]  ;;  %v9846_v8 = vld [vmem:[#allocation64_spill] sm:$0xff] }
 0x179   :  { %v6197_v22 = vpop.f32.mrf.mxu0  ;;  %v1848_v27 = vpop.f32.mrf.mxu1  ;;  %6498 = vmatmul.mubr.f32.gmra.mxu0 %v9826_v47  ;;  %v1062_v35 = vadd.f32 %v8194_v58, %v9837_v1  ;;  %v9854_v1 = vld [vmem:[#allocation48_spill] sm:$0xff] }
 0x17a   :  { %1980 = vst.msk [vmem:[#allocation2 + $0x68] sm:$0xff] %vm1966_vm3, %v1855_v4  ;;  %v1608_v12 = vadd.f32 %v6197_v22, %v1313_v7  ;;  %v1849_v2 = vadd.f32 %v1848_v27, %v1590_v52  ;;  %6500 = vmatprep.mubr.f32.mxu0 %v9828_v3  ;;  %v8417_v52 = vand.u32 4294901760, %v3940_v40  ;;  %v3943_v4 = vsel %vm1999_vm2, %v3912_v34, 0  ;;  %v9839_v27 = vld [vmem:[#allocation72_spill] sm:$0xff] }
 0x17b   :  { %v1601_v41 = vpop.f32.mrf.mxu0  ;;  %v6249_v33 = vpop.f32.mrf.mxu1  ;;  %6548 = vmatmul.mubr.f32.gmra.mxu1 %v9826_v47  ;;  %v3946_v22 = vsel %vm1999_vm2, %v3913_v32, 0  ;;  %v1353_v47 = vadd.f32 %v9839_v27, %v1041_v24  ;;  %v8439_v38 = vand.u32 4294901760, %v3943_v4  ;;  %v9852_v32 = vld [vmem:[#allocation66_spill] sm:$0xff] }
 0x17c   :  { %1979 = vst.msk [vmem:[#allocation2 + $0x60] sm:$0xff] %vm1966_vm3, %v1849_v2  ;;  %v1602_v53 = vadd.f32 %v1601_v41, %v1305_v9  ;;  %v1867_v49 = vadd.f32 %v6249_v33, %v1608_v12  ;;  %6550 = vmatprep.mubr.f32.mxu1 %v9828_v3  ;;  %v9840_v9 = vld [vmem:[#allocation62_spill] sm:$0xff]  ;;  %v9842_v33 = vld [vmem:[#allocation73_spill] sm:$0xff] }
 0x17d   :  { %v6200_v45 = vpop.f32.mrf.mxu0  ;;  %v1860_v56 = vpop.f32.mrf.mxu1  ;;  %6501 = vmatmul.mubr.f32.gmra.mxu0 %v9829_v50  ;;  %v1055_v58 = vadd.f32 %v8200_v20, %v9840_v9  ;;  %v9841_v12 = vld [vmem:[#allocation30_spill] sm:$0xff] }
 0x17e   :  { %1982 = vst.msk [vmem:[#allocation2 + $0x78] sm:$0xff] %vm1966_vm3, %v1867_v49  ;;  %v1620_v61 = vadd.f32 %v6200_v45, %v1329_v30  ;;  %v1861_v17 = vadd.f32 %v1860_v56, %v1602_v53  ;;  %6503 = vmatprep.mubr.f32.mxu0 %v9830_v10  ;;  %v3914_v2 = vld [vmem:[%s9334_s5 + $0x18] sm:$0xff]  ;;  %v1377_v30 = vadd.f32 %v9842_v33, %v1062_v35  ;;  %v9860_v33 = vld [vmem:[#allocation68_spill] sm:$0xff] }
 0x17f   :  { %v1613_v26 = vpop.f32.mrf.mxu0  ;;  %v6252_v5 = vpop.f32.mrf.mxu1  ;;  %6551 = vmatmul.mubr.f32.gmra.mxu1 %v9829_v50  ;;  %v1076_v53 = vadd.f32 %v8208_v42, %v9843_v23  ;;  %v9844_v50 = vld [vmem:[#allocation33_spill] sm:$0xff]  ;;  %v9845_v42 = vld [vmem:[#allocation74_spill] sm:$0xff] }
 0x180   :  { %1981 = vst.msk [vmem:[#allocation2 + $0x70] sm:$0xff] %vm1966_vm3, %v1861_v17  ;;  %v1614_v57 = vadd.f32 %v1613_v26, %v1321_v15  ;;  %v1879_v6 = vadd.f32 %v6252_v5, %v1620_v61  ;;  %6553 = vmatprep.mubr.f32.mxu1 %v9830_v10  ;;  %v8437_v15 = vsub.f32 %v3940_v40, %v8417_v52  ;;  %v8441_v61 = vand.u32 4294901760, %v3946_v22 }
 0x181   :  { %v6203_v46 = vpop.f32.mrf.mxu0  ;;  %v1872_v21 = vpop.f32.mrf.mxu1  ;;  %6504 = vmatmul.mubr.f32.gmra.mxu0 %v9832_v55  ;;  %v3949_v17 = vsel %vm1999_vm2, %v3914_v2, 0  ;;  %v1369_v10 = vadd.f32 %v9845_v42, %v1055_v58  ;;  %v1069_v26 = vadd.f32 %v8214_v39, %v9846_v8  ;;  %v9858_v58 = vld [vmem:[#allocation49_spill] sm:$0xff] }
 0x182   :  { %1984 = vst.msk [vmem:[#allocation2 + $0x88] sm:$0xff] %vm1966_vm3, %v1879_v6  ;;  %v1632_v19 = vadd.f32 %v6203_v46, %v1345_v13  ;;  %v1873_v28 = vadd.f32 %v1872_v21, %v1614_v57  ;;  %6506 = vmatprep.mubr.f32.mxu0 %v9835_v25  ;;  %v9848_v6 = vld [vmem:[#allocation75_spill] sm:$0xff]  ;;  %v9849_v21 = vld [vmem:[#allocation65_spill] sm:$0xff]  ;;  %v4019_v24 = vand.u32 4294901760, %v8437_v15 }
 0x183   :  { %v1625_v44 = vpop.f32.mrf.mxu0  ;;  %v6255_v31 = vpop.f32.mrf.mxu1  ;;  %6554 = vmatmul.mubr.f32.gmra.mxu1 %v9832_v55  ;;  %v1393_v46 = vadd.f32 %v9848_v6, %v1076_v53  ;;  %v1090_v55 = vadd.f32 %v8222_v48, %v9849_v21  ;;  %v9851_v48 = vld [vmem:[#allocation76_spill] sm:$0xff] }
 0x184   :  { %1983 = vst.msk [vmem:[#allocation2 + $0x80] sm:$0xff] %vm1966_vm3, %v1873_v28  ;;  %v1626_v37 = vadd.f32 %v1625_v44, %v1337_v29  ;;  %v1891_v0 = vadd.f32 %v6255_v31, %v1632_v19  ;;  %6556 = vmatprep.mubr.f32.mxu1 %v9835_v25  ;;  %v8458_v19 = vsub.f32 %v3943_v4, %v8439_v38  ;;  %v8463_v25 = vand.u32 4294901760, %v3949_v17  ;;  %v9853_v44 = vld [vmem:[#allocation77_spill] sm:$0xff] }
 0x185   :  { %v6206_v59 = vpop.f32.mrf.mxu0  ;;  %v1884_v7 = vpop.f32.mrf.mxu1  ;;  %6507 = vmatmul.mubr.f32.gmra.mxu0 %v9838_v60  ;;  %v8461_v28 = vsub.f32 %v3946_v22, %v8441_v61  ;;  %v1385_v34 = vadd.f32 %v9851_v48, %v1069_v26  ;;  %v1083_v31 = vadd.f32 %v9853_v44, %v9852_v32  ;;  %v9870_v32 = vld [vmem:[#allocation13_spill] sm:$0xff] }
 0x186   :  { %1986 = vst.msk [vmem:[#allocation2 + $0x98] sm:$0xff] %vm1966_vm3, %v1891_v0  ;;  %v1644_v62 = vadd.f32 %v6206_v59, %v1361_v51  ;;  %v1885_v43 = vadd.f32 %v1884_v7, %v1626_v37  ;;  %6509 = vmatprep.mubr.f32.mxu0 %v9841_v12  ;;  %v9855_v0 = vld [vmem:[#allocation78_spill] sm:$0xff]  ;;  %v9856_v7 = vld [vmem:[#allocation67_spill] sm:$0xff]  ;;  %v8483_v2 = vsub.f32 %v3949_v17, %v8463_v25 }
 0x187   :  { %v1637_v3 = vpop.f32.mrf.mxu0  ;;  %v6258_v41 = vpop.f32.mrf.mxu1  ;;  %6557 = vmatmul.mubr.f32.gmra.mxu1 %v9838_v60  ;;  %v1409_v59 = vadd.f32 %v9855_v0, %v1090_v55  ;;  %v9857_v60 = vld [vmem:[#allocation79_spill] sm:$0xff]  ;;  %v9867_v55 = vld [vmem:[#allocation70_spill] sm:$0xff] }
 0x188   :  { %1985 = vst.msk [vmem:[#allocation2 + $0x90] sm:$0xff] %vm1966_vm3, %v1885_v43  ;;  %v1638_v20 = vadd.f32 %v1637_v3, %v1353_v47  ;;  %v1903_v49 = vadd.f32 %v6258_v41, %v1644_v62  ;;  %6559 = vmatprep.mubr.f32.mxu1 %v9841_v12  ;;  %v1104_v4 = vadd.f32 %v9857_v60, %v9856_v7  ;;  %v4029_v43 = vand.u32 4294901760, %v8458_v19  ;;  %v9859_v3 = vld [vmem:[#allocation80_spill] sm:$0xff] }
 0x189   :  { %v6209_v45 = vpop.f32.mrf.mxu0  ;;  %v1896_v56 = vpop.f32.mrf.mxu1  ;;  %6510 = vmatmul.mubr.f32.gmra.mxu0 %v9844_v50  ;;  %v4020_v62 = vsub.f32 %v8437_v15, %v4019_v24  ;;  %v4039_v12 = vand.u32 4294901760, %v8461_v28  ;;  %v1401_v41 = vadd.f32 %v9859_v3, %v1083_v31 }
 0x18a   :  { %1988 = vst.msk [vmem:[#allocation2 + $0xa8] sm:$0xff] %vm1966_vm3, %v1903_v49  ;;  %v1656_v5 = vadd.f32 %v6209_v45, %v1377_v30  ;;  %v1897_v13 = vadd.f32 %v1896_v56, %v1638_v20  ;;  %6512 = vmatprep.mubr.f32.mxu0 %v9847_v18  ;;  %v9861_v30 = vld [vmem:[#allocation81_spill] sm:$0xff]  ;;  %v9862_v49 = vld [vmem:[#allocation52_spill] sm:$0xff] }
 0x18b   :  { %v1649_v14 = vpop.f32.mrf.mxu0  ;;  %v6261_v57 = vpop.f32.mrf.mxu1  ;;  %6560 = vmatmul.mubr.f32.gmra.mxu1 %v9844_v50  ;;  %v1097_v23 = vadd.f32 %v9861_v30, %v9860_v33  ;;  %v9863_v50 = vld [vmem:[#allocation82_spill] sm:$0xff]  ;;  %v4040_v6 = vsub.f32 %v8461_v28, %v4039_v12  ;;  %v9873_v30 = vld [vmem:[#allocation56_spill] sm:$0xff] }
 0x18c   :  { %1987 = vst.msk [vmem:[#allocation2 + $0xa0] sm:$0xff] %vm1966_vm3, %v1897_v13  ;;  %v1650_v40 = vadd.f32 %v1649_v14, %v1369_v10  ;;  %v1915_v11 = vadd.f32 %v6261_v57, %v1656_v5  ;;  %6562 = vmatprep.mubr.f32.mxu1 %v9847_v18  ;;  %v1425_v42 = vadd.f32 %v9863_v50, %v1104_v4  ;;  %v9864_v10 = vld [vmem:[#allocation69_spill] sm:$0xff]  ;;  %v4021_v14 = vand.u32 4294901760, %v4020_v62 }
 0x18d   :  { %v6212_v39 = vpop.f32.mrf.mxu0  ;;  %v1908_v29 = vpop.f32.mrf.mxu1  ;;  %6513 = vmatmul.mubr.f32.gmra.mxu0 %v9850_v63  ;;  %v1118_v17 = vadd.f32 %v8252_v36, %v9864_v10  ;;  %v9865_v18 = vld [vmem:[#allocation53_spill] sm:$0xff]  ;;  %v4030_v57 = vsub.f32 %v8458_v19, %v4029_v43  ;;  %v4049_v36 = vand.u32 4294901760, %v8483_v2 }
 0x18e   :  { %1990 = vst.msk [vmem:[#allocation2 + $0xb8] sm:$0xff] %vm1966_vm3, %v1915_v11  ;;  %v1668_v16 = vadd.f32 %v6212_v39, %v1393_v46  ;;  %v1909_v51 = vadd.f32 %v1908_v29, %v1650_v40  ;;  %6515 = vmatprep.mubr.f32.mxu0 %v9854_v1  ;;  %v9866_v46 = vld [vmem:[#allocation40_spill] sm:$0xff]  ;;  %v9868_v40 = vld [vmem:[#allocation7_spill] sm:$0xff] }
 0x18f   :  { %v1661_v35 = vpop.f32.mrf.mxu0  ;;  %v6264_v37 = vpop.f32.mrf.mxu1  ;;  %6563 = vmatmul.mubr.f32.gmra.mxu1 %v9850_v63  ;;  %v1417_v21 = vadd.f32 %v9866_v46, %v1097_v23  ;;  %v1111_v11 = vadd.f32 %v9868_v40, %v9867_v55  ;;  %v9869_v63 = vld [vmem:[#allocation55_spill] sm:$0xff]  ;;  %v1441_v44 = vadd.f32 %v9870_v32, %v1118_v17  ;;  %v4050_v0 = vsub.f32 %v8483_v2, %v4049_v36 }
 0x190   :  { %1989 = vst.msk [vmem:[#allocation2 + $0xb0] sm:$0xff] %vm1966_vm3, %v1909_v51  ;;  %v1662_v22 = vadd.f32 %v1661_v35, %v1385_v34  ;;  %v1927_v27 = vadd.f32 %v6264_v37, %v1668_v16  ;;  %6565 = vmatprep.mubr.f32.mxu1 %v9854_v1  ;;  %v9871_v35 = vld [vmem:[#allocation58_spill] sm:$0xff]  ;;  %v4031_v37 = vand.u32 4294901760, %v4030_v57 }
 0x191   :  { %v6215_v47 = vpop.f32.mrf.mxu0  ;;  %v1920_v9 = vpop.f32.mrf.mxu1  ;;  %6516 = vmatmul.mubr.f32.gmra.mxu0 %v9858_v58 }
 0x192   :  { %1992 = vst.msk [vmem:[#allocation2 + $0xc8] sm:$0xff] %vm1966_vm3, %v1927_v27  ;;  %v1680_v53 = vadd.f32 %v6215_v47, %v1409_v59  ;;  %v1921_v20 = vadd.f32 %v1920_v9, %v1662_v22  ;;  %6518 = vmatprep.mubr.f32.mxu0 %v9862_v49  ;;  %v9872_v59 = vld [vmem:[#allocation47_spill] sm:$0xff]  ;;  %v4041_v22 = vand.u32 4294901760, %v4040_v6 }
 0x193   :  { %v1673_v45 = vpop.f32.mrf.mxu0  ;;  %v6267_v56 = vpop.f32.mrf.mxu1  ;;  %6566 = vmatmul.mubr.f32.gmra.mxu1 %v9858_v58  ;;  %v1433_v7 = vadd.f32 %v9872_v59, %v1111_v11 }
 0x194   :  { %1991 = vst.msk [vmem:[#allocation2 + $0xc0] sm:$0xff] %vm1966_vm3, %v1921_v20  ;;  %v1674_v8 = vadd.f32 %v1673_v45, %v1401_v41  ;;  %v1939_v26 = vadd.f32 %v6267_v56, %v1680_v53  ;;  %6568 = vmatprep.mubr.f32.mxu1 %v9862_v49  ;;  %v4051_v41 = vand.u32 4294901760, %v4050_v0  ;;  %v9874_v20 = vld [vmem:[#allocation57_spill] sm:$0xff] }
 0x195   :  { %v6218_v5 = vpop.f32.mrf.mxu0  ;;  %v1932_v13 = vpop.f32.mrf.mxu1  ;;  %6519 = vmatmul.mubr.f32.gmra.mxu0 %v9865_v18 }
 0x196   :  { %1994 = vst.msk [vmem:[#allocation2 + $0xd8] sm:$0xff] %vm1966_vm3, %v1939_v26  ;;  %v1692_v39 = vadd.f32 %v6218_v5, %v1425_v42  ;;  %v1933_v29 = vadd.f32 %v1932_v13, %v1674_v8  ;;  %6521 = vmatprep.mubr.f32.mxu0 %v9869_v63 }
 0x197   :  { %v1685_v48 = vpop.f32.mrf.mxu0  ;;  %v6270_v34 = vpop.f32.mrf.mxu1  ;;  %6569 = vmatmul.mubr.f32.gmra.mxu1 %v9865_v18 }
 0x198   :  { %1993 = vst.msk [vmem:[#allocation2 + $0xd0] sm:$0xff] %vm1966_vm3, %v1933_v29  ;;  %v1686_v31 = vadd.f32 %v1685_v48, %v1417_v21  ;;  %v1951_v16 = vadd.f32 %v6270_v34, %v1692_v39  ;;  %6571 = vmatprep.mubr.f32.mxu1 %v9869_v63 }
 0x199   :  { %v6221_v51 = vpop.f32.mrf.mxu0  ;;  %v1944_v1 = vpop.f32.mrf.mxu1  ;;  %6522 = vmatmul.mubr.f32.gmra.mxu0 %v9871_v35 }
 0x19a   :  { %1996 = vst.msk [vmem:[#allocation2 + $0xe8] sm:$0xff] %vm1966_vm3, %v1951_v16  ;;  %v1704_v60 = vadd.f32 %v6221_v51, %v1441_v44  ;;  %v1945_v4 = vadd.f32 %v1944_v1, %v1686_v31  ;;  %6576 = vmatprep.mubr.f32.mxu0 %v4021_v14 }
 0x19b   :  { %v1697_v27 = vpop.f32.mrf.mxu0  ;;  %v6273_v47 = vpop.f32.mrf.mxu1  ;;  %6572 = vmatmul.mubr.f32.gmra.mxu1 %v9871_v35 }
 0x19c   :  { %1995 = vst.msk [vmem:[#allocation2 + $0xe0] sm:$0xff] %vm1966_vm3, %v1945_v4  ;;  %v1698_v9 = vadd.f32 %v1697_v27, %v1433_v7  ;;  %v1963_v58 = vadd.f32 %v6273_v47, %v1704_v60  ;;  %6584 = vmatprep.mubr.f32.mxu1 %v8417_v52 }
 0x19d   :  { %v1956_v62 = vpop.f32.mrf.mxu1  ;;  %v6278_v3 = vpop.f32.mrf.mxu0  ;;  %6577 = vmatmul.mubr.f32.vlgmr.msra.gmra.mxu0 %v4031_v37 }
 0x19e   :  { %1998 = vst.msk [vmem:[#allocation2 + $0xf8] sm:$0xff] %vm1966_vm3, %v1963_v58  ;;  %v1957_v33 = vadd.f32 %v1956_v62, %v1698_v9  ;;  %6591 = vmatpush3.msra.mxu0 %v9873_v30  ;;  %6579 = vmatprep.mubr.f32.mxu0 %v4041_v22 }
 0x19f   :  { %v2140_v23 = vpop.f32.mrf.mxu0  ;;  %v6328_v53 = vpop.f32.mrf.mxu1  ;;  %6585 = vmatmul.mubr.f32.vlgmr.msra.gmra.mxu1 %v8439_v38  ;;  %6606 = vmatprep.subr.mxu0 %v9874_v20 }
 0x1a0   :  { %1997 = vst.msk [vmem:[#allocation2 + $0xf0] sm:$0xff] %vm1966_vm3, %v1957_v33  ;;  %v8527_v49 = vadd.f32 %v6328_v53, %v6278_v3  ;;  %6599 = vmatpush3.msra.mxu1 %v7394_v54  ;;  %6587 = vmatprep.mubr.f32.mxu1 %v8441_v61 }
 0x1a1   :  { %v6281_v45 = vpop.f32.mrf.mxu0  ;;  %v2526_v56 = vpop.f32.mrf.mxu1  ;;  %6580 = vmatmul.mubr.f32.gmra.mxu0 %v4051_v41  ;;  %6614 = vmatprep.subr.mxu1 %v7394_v54 }
 0x1a2   :  { %v8532_v50 = vadd.f32 %v2526_v56, %v2140_v23  ;;  %6592 = vmatprep.mubr.f32.mxu0 %v8437_v15 }
 0x1a3   :  { %v2160_v42 = vpop.f32.mrf.mxu0  ;;  %v6331_v10 = vpop.f32.mrf.mxu1  ;;  %6588 = vmatmul.mubr.f32.gmra.mxu1 %v8463_v25 }
 0x1a4   :  { %v8536_v17 = vadd.f32 %v6331_v10, %v6281_v45  ;;  %6600 = vmatprep.mubr.f32.mxu1 %v4019_v24 }
 0x1a5   :  { %v6284_v8 = vpop.f32.mrf.mxu0  ;;  %v2538_v26 = vpop.f32.mrf.mxu1  ;;  %6593 = vmatmul.mubr.f32.vlgmr.msra.gmra.mxu0 %v8458_v19 }
 0x1a6   :  { %v8541_v5 = vadd.f32 %v2538_v26, %v2160_v42  ;;  %6607 = vmatpush3.msra.mxu0 %v9874_v20  ;;  %6595 = vmatprep.mubr.f32.mxu0 %v8461_v28 }
 0x1a7   :  { %v2180_v13 = vpop.f32.mrf.mxu0  ;;  %v6334_v18 = vpop.f32.mrf.mxu1  ;;  %6601 = vmatmul.mubr.f32.vlgmr.msra.gmra.mxu1 %v4029_v43 }
 0x1a8   :  { %v8547_v14 = vadd.f32 %v6334_v18, %v6284_v8  ;;  %6615 = vmatpush3.msra.mxu1 %v7394_v54  ;;  %6603 = vmatprep.mubr.f32.mxu1 %v4039_v12 }
 0x1a9   :  { %v6287_v15 = vpop.f32.mrf.mxu0  ;;  %v2550_v24 = vpop.f32.mrf.mxu1  ;;  %6596 = vmatmul.mubr.f32.gmra.mxu0 %v8483_v2 }
 0x1aa   :  { %v8553_v57 = vadd.f32 %v2550_v24, %v2180_v13  ;;  %6608 = vmatprep.mubr.f32.mxu0 %v8417_v52 }
 0x1ab   :  { %v2200_v6 = vpop.f32.mrf.mxu0  ;;  %v6337_v46 = vpop.f32.mrf.mxu1  ;;  %6604 = vmatmul.mubr.f32.gmra.mxu1 %v4049_v36 }
 0x1ac   :  { %v8558_v19 = vadd.f32 %v6337_v46, %v6287_v15  ;;  %6616 = vmatprep.mubr.f32.mxu1 %v8417_v52 }
 0x1ad   :  { %v6290_v54 = vpop.f32.mrf.mxu0  ;;  %v2562_v28 = vpop.f32.mrf.mxu1  ;;  %6609 = vmatmul.mubr.f32.vlgmr.msra.gmra.mxu0 %v8439_v38 }
 0x1ae   :  { %v8562_v43 = vadd.f32 %v2562_v28, %v2200_v6  ;;  %6611 = vmatprep.mubr.f32.mxu0 %v8441_v61 }
 0x1af   :  { %v2220_v12 = vpop.f32.mrf.mxu0  ;;  %v6340_v21 = vpop.f32.mrf.mxu1  ;;  %6617 = vmatmul.mubr.f32.vlgmr.msra.gmra.mxu1 %v8439_v38 }
 0x1b0   :  { %v8566_v55 = vadd.f32 %v6340_v21, %v6290_v54  ;;  %6619 = vmatprep.mubr.f32.mxu1 %v8441_v61 }
 0x1b1   :  { %v6293_v2 = vpop.f32.mrf.mxu0  ;;  %v2574_v36 = vpop.f32.mrf.mxu1  ;;  %6612 = vmatmul.mubr.f32.gmra.mxu0 %v8463_v25 }
 0x1b2   :  { %v8570_v52 = vadd.f32 %v2574_v36, %v2220_v12 }
 0x1b3   :  { %v2240_v40 = vpop.f32.mrf.mxu0  ;;  %v6343_v11 = vpop.f32.mrf.mxu1  ;;  %6620 = vmatmul.mubr.f32.gmra.mxu1 %v8463_v25 }
 0x1b4   :  { %v8573_v39 = vadd.f32 %v6343_v11, %v6293_v2 }
 0x1b5   :  { %v6296_v29 = vpop.f32.mrf.mxu0  ;;  %v2586_v63 = vpop.f32.mrf.mxu1 }
 0x1b6   :  { %v8575_v48 = vadd.f32 %v2586_v63, %v2240_v40 }
 0x1b7   :  { %v2260_v38 = vpop.f32.mrf.mxu0  ;;  %v6346_v34 = vpop.f32.mrf.mxu1 }
 0x1b8   :  { %v8577_v32 = vadd.f32 %v6346_v34, %v6296_v29 }
 0x1b9   :  { %v6299_v61 = vpop.f32.mrf.mxu0  ;;  %v2598_v44 = vpop.f32.mrf.mxu1 }
 0x1ba   :  { %v8579_v31 = vadd.f32 %v2598_v44, %v2260_v38 }
 0x1bb   :  { %v2280_v16 = vpop.f32.mrf.mxu0  ;;  %v6349_v51 = vpop.f32.mrf.mxu1 }
 0x1bc   :  { %v8581_v1 = vadd.f32 %v6349_v51, %v6299_v61 }
 0x1bd   :  { %v6302_v35 = vpop.f32.mrf.mxu0  ;;  %v2610_v25 = vpop.f32.mrf.mxu1 }
 0x1be   :  { %v8583_v37 = vadd.f32 %v2610_v25, %v2280_v16 }
 0x1bf   :  { %v2300_v0 = vpop.f32.mrf.mxu0  ;;  %v6352_v59 = vpop.f32.mrf.mxu1 }
 0x1c0   :  { %v8585_v7 = vadd.f32 %v6352_v59, %v6302_v35 }
 0x1c1   :  { %v6305_v60 = vpop.f32.mrf.mxu0  ;;  %v2622_v4 = vpop.f32.mrf.mxu1 }
 0x1c2   :  { %v8587_v22 = vadd.f32 %v2622_v4, %v2300_v0 }
 0x1c3   :  { %v2320_v27 = vpop.f32.mrf.mxu0  ;;  %v6355_v47 = vpop.f32.mrf.mxu1 }
 0x1c4   :  { %v8589_v9 = vadd.f32 %v6355_v47, %v6305_v60 }
 0x1c5   :  { %v6308_v58 = vpop.f32.mrf.mxu0  ;;  %v2634_v62 = vpop.f32.mrf.mxu1 }
 0x1c6   :  { %9875 = vst [vmem:[#allocation16_spill] sm:$0xff] %v8589_v9  ;;  %v8591_v3 = vadd.f32 %v2634_v62, %v2320_v27 }
 0x1c7   :  { %v2340_v41 = vpop.f32.mrf.mxu0  ;;  %v6358_v33 = vpop.f32.mrf.mxu1 }
 0x1c8   :  { %9876 = vst [vmem:[#allocation10_spill] sm:$0xff] %v8591_v3  ;;  %v8593_v30 = vadd.f32 %v6358_v33, %v6308_v58 }
 0x1c9   :  { %v6311_v23 = vpop.f32.mrf.mxu0  ;;  %v2646_v53 = vpop.f32.mrf.mxu1 }
 0x1ca   :  { %9877 = vst [vmem:[#allocation19_spill] sm:$0xff] %v8593_v30  ;;  %v8595_v20 = vadd.f32 %v2646_v53, %v2340_v41 }
 0x1cb   :  { %v2360_v45 = vpop.f32.mrf.mxu0  ;;  %v6361_v56 = vpop.f32.mrf.mxu1 }
 0x1cc   :  { %9878 = vst [vmem:[#allocation12_spill] sm:$0xff] %v8595_v20  ;;  %v8597_v42 = vadd.f32 %v6361_v56, %v6311_v23 }
 0x1cd   :  { %v6314_v10 = vpop.f32.mrf.mxu0  ;;  %v2658_v8 = vpop.f32.mrf.mxu1 }
 0x1ce   :  { %9879 = vst [vmem:[#allocation14_spill] sm:$0xff] %v8597_v42  ;;  %v8599_v26 = vadd.f32 %v2658_v8, %v2360_v45 }
 0x1cf   :  { %v2380_v13 = vpop.f32.mrf.mxu0  ;;  %v6364_v18 = vpop.f32.mrf.mxu1 }
 0x1d0   :  { %9880 = vst [vmem:[#allocation21_spill] sm:$0xff] %v8599_v26  ;;  %v8601_v15 = vadd.f32 %v6364_v18, %v6314_v10 }
 0x1d1   :  { %v6317_v24 = vpop.f32.mrf.mxu0  ;;  %v2670_v6 = vpop.f32.mrf.mxu1 }
 0x1d2   :  { %9881 = vst [vmem:[#allocation24_spill] sm:$0xff] %v8601_v15  ;;  %v8603_v46 = vadd.f32 %v2670_v6, %v2380_v13 }
 0x1d3   :  { %v2400_v54 = vpop.f32.mrf.mxu0  ;;  %v6367_v28 = vpop.f32.mrf.mxu1 }
 0x1d4   :  { %9882 = vst [vmem:[#allocation18_spill] sm:$0xff] %v8603_v46  ;;  %v8605_v12 = vadd.f32 %v6367_v28, %v6317_v24  ;;  %v4531_v24 = vlaneseq }
 0x1d5   :  { %v6320_v21 = vpop.f32.mrf.mxu0  ;;  %v2682_v2 = vpop.f32.mrf.mxu1 }
 0x1d6   :  { %9883 = vst [vmem:[#allocation25_spill] sm:$0xff] %v8605_v12  ;;  %v8607_v36 = vadd.f32 %v2682_v2, %v2400_v54  ;;  %v8659_v28 = vshrl.u32 %v4531_v24, 7  ;;  %v8683_v24 = vld [vmem:[%s9335_s6 + $0x8] sm:$0xff] }
 0x1d7   :  { %v2420_v40 = vpop.f32.mrf.mxu0  ;;  %v6370_v11 = vpop.f32.mrf.mxu1  ;;  %9891 = vst [vmem:[#allocation31_spill] sm:$0xff] %v8683_v24  ;;  %v8707_v24 = vld [vmem:[%s9335_s6 + $0x18] sm:$0xff] }
 0x1d8   :  { %9884 = vst [vmem:[#allocation20_spill] sm:$0xff] %v8607_v36  ;;  %v8609_v29 = vadd.f32 %v6370_v11, %v6320_v21  ;;  %9889 = vst [vmem:[#allocation29_spill] sm:$0xff] %v8659_v28  ;;  %v8688_v11 = vld [vmem:[%s9335_s6 + $0x10] sm:$0xff] }
 0x1d9   :  { %v6323_v63 = vpop.f32.mrf.mxu0  ;;  %v2694_v38 = vpop.f32.mrf.mxu1  ;;  %9892 = vst [vmem:[#allocation43_spill] sm:$0xff] %v8688_v11  ;;  %9896 = vst [vmem:[#allocation36_spill] sm:$0xff] %v8707_v24  ;;  %v9897_v11 = vsub.s32 2, %v8659_v28 }
 0x1da   :  { %9885 = vst [vmem:[#allocation27_spill] sm:$0xff] %v8609_v29  ;;  %v8611_v34 = vadd.f32 %v2694_v38, %v2420_v40  ;;  %v9509_v40 = vsub.s32 0, %v8659_v28 }
 0x1db   :  { %v2440_v61 = vpop.f32.mrf.mxu0  ;;  %v6373_v44 = vpop.f32.mrf.mxu1 }
 0x1dc   :  { %9886 = vst [vmem:[#allocation26_spill] sm:$0xff] %v8611_v34  ;;  %v8613_v16 = vadd.f32 %v6373_v44, %v6323_v63  ;;  %v9894_v44 = vsub.s32 1, %v8659_v28 }
 0x1dd   :  { %v2706_v51 = vpop.f32.mrf.mxu1  ;;  %v8615_v35 = vpop.f32.mrf.mxu0 }
 0x1de   :  { %9887 = vst [vmem:[#allocation28_spill] sm:$0xff] %v8613_v16  ;;  %v8617_v25 = vadd.f32 %v2706_v51, %v2440_v61  ;;  %v4530_v61 = vld [vmem:[%s9331_s2] sm:$0x7]  ;;  %s8698_s2 = sld [smem:[#allocation4]] }
 0x1df   :  { %v8619_v0 = vpop.f32.mrf.mxu0  ;;  %v8621_v59 = vpop.f32.mrf.mxu1  ;;  %v8678_v51 = vld [vmem:[%s9335_s6] sm:$0xff]  ;;  %v8696_v16 = vrot.slane %v4530_v61, %v9894_v44  ;;  %v8711_v29 = vrot.slane %v4530_v61, %v9897_v11  ;;  %s8895_s6 = smov 0  }
 0x1e0   :  { %9888 = vst [vmem:[#allocation32_spill] sm:$0xff] %v8617_v25  ;;  %9890 = vst [vmem:[#allocation35_spill] sm:$0xff] %v8678_v51  ;;  %v8692_v25 = vrot.slane %v4530_v61, %v9509_v40 }
 0x1e1   :  { %v8623_v60 = vpop.f32.mrf.mxu0  ;;  %v8625_v4 = vpop.f32.mrf.mxu1  ;;  %9895 = vst [vmem:[#allocation45_spill] sm:$0xff] %v8696_v16  ;;  %9898 = vst [vmem:[#allocation46_spill] sm:$0xff] %v8711_v29 }
 0x1e2   :  { %9893 = vst [vmem:[#allocation34_spill] sm:$0xff] %v8692_v25 }
 0x1e3   :  { %v8627_v27 = vpop.f32.mrf.mxu0  ;;  %v8629_v47 = vpop.f32.mrf.mxu1 }
 0x1e5   :  { %v8631_v58 = vpop.f32.mrf.mxu0  ;;  %v8633_v62 = vpop.f32.mrf.mxu1 }
 0x1e7   :  { %v8635_v41 = vpop.f32.mrf.mxu0  ;;  %v8637_v33 = vpop.f32.mrf.mxu1 }
 0x1e9   :  { %v8639_v23 = vpop.f32.mrf.mxu0  ;;  %v8641_v53 = vpop.f32.mrf.mxu1 }
 0x1eb   :  { %v8643_v45 = vpop.f32.mrf.mxu0  ;;  %v8645_v56 = vpop.f32.mrf.mxu1 }
 0x1ed   :  { %v8647_v10 = vpop.f32.mrf.mxu0  ;;  %v8649_v8 = vpop.f32.mrf.mxu1 }
 0x1ef   :  { %v8651_v13 = vpop.f32.mrf.mxu0  ;;  %v8653_v18 = vpop.f32.mrf.mxu1 }
 0x1f1   :  { %v8655_v6 = vpop.f32.mrf.mxu0  ;;  %v8657_v54 = vpop.f32.mrf.mxu1 }
 0x1f3   :  { %v8661_v21 = vpop.f32.mrf.mxu0  ;;  %v8663_v2 = vpop.f32.mrf.mxu1 }
 0x1f5   :  { %v8667_v63 = vpop.f32.mrf.mxu0  ;;  %v8669_v38 = vpop.f32.mrf.mxu1 }
 0x1f7   :  { %v8700_v51 = vpop.f32.mrf.mxu0  ;;  %v8702_v34 = vpop.f32.mrf.mxu1 }
 0x1f9   :  { %v8717_v44 = vpop.f32.mrf.mxu0  ;;  %v8719_v40 = vpop.f32.mrf.mxu1 }
 0x1fb   :  { %v8721_v25 = vpop.f32.mrf.mxu0  ;;  %v8723_v16 = vpop.f32.mrf.mxu1 }
 0x1fd   :  { %v8725_v36 = vpop.f32.mrf.mxu0  ;;  %v8727_v12 = vpop.f32.mrf.mxu1 }
 0x1ff   :  { %v8729_v24 = vpop.f32.mrf.mxu0  ;;  %v8731_v11 = vpop.f32.mrf.mxu1 }
 0x201   :  { %v8733_v61 = vpop.f32.mrf.mxu0  ;;  %v8735_v29 = vpop.f32.mrf.mxu1 }
 0x202   :  { %9899 = vst [vmem:[#allocation38_spill] sm:$0xff] %v8733_v61  ;;  %9900 = vst [vmem:[#allocation50_spill] sm:$0xff] %v8735_v29 }
 0x203   :  { %v8737_v28 = vpop.f32.mrf.mxu0  ;;  %v8739_v46 = vpop.f32.mrf.mxu1 }
 0x204   :  { %9901 = vst [vmem:[#allocation41_spill] sm:$0xff] %v8737_v28  ;;  %9902 = vst [vmem:[#allocation51_spill] sm:$0xff] %v8739_v46 }
 0x205   :  { %v8741_v15 = vpop.f32.mrf.mxu0  ;;  %v8743_v26 = vpop.f32.mrf.mxu1 }
 0x206   :  { %9903 = vst [vmem:[#allocation44_spill] sm:$0xff] %v8741_v15  ;;  %9904 = vst [vmem:[#allocation8_spill] sm:$0xff] %v8743_v26 }
 0x207   :  { %v8745_v42 = vpop.f32.mrf.mxu0  ;;  %v8747_v20 = vpop.f32.mrf.mxu1 }
 0x208   :  { %9905 = vst [vmem:[#allocation54_spill] sm:$0xff] %v8745_v42  ;;  %9906 = vst [vmem:[#allocation9_spill] sm:$0xff] %v8747_v20 }
 0x209   :  { %v8749_v30 = vpop.f32.mrf.mxu0  ;;  %v8751_v3 = vpop.f32.mrf.mxu1 }
 0x20a   :  { %9907 = vst [vmem:[#allocation11_spill] sm:$0xff] %v8749_v30  ;;  %9908 = vst [vmem:[#allocation15_spill] sm:$0xff] %v8751_v3 }
 0x20b   :  { %v8753_v9 = vpop.f32.mrf.mxu0  ;;  %v8755_v61 = vpop.f32.mrf.mxu1 }
 0x20c   :  { %9909 = vst [vmem:[#allocation59_spill] sm:$0xff] %v8753_v9  ;;  %9910 = vst [vmem:[#allocation17_spill] sm:$0xff] %v8755_v61 }
 0x20d   :  { %v8757_v29 = vpop.f32.mrf.mxu0  ;;  %v8759_v28 = vpop.f32.mrf.mxu1 }
 0x20e   :  { %9911 = vst [vmem:[#allocation71_spill] sm:$0xff] %v8757_v29  ;;  %9912 = vst [vmem:[#allocation60_spill] sm:$0xff] %v8759_v28  ;;  %v2794_v28 = vadd.f32 %v8615_v35, %v8527_v49  ;;  %v2801_v35 = vadd.f32 %v8627_v27, %v8541_v5  ;;  %v2836_v27 = vadd.f32 %v8639_v23, %v8558_v19 }
 0x20f   :  { %v8761_v46 = vpop.f32.mrf.mxu0  ;;  %v8763_v15 = vpop.f32.mrf.mxu1 }
 0x210   :  { %9913 = vst [vmem:[#allocation22_spill] sm:$0xff] %v8763_v15  ;;  %v3134_v23 = vadd.f32 %v8645_v56, %v2836_v27  ;;  %v2864_v56 = vadd.f32 %v8655_v6, %v8573_v39  ;;  %v2878_v27 = vadd.f32 %v8667_v63, %v8577_v32 }
 0x211   :  { %v8765_v26 = vpop.f32.mrf.mxu0  ;;  %v8767_v42 = vpop.f32.mrf.mxu1 }
 0x212   :  { %9914 = vst [vmem:[#allocation39_spill] sm:$0xff] %v8765_v26  ;;  %9915 = vst [vmem:[#allocation61_spill] sm:$0xff] %v8767_v42  ;;  %v3166_v6 = vadd.f32 %v8663_v2, %v2864_v56  ;;  %v3182_v32 = vadd.f32 %v8702_v34, %v2878_v27  ;;  %v2892_v2 = vadd.f32 %v8717_v44, %v8581_v1 }
 0x213   :  { %v8769_v20 = vpop.f32.mrf.mxu0  ;;  %v8771_v30 = vpop.f32.mrf.mxu1 }
 0x214   :  { %9916 = vst [vmem:[#allocation23_spill] sm:$0xff] %v8769_v20  ;;  %9917 = vst [vmem:[#allocation72_spill] sm:$0xff] %v8771_v30  ;;  %v2787_v20 = vadd.f32 %v8619_v0, %v8532_v50  ;;  %v2822_v50 = vadd.f32 %v8631_v58, %v8547_v14  ;;  %v3198_v44 = vadd.f32 %v8723_v16, %v2892_v2  ;;  %v9927_v16 = vld [vmem:[#allocation16_spill] sm:$0xff] }
 0x215   :  { %v8773_v3 = vpop.f32.mrf.mxu0  ;;  %v8775_v9 = vpop.f32.mrf.mxu1 }
 0x216   :  { %9918 = vst [vmem:[#allocation62_spill] sm:$0xff] %v8773_v3  ;;  %9919 = vst [vmem:[#allocation30_spill] sm:$0xff] %v8775_v9  ;;  %v3086_v9 = vadd.f32 %v8621_v59, %v2794_v28  ;;  %v3078_v49 = vadd.f32 %v8625_v4, %v2787_v20  ;;  %v3094_v20 = vadd.f32 %v8633_v62, %v2801_v35 }
 0x217   :  { %v8777_v61 = vpop.f32.mrf.mxu0  ;;  %v8779_v29 = vpop.f32.mrf.mxu1  ;;  %v2829_v62 = vadd.f32 %v8643_v45, %v8562_v43 }
 0x218   :  { %9920 = vst [vmem:[#allocation73_spill] sm:$0xff] %v8777_v61  ;;  %9921 = vst [vmem:[#allocation63_spill] sm:$0xff] %v8779_v29  ;;  %v2808_v61 = vadd.f32 %v8623_v60, %v8536_v17  ;;  %v2815_v17 = vadd.f32 %v8635_v41, %v8553_v57 }
 0x219   :  { %v8783_v15 = vpop.f32.mrf.mxu0  ;;  %v8785_v26 = vpop.f32.mrf.mxu1  ;;  %v3126_v45 = vadd.f32 %v8649_v8, %v2829_v62  ;;  %v2857_v8 = vadd.f32 %v8661_v21, %v8575_v48 }
 0x21a   :  { %9922 = vst [vmem:[#allocation33_spill] sm:$0xff] %v8783_v15  ;;  %9923 = vst [vmem:[#allocation74_spill] sm:$0xff] %v8785_v26  ;;  %v3110_v57 = vadd.f32 %v8641_v53, %v2815_v17 }
 0x21b   :  { %v8789_v42 = vpop.f32.mrf.mxu0  ;;  %v8791_v30 = vpop.f32.mrf.mxu1  ;;  %v3158_v21 = vadd.f32 %v8669_v38, %v2857_v8  ;;  %v2885_v38 = vadd.f32 %v8721_v25, %v8583_v37 }
 0x21c   :  { %9924 = vst [vmem:[#allocation64_spill] sm:$0xff] %v8789_v42  ;;  %9925 = vst [vmem:[#allocation37_spill] sm:$0xff] %v8791_v30  ;;  %v3102_v30 = vadd.f32 %v8629_v47, %v2808_v61  ;;  %v2850_v61 = vadd.f32 %v8647_v10, %v8566_v55 }
 0x21d   :  { %v8796_v29 = vpop.f32.mrf.mxu1  ;;  %v6478_v3 = vpop.f32.mrf.mxu0  ;;  %v3190_v25 = vadd.f32 %v8727_v12, %v2885_v38  ;;  %v9930_v12 = vld [vmem:[#allocation10_spill] sm:$0xff] }
 0x21e   :  { %9926 = vst [vmem:[#allocation75_spill] sm:$0xff] %v8796_v29  ;;  %v3406_v26 = vadd.f32 %v6478_v3, %v3086_v9  ;;  %v3118_v9 = vadd.f32 %v8637_v33, %v2822_v50  ;;  %v2843_v50 = vadd.f32 %v8651_v13, %v8570_v52  ;;  %v3150_v55 = vadd.f32 %v8653_v18, %v2850_v61 }
 0x21f   :  { %v3399_v0 = vpop.f32.mrf.mxu0  ;;  %v6528_v42 = vpop.f32.mrf.mxu1 }
 0x220   :  { %v3400_v59 = vadd.f32 %v3399_v0, %v3078_v49  ;;  %v3664_v28 = vadd.f32 %v6528_v42, %v3406_v26  ;;  %v3142_v52 = vadd.f32 %v8657_v54, %v2843_v50 }
 0x221   :  { %v6481_v60 = vpop.f32.mrf.mxu0  ;;  %v3657_v29 = vpop.f32.mrf.mxu1 }
 0x222   :  { %v3848_v4 = vmax.f32 %v3664_v28, 0.0  ;;  %v3418_v15 = vadd.f32 %v6481_v60, %v3102_v30  ;;  %v3658_v5 = vadd.f32 %v3657_v29, %v3400_v59 }
 0x223   :  { %v3411_v3 = vpop.f32.mrf.mxu0  ;;  %v6531_v14 = vpop.f32.mrf.mxu1 }
 0x224   :  { %3880 = vst [vmem:[#allocation3 + $0x8] sm:$0xff] %v3848_v4  ;;  %v3847_v47 = vmax.f32 %v3658_v5, 0.0  ;;  %v3412_v42 = vadd.f32 %v3411_v3, %v3094_v20  ;;  %v3676_v26 = vadd.f32 %v6531_v14, %v3418_v15 }
 0x225   :  { %v6484_v58 = vpop.f32.mrf.mxu0  ;;  %v3669_v41 = vpop.f32.mrf.mxu1 }
 0x226   :  { %3879 = vst [vmem:[#allocation3] sm:$0xff] %v3847_v47  ;;  %v3850_v30 = vmax.f32 %v3676_v26, 0.0  ;;  %v3430_v29 = vadd.f32 %v6484_v58, %v3118_v9  ;;  %v3670_v33 = vadd.f32 %v3669_v41, %v3412_v42 }
 0x227   :  { %v3423_v49 = vpop.f32.mrf.mxu0  ;;  %v6534_v19 = vpop.f32.mrf.mxu1 }
 0x228   :  { %3882 = vst [vmem:[#allocation3 + $0x18] sm:$0xff] %v3850_v30  ;;  %v3849_v15 = vmax.f32 %v3670_v33, 0.0  ;;  %v3424_v35 = vadd.f32 %v3423_v49, %v3110_v57  ;;  %v3688_v53 = vadd.f32 %v6534_v19, %v3430_v29  ;;  %v2871_v57 = vadd.f32 %v8700_v51, %v8579_v31 }
 0x229   :  { %v6487_v0 = vpop.f32.mrf.mxu0  ;;  %v3681_v43 = vpop.f32.mrf.mxu1 }
 0x22a   :  { %3881 = vst [vmem:[#allocation3 + $0x10] sm:$0xff] %v3849_v15  ;;  %v3852_v59 = vmax.f32 %v3688_v53, 0.0  ;;  %v3442_v28 = vadd.f32 %v6487_v0, %v3134_v23  ;;  %v3682_v17 = vadd.f32 %v3681_v43, %v3424_v35  ;;  %v3174_v31 = vadd.f32 %v8719_v40, %v2871_v57 }
 0x22b   :  { %v3435_v10 = vpop.f32.mrf.mxu0  ;;  %v6537_v60 = vpop.f32.mrf.mxu1  ;;  %v2906_v35 = vadd.f32 %v8725_v36, %v8585_v7  ;;  %v2899_v43 = vadd.f32 %v8729_v24, %v8587_v22  ;;  %v9929_v22 = vld [vmem:[#allocation50_spill] sm:$0xff] }
 0x22c   :  { %3884 = vst [vmem:[#allocation3 + $0x28] sm:$0xff] %v3852_v59  ;;  %v3851_v20 = vmax.f32 %v3682_v17, 0.0  ;;  %v3436_v4 = vadd.f32 %v3435_v10, %v3126_v45  ;;  %v3700_v5 = vadd.f32 %v6537_v60, %v3442_v28  ;;  %v9928_v10 = vld [vmem:[#allocation38_spill] sm:$0xff] }
 0x22d   :  { %v6490_v13 = vpop.f32.mrf.mxu0  ;;  %v3693_v9 = vpop.f32.mrf.mxu1  ;;  %v3214_v7 = vadd.f32 %v8731_v11, %v2906_v35  ;;  %v2920_v60 = vadd.f32 %v9928_v10, %v9927_v16  ;;  %v3206_v24 = vadd.f32 %v9929_v22, %v2899_v43  ;;  %v9941_v35 = vld [vmem:[#allocation15_spill] sm:$0xff] }
 0x22e   :  { %3883 = vst [vmem:[#allocation3 + $0x20] sm:$0xff] %v3851_v20  ;;  %v3854_v3 = vmax.f32 %v3700_v5, 0.0  ;;  %v3454_v14 = vadd.f32 %v6490_v13, %v3150_v55  ;;  %v3694_v18 = vadd.f32 %v3693_v9, %v3436_v4  ;;  %v9931_v13 = vld [vmem:[#allocation41_spill] sm:$0xff] }
 0x22f   :  { %v3447_v47 = vpop.f32.mrf.mxu0  ;;  %v6540_v39 = vpop.f32.mrf.mxu1  ;;  %v2913_v9 = vadd.f32 %v9931_v13, %v9930_v12 }
 0x230   :  { %3886 = vst [vmem:[#allocation3 + $0x38] sm:$0xff] %v3854_v3  ;;  %v3853_v42 = vmax.f32 %v3694_v18, 0.0  ;;  %v3448_v26 = vadd.f32 %v3447_v47, %v3142_v52  ;;  %v3712_v54 = vadd.f32 %v6540_v39, %v3454_v14  ;;  %v9932_v14 = vld [vmem:[#allocation19_spill] sm:$0xff]  ;;  %v9933_v18 = vld [vmem:[#allocation44_spill] sm:$0xff] }
 0x231   :  { %v6493_v58 = vpop.f32.mrf.mxu0  ;;  %v3705_v48 = vpop.f32.mrf.mxu1  ;;  %v2934_v27 = vadd.f32 %v9933_v18, %v9932_v14  ;;  %v9950_v14 = vld [vmem:[#allocation25_spill] sm:$0xff]  ;;  %v9951_v18 = vld [vmem:[#allocation39_spill] sm:$0xff] }
 0x232   :  { %3885 = vst [vmem:[#allocation3 + $0x30] sm:$0xff] %v3853_v42  ;;  %v3856_v41 = vmax.f32 %v3712_v54, 0.0  ;;  %v3466_v62 = vadd.f32 %v6493_v58, %v3166_v6  ;;  %v3706_v30 = vadd.f32 %v3705_v48, %v3448_v26  ;;  %v9934_v6 = vld [vmem:[#allocation51_spill] sm:$0xff]  ;;  %v9935_v58 = vld [vmem:[#allocation12_spill] sm:$0xff]  ;;  %v9936_v48 = vld [vmem:[#allocation54_spill] sm:$0xff] }
 0x233   :  { %v3459_v63 = vpop.f32.mrf.mxu0  ;;  %v6543_v29 = vpop.f32.mrf.mxu1  ;;  %v3230_v42 = vadd.f32 %v9934_v6, %v2920_v60 }
 0x234   :  { %3888 = vst [vmem:[#allocation3 + $0x48] sm:$0xff] %v3856_v41  ;;  %v3855_v33 = vmax.f32 %v3706_v30, 0.0  ;;  %v3460_v61 = vadd.f32 %v3459_v63, %v3158_v21  ;;  %v3724_v49 = vadd.f32 %v6543_v29, %v3466_v62  ;;  %v2927_v21 = vadd.f32 %v9936_v48, %v9935_v58  ;;  %v9937_v30 = vld [vmem:[#allocation8_spill] sm:$0xff]  ;;  %v9954_v58 = vld [vmem:[#allocation23_spill] sm:$0xff] }
 0x235   :  { %v6496_v51 = vpop.f32.mrf.mxu0  ;;  %v3717_v19 = vpop.f32.mrf.mxu1 }
 0x236   :  { %3887 = vst [vmem:[#allocation3 + $0x40] sm:$0xff] %v3855_v33  ;;  %v3858_v23 = vmax.f32 %v3724_v49, 0.0  ;;  %v3478_v15 = vadd.f32 %v6496_v51, %v3182_v32  ;;  %v3718_v34 = vadd.f32 %v3717_v19, %v3460_v61  ;;  %v3222_v32 = vadd.f32 %v9937_v30, %v2913_v9  ;;  %v9938_v33 = vld [vmem:[#allocation9_spill] sm:$0xff]  ;;  %v9939_v51 = vld [vmem:[#allocation14_spill] sm:$0xff]  ;;  %v9940_v19 = vld [vmem:[#allocation11_spill] sm:$0xff] }
 0x237   :  { %v3471_v53 = vpop.f32.mrf.mxu0  ;;  %v6546_v1 = vpop.f32.mrf.mxu1  ;;  %v3246_v61 = vadd.f32 %v9938_v33, %v2934_v27  ;;  %v2948_v38 = vadd.f32 %v9940_v19, %v9939_v51  ;;  %v9949_v9 = vld [vmem:[#allocation22_spill] sm:$0xff]  ;;  %v2976_v27 = vadd.f32 %v9951_v18, %v9950_v14  ;;  %v9955_v30 = vld [vmem:[#allocation27_spill] sm:$0xff]  ;;  %v9957_v33 = vld [vmem:[#allocation72_spill] sm:$0xff] }
 0x238   :  { %3890 = vst [vmem:[#allocation3 + $0x58] sm:$0xff] %v3858_v23  ;;  %v3857_v50 = vmax.f32 %v3718_v34, 0.0  ;;  %v3472_v0 = vadd.f32 %v3471_v53, %v3174_v31  ;;  %v3736_v40 = vadd.f32 %v6546_v1, %v3478_v15  ;;  %v3238_v53 = vadd.f32 %v9941_v35, %v2927_v21  ;;  %v9958_v19 = vld [vmem:[#allocation26_spill] sm:$0xff] }
 0x239   :  { %v6499_v45 = vpop.f32.mrf.mxu0  ;;  %v3729_v37 = vpop.f32.mrf.mxu1  ;;  %v9960_v35 = vld [vmem:[#allocation30_spill] sm:$0xff] }
 0x23a   :  { %3889 = vst [vmem:[#allocation3 + $0x50] sm:$0xff] %v3857_v50  ;;  %v3860_v59 = vmax.f32 %v3736_v40, 0.0  ;;  %v3490_v28 = vadd.f32 %v6499_v45, %v3198_v44  ;;  %v3730_v17 = vadd.f32 %v3729_v37, %v3472_v0  ;;  %v9942_v50 = vld [vmem:[#allocation21_spill] sm:$0xff]  ;;  %v9943_v0 = vld [vmem:[#allocation59_spill] sm:$0xff] }
 0x23b   :  { %v3483_v36 = vpop.f32.mrf.mxu0  ;;  %v6549_v55 = vpop.f32.mrf.mxu1  ;;  %v2941_v40 = vadd.f32 %v9943_v0, %v9942_v50  ;;  %v9961_v0 = vld [vmem:[#allocation63_spill] sm:$0xff] }
 0x23c   :  { %3892 = vst [vmem:[#allocation3 + $0x68] sm:$0xff] %v3860_v59  ;;  %v3859_v56 = vmax.f32 %v3730_v17, 0.0  ;;  %v3484_v20 = vadd.f32 %v3483_v36, %v3190_v25  ;;  %v3748_v4 = vadd.f32 %v6549_v55, %v3490_v28  ;;  %v9944_v25 = vld [vmem:[#allocation24_spill] sm:$0xff]  ;;  %v9945_v59 = vld [vmem:[#allocation71_spill] sm:$0xff]  ;;  %v9946_v36 = vld [vmem:[#allocation17_spill] sm:$0xff] }
 0x23d   :  { %v6502_v5 = vpop.f32.mrf.mxu0  ;;  %v3741_v52 = vpop.f32.mrf.mxu1  ;;  %v2962_v28 = vadd.f32 %v9945_v59, %v9944_v25  ;;  %v3262_v55 = vadd.f32 %v9946_v36, %v2948_v38  ;;  %v9959_v38 = vld [vmem:[#allocation73_spill] sm:$0xff]  ;;  %v9964_v36 = vld [vmem:[#allocation74_spill] sm:$0xff] }
 0x23e   :  { %3891 = vst [vmem:[#allocation3 + $0x60] sm:$0xff] %v3859_v56  ;;  %v3862_v8 = vmax.f32 %v3748_v4, 0.0  ;;  %v3502_v3 = vadd.f32 %v6502_v5, %v3214_v7  ;;  %v3742_v11 = vadd.f32 %v3741_v52, %v3484_v20  ;;  %v9947_v56 = vld [vmem:[#allocation18_spill] sm:$0xff]  ;;  %v9963_v25 = vld [vmem:[#allocation33_spill] sm:$0xff] }
 0x23f   :  { %v3495_v47 = vpop.f32.mrf.mxu0  ;;  %v6552_v39 = vpop.f32.mrf.mxu1  ;;  %v2955_v20 = vadd.f32 %v8761_v46, %v9947_v56  ;;  %v9952_v46 = vld [vmem:[#allocation61_spill] sm:$0xff]  ;;  %v9966_v56 = vld [vmem:[#allocation64_spill] sm:$0xff] }
 0x240   :  { %3894 = vst [vmem:[#allocation3 + $0x78] sm:$0xff] %v3862_v8  ;;  %v3861_v26 = vmax.f32 %v3742_v11, 0.0  ;;  %v3496_v54 = vadd.f32 %v3495_v47, %v3206_v24  ;;  %v3760_v57 = vadd.f32 %v6552_v39, %v3502_v3  ;;  %v9948_v24 = vld [vmem:[#allocation60_spill] sm:$0xff]  ;;  %v3278_v8 = vadd.f32 %v9949_v9, %v2962_v28 }
 0x241   :  { %v6505_v41 = vpop.f32.mrf.mxu0  ;;  %v3753_v62 = vpop.f32.mrf.mxu1  ;;  %v3254_v5 = vadd.f32 %v9948_v24, %v2941_v40 }
 0x242   :  { %3893 = vst [vmem:[#allocation3 + $0x70] sm:$0xff] %v3861_v26  ;;  %v3864_v63 = vmax.f32 %v3760_v57, 0.0  ;;  %v3514_v29 = vadd.f32 %v6505_v41, %v3230_v42  ;;  %v3754_v2 = vadd.f32 %v3753_v62, %v3496_v54  ;;  %v3270_v42 = vadd.f32 %v9952_v46, %v2955_v20  ;;  %v9953_v57 = vld [vmem:[#allocation20_spill] sm:$0xff] }
 0x243   :  { %v3507_v49 = vpop.f32.mrf.mxu0  ;;  %v6555_v31 = vpop.f32.mrf.mxu1  ;;  %v2969_v48 = vadd.f32 %v9954_v58, %v9953_v57 }
 0x244   :  { %3896 = vst [vmem:[#allocation3 + $0x88] sm:$0xff] %v3864_v63  ;;  %v3863_v23 = vmax.f32 %v3754_v2, 0.0  ;;  %v3508_v15 = vadd.f32 %v3507_v49, %v3222_v32  ;;  %v3772_v34 = vadd.f32 %v6555_v31, %v3514_v29  ;;  %v9956_v32 = vld [vmem:[#allocation62_spill] sm:$0xff] }
 0x245   :  { %v6508_v1 = vpop.f32.mrf.mxu0  ;;  %v3765_v44 = vpop.f32.mrf.mxu1  ;;  %v2990_v63 = vadd.f32 %v9956_v32, %v9955_v30 }
 0x246   :  { %3895 = vst [vmem:[#allocation3 + $0x80] sm:$0xff] %v3863_v23  ;;  %v3866_v43 = vmax.f32 %v3772_v34, 0.0  ;;  %v3526_v45 = vadd.f32 %v6508_v1, %v3246_v61  ;;  %v3766_v37 = vadd.f32 %v3765_v44, %v3508_v15  ;;  %v3294_v61 = vadd.f32 %v9957_v33, %v2976_v27  ;;  %v9968_v27 = vld [vmem:[#allocation75_spill] sm:$0xff] }
 0x247   :  { %v3519_v17 = vpop.f32.mrf.mxu0  ;;  %v6558_v7 = vpop.f32.mrf.mxu1  ;;  %v2983_v23 = vadd.f32 %v9959_v38, %v9958_v19  ;;  %v3310_v40 = vadd.f32 %v9961_v0, %v2990_v63 }
 0x248   :  { %3898 = vst [vmem:[#allocation3 + $0x98] sm:$0xff] %v3866_v43  ;;  %v3865_v16 = vmax.f32 %v3766_v37, 0.0  ;;  %v3520_v10 = vadd.f32 %v3519_v17, %v3238_v53  ;;  %v3784_v60 = vadd.f32 %v6558_v7, %v3526_v45  ;;  %v3286_v53 = vadd.f32 %v9960_v35, %v2969_v48  ;;  %v9962_v37 = vld [vmem:[#allocation28_spill] sm:$0xff]  ;;  %v3932_v48 = vpop.permute.xlu1 %3931 }
 0x249   :  { %v6511_v4 = vpop.f32.mrf.mxu0  ;;  %v3777_v22 = vpop.f32.mrf.mxu1  ;;  %v3004_v59 = vadd.f32 %v9963_v25, %v9962_v37 }
 0x24a   :  { %3897 = vst [vmem:[#allocation3 + $0x90] sm:$0xff] %v3865_v16  ;;  %v3868_v52 = vmax.f32 %v3784_v60, 0.0  ;;  %v3538_v12 = vadd.f32 %v6511_v4, %v3262_v55  ;;  %v3778_v13 = vadd.f32 %v3777_v22, %v3520_v10  ;;  %v3302_v55 = vadd.f32 %v9964_v36, %v2983_v23  ;;  %v9965_v60 = vld [vmem:[#allocation32_spill] sm:$0xff] }
 0x24b   :  { %v3531_v3 = vpop.f32.mrf.mxu0  ;;  %v6561_v11 = vpop.f32.mrf.mxu1  ;;  %v2997_v20 = vadd.f32 %v9966_v56, %v9965_v60 }
 0x24c   :  { %3900 = vst [vmem:[#allocation3 + $0xa8] sm:$0xff] %v3868_v52  ;;  %v3867_v47 = vmax.f32 %v3778_v13, 0.0  ;;  %v3532_v39 = vadd.f32 %v3531_v3, %v3254_v5  ;;  %v3796_v6 = vadd.f32 %v6561_v11, %v3538_v12  ;;  %v9967_v12 = vld [vmem:[#allocation37_spill] sm:$0xff]  ;;  %v3922_v11 = vpop.permute.xlu0 %3921 }
 0x24d   :  { %v6514_v26 = vpop.f32.mrf.mxu0  ;;  %v3789_v54 = vpop.f32.mrf.mxu1  ;;  %v3326_v13 = vadd.f32 %v9967_v12, %v3004_v59 }
 0x24e   :  { %3899 = vst [vmem:[#allocation3 + $0xa0] sm:$0xff] %v3867_v47  ;;  %v3870_v21 = vmax.f32 %v3796_v6, 0.0  ;;  %v3550_v41 = vadd.f32 %v6514_v26, %v3278_v8  ;;  %v3790_v62 = vadd.f32 %v3789_v54, %v3532_v39  ;;  %v3318_v47 = vadd.f32 %v9968_v27, %v2997_v20 }
 0x24f   :  { %v3543_v29 = vpop.f32.mrf.mxu0  ;;  %v6564_v2 = vpop.f32.mrf.mxu1 }
 0x250   :  { %3902 = vst [vmem:[#allocation3 + $0xb8] sm:$0xff] %v3870_v21  ;;  %v3869_v49 = vmax.f32 %v3790_v62, 0.0  ;;  %v3544_v31 = vadd.f32 %v3543_v29, %v3270_v42  ;;  %v3808_v51 = vadd.f32 %v6564_v2, %v3550_v41  ;;  %v3927_v32 = vpop.permute.xlu0 %3926 }
 0x251   :  { %v6517_v15 = vpop.f32.mrf.mxu0  ;;  %v3801_v34 = vpop.f32.mrf.mxu1 }
 0x252   :  { %3901 = vst [vmem:[#allocation3 + $0xb0] sm:$0xff] %v3869_v49  ;;  %v3872_v1 = vmax.f32 %v3808_v51, 0.0  ;;  %v3562_v44 = vadd.f32 %v6517_v15, %v3294_v61  ;;  %v3802_v50 = vadd.f32 %v3801_v34, %v3544_v31  ;;  %v3937_v31 = vpop.permute.xlu1 %3936 }
 0x253   :  { %v3555_v43 = vpop.f32.mrf.mxu0  ;;  %v6567_v45 = vpop.f32.mrf.mxu1 }
 0x254   :  { %3904 = vst [vmem:[#allocation3 + $0xc8] sm:$0xff] %v3872_v1  ;;  %v3871_v28 = vmax.f32 %v3802_v50, 0.0  ;;  %v3556_v17 = vadd.f32 %v3555_v43, %v3286_v53  ;;  %v3820_v7 = vadd.f32 %v6567_v45, %v3562_v44 }
 0x255   :  { %v6520_v16 = vpop.f32.mrf.mxu0  ;;  %v3813_v10 = vpop.f32.mrf.mxu1 }
 0x256   :  { %3903 = vst [vmem:[#allocation3 + $0xc0] sm:$0xff] %v3871_v28  ;;  %v3874_v4 = vmax.f32 %v3820_v7, 0.0  ;;  %v3574_v22 = vadd.f32 %v6520_v16, %v3310_v40  ;;  %v3814_v24 = vadd.f32 %v3813_v10, %v3556_v17 }
 0x257   :  { %v3567_v5 = vpop.f32.mrf.mxu0  ;;  %v6570_v52 = vpop.f32.mrf.mxu1 }
 0x258   :  { %3906 = vst [vmem:[#allocation3 + $0xd8] sm:$0xff] %v3874_v4  ;;  %v3873_v9 = vmax.f32 %v3814_v24, 0.0  ;;  %v3568_v8 = vadd.f32 %v3567_v5, %v3302_v55  ;;  %v3832_v3 = vadd.f32 %v6570_v52, %v3574_v22 }
 0x259   :  { %v6523_v14 = vpop.f32.mrf.mxu0  ;;  %v3825_v18 = vpop.f32.mrf.mxu1 }
 0x25a   :  { %3905 = vst [vmem:[#allocation3 + $0xd0] sm:$0xff] %v3873_v9  ;;  %v3876_v39 = vmax.f32 %v3832_v3, 0.0  ;;  %v3586_v6 = vadd.f32 %v6523_v14, %v3326_v13  ;;  %v3826_v46 = vadd.f32 %v3825_v18, %v3568_v8 }
 0x25b   :  { %v3579_v42 = vpop.f32.mrf.mxu0  ;;  %v6573_v26 = vpop.f32.mrf.mxu1 }
 0x25c   :  { %3908 = vst [vmem:[#allocation3 + $0xe8] sm:$0xff] %v3876_v39  ;;  %v3875_v54 = vmax.f32 %v3826_v46, 0.0  ;;  %v3580_v57 = vadd.f32 %v3579_v42, %v3318_v47  ;;  %v3844_v58 = vadd.f32 %v6573_v26, %v3586_v6 }
 0x25d   :  { %v3837_v21 = vpop.f32.mrf.mxu1  ;;  %v6578_v41 = vpop.f32.mrf.mxu0 }
 0x25e   :  { %3907 = vst [vmem:[#allocation3 + $0xe0] sm:$0xff] %v3875_v54  ;;  %v3878_v62 = vmax.f32 %v3844_v58, 0.0  ;;  %v3838_v30 = vadd.f32 %v3837_v21, %v3580_v57  ;;  %v4034_v49 = vadd.f32 %v6578_v41, %v3927_v32 }
 0x25f   :  { %v4023_v63 = vpop.f32.mrf.mxu0  ;;  %v6586_v29 = vpop.f32.mrf.mxu1 }
 0x260   :  { %3910 = vst [vmem:[#allocation3 + $0xf8] sm:$0xff] %v3878_v62  ;;  %v3877_v2 = vmax.f32 %v3838_v30, 0.0  ;;  %v4024_v38 = vadd.f32 %v4023_v63, %v3922_v11  ;;  %v4136_v34 = vadd.f32 %v6586_v29, %v4034_v49 }
 0x261   :  { %v6581_v33 = vpop.f32.mrf.mxu0  ;;  %v4129_v61 = vpop.f32.mrf.mxu1 }
 0x262   :  { %3909 = vst [vmem:[#allocation3 + $0xf0] sm:$0xff] %v3877_v2  ;;  %v4054_v35 = vadd.f32 %v6581_v33, %v3937_v31  ;;  %v4130_v44 = vadd.f32 %v4129_v61, %v4024_v38 }
 0x263   :  { %v4043_v51 = vpop.f32.mrf.mxu0  ;;  %v6589_v19 = vpop.f32.mrf.mxu1 }
 0x264   :  { %v4044_v50 = vadd.f32 %v4043_v51, %v3932_v48  ;;  %v4148_v45 = vadd.f32 %v6589_v19, %v4054_v35 }
 0x265   :  { %v4141_v23 = vpop.f32.mrf.mxu1  ;;  %v6594_v15 = vpop.f32.mrf.mxu0 }
 0x266   :  { %v4229_v0 = vadd.f32 %v6594_v15, %v4136_v34  ;;  %v4142_v28 = vadd.f32 %v4141_v23, %v4044_v50 }
 0x267   :  { %v4221_v53 = vpop.f32.mrf.mxu0  ;;  %v6602_v1 = vpop.f32.mrf.mxu1 }
 0x268   :  { %v4222_v37 = vadd.f32 %v4221_v53, %v4130_v44  ;;  %v4325_v17 = vadd.f32 %v6602_v1, %v4229_v0 }
 0x269   :  { %v6597_v40 = vpop.f32.mrf.mxu0  ;;  %v4316_v43 = vpop.f32.mrf.mxu1 }
 0x26a   :  { %v4243_v7 = vadd.f32 %v6597_v40, %v4148_v45  ;;  %v4317_v16 = vadd.f32 %v4316_v43, %v4222_v37 }
 0x26b   :  { %v4235_v25 = vpop.f32.mrf.mxu0  ;;  %v6605_v59 = vpop.f32.mrf.mxu1 }
 0x26c   :  { %v4236_v10 = vadd.f32 %v4235_v25, %v4142_v28  ;;  %v4341_v4 = vadd.f32 %v6605_v59, %v4243_v7 }
 0x26d   :  { %v4332_v36 = vpop.f32.mrf.mxu1  ;;  %v6610_v55 = vpop.f32.mrf.mxu0 }
 0x26e   :  { %v4421_v60 = vadd.f32 %v6610_v55, %v4325_v17  ;;  %v4333_v12 = vadd.f32 %v4332_v36, %v4236_v10 }
 0x26f   :  { %v4414_v56 = vpop.f32.mrf.mxu0  ;;  %v6618_v20 = vpop.f32.mrf.mxu1 }
 0x270   :  { %v4415_v22 = vadd.f32 %v4414_v56, %v4317_v16  ;;  %v8887_v24 = vadd.f32 %v6618_v20, %v4421_v60 }
 0x271   :  { %v6613_v5 = vpop.f32.mrf.mxu0  ;;  %v4504_v52 = vpop.f32.mrf.mxu1 }
 0x272   :  { %v4433_v13 = vadd.f32 %v6613_v5, %v4341_v4  ;;  %v8889_v9 = vadd.f32 %v4504_v52, %v4415_v22 }
 0x273   :  { %v4426_v8 = vpop.f32.mrf.mxu0  ;;  %v6621_v3 = vpop.f32.mrf.mxu1 }
 0x274   :  { %9969 = vst [vmem:[#allocation65_spill] sm:$0xff] %v8889_v9  ;;  %v4427_v11 = vadd.f32 %v4426_v8, %v4333_v12  ;;  %v8891_v14 = vadd.f32 %v6621_v3, %v4433_v13 }
 0x275   :  { %v4516_v18 = vpop.f32.mrf.mxu1 }
 0x276   :  { %v8893_v27 = vadd.f32 %v4516_v18, %v4427_v11 }
 0x277 LB: > { %v6767_v47 = vmov 0   ;;  %v9971_v39 = vld [vmem:[#allocation31_spill] sm:$0xff]  ;;  %s8903_s1 = sshll.u32 %s6763_s6, 3  ;;  %v9973_v42 = vld [vmem:[#allocation29_spill] sm:$0xff]  ;;  %v6768_v57 = vmov 1   ;;  %v6769_v41 = vmov 2   ;;  %s6763_s6 = sphi %s8895_s6, %s4551_s6  }
 0x278   : > { %6638 = vset.pattern.permute.xlu1 %v6767_v47  ;;  %6637 = vset.pattern.permute.xlu0 %v6767_v47  ;;  %v9972_v6 = vld [vmem:[#allocation35_spill] sm:$0xff]  ;;  %s4553_s29 = scalar_lea.vmem [#allocation2], %s8903_s1  ;;  %v9974_v26 = vsub.s32 2, %v9973_v42  ;;  %v9975_v58 = vsub.s32 1, %v9973_v42  ;;  %v4580_v62 = vsub.s32 3, %v9973_v42  ;;  %v9977_v32 = vsub.s32 0, %v9973_v42  ;;  %s5485_s11 = scalar_lea.vmem %s9337_s8, %s8903_s1 }
 0x279   : > { %4740 = vperm.xlu1 %6638, %v9971_v39   ;;  %4631 = vperm.xlu0 %6637, %v9972_v6   ;;  %v4554_v46 = vld [vmem:[%s4553_s29] sm:$0xff]  ;;  %v4587_v29 = vsub.s32 4, %v9973_v42  ;;  %v9978_v33 = vld [vmem:[#allocation36_spill] sm:$0xff]  ;;  %v4601_v61 = vsub.s32 6, %v9973_v42  ;;  %v4594_v49 = vsub.s32 5, %v9973_v42  ;;  %v4608_v19 = vsub.s32 7, %v9973_v42 }
 0x27a   : > { %v4574_v54 = vrot.slane %v4554_v46, %v9974_v26  ;;  %v4567_v48 = vrot.slane %v4554_v46, %v9975_v58  ;;  %v9976_v21 = vld [vmem:[#allocation43_spill] sm:$0xff]  ;;  %v4581_v30 = vrot.slane %v4554_v46, %v4580_v62  ;;  %v4560_v63 = vrot.slane %v4554_v46, %v9977_v32  ;;  %s4555_s30 = scalar_lea.vmem [#allocation3], %s8903_s1  ;;  %s4551_s6 = sadd.s32 1, %s6763_s6  }
 0x27b   : > { %v9970_v9 = vld [vmem:[#allocation65_spill] sm:$0xff]  ;;  %v4588_v2 = vrot.slane %v4554_v46, %v4587_v29  ;;  %v4602_v31 = vrot.slane %v4554_v46, %v4601_v61  ;;  %v4595_v51 = vrot.slane %v4554_v46, %v4594_v49  ;;  %v4609_v38 = vrot.slane %v4554_v46, %v4608_v19  ;;  %p4548_p5 = scmp.ge.s32.totalorder %s4551_s6, 32  }
 0x27c   : > { %vm5163_vm4 = vcmask 1041409   ;;  %vm5166_vm5 = vcmask 1042434   ;;  %vm5169_vm6 = vcmask 1043459   ;;  %vm5172_vm7 = vcmask 1044484  }
 0x27d   : > { %6639 = vset.pattern.permute.xlu1 %v6768_v57  ;;  %4576 = vbcast.lane.b32.xlu0 %v4574_v54, 256  ;;  %vm5175_vm8 = vcmask 1045509   ;;  %vm5178_vm9 = vcmask 1046534   ;;  %vm5181_vm10 = vcmask 1047559   ;;  %vm5481_vm11 = vcmask 7168  }
 0x27e   : > { %4760 = vperm.xlu1 %6639, %v9971_v39   ;;  %vm5483_vm12 = vcmask 15360  }
 0x281   : > { %4849 = vperm.xlu0 %6637, %v9976_v21  }
 0x282   : > { %4569 = vbcast.lane.b32.xlu1 %v4567_v48, 256 }
 0x283   : > { %6640 = vset.pattern.permute.xlu1 %v6769_v41 }
 0x285   : > { %6641 = vset.pattern.permute.xlu0 %v6769_v41 }
 0x286   : > { %4696 = vbcast.lane.b32.xlu1 %v4567_v48, 264  ;;  %4671 = vperm.xlu0 %6641, %v9972_v6  }
 0x28a   : > { %4780 = vperm.xlu1 %6640, %v9971_v39   ;;  %4583 = vbcast.lane.b32.xlu0 %v4581_v30, 256 }
 0x28e   : > { %4700 = vbcast.lane.b32.xlu1 %v4574_v54, 264  ;;  %4704 = vbcast.lane.b32.xlu0 %v4581_v30, 264 }
 0x28f   : > { %6642 = vset.pattern.permute.xlu1 %v6768_v57 }
 0x292   : > { %4869 = vperm.xlu1 %6642, %v9976_v21   ;;  %4889 = vperm.xlu0 %6641, %v9976_v21  }
 0x296   : > { %4562 = vbcast.lane.b32.xlu1 %v4560_v63, 256  ;;  %6643 = vset.pattern.permute.xlu0 %v6768_v57 }
 0x297   : > { %6644 = vset.pattern.permute.xlu1 %v6767_v47  ;;  %4651 = vperm.xlu0 %6643, %v9972_v6  }
 0x29a   : > { %4692 = vbcast.lane.b32.xlu1 %v4560_v63, 264 }
 0x29b   : > { %4809 = vbcast.lane.b32.xlu0 %v4574_v54, 272 }
 0x29e   : > { %4805 = vbcast.lane.b32.xlu1 %v4567_v48, 272 }
 0x29f   : > { %4978 = vperm.xlu0 %6643, %v9978_v33  }
 0x2a2   : > { %4590 = vbcast.lane.b32.xlu1 %v4588_v2, 256 }
 0x2a3   : > { %4801 = vbcast.lane.b32.xlu0 %v4560_v63, 272 }
 0x2a4   : > { %6646 = vset.pattern.permute.xlu0 %v6769_v41 }
 0x2a6   : > { %4708 = vbcast.lane.b32.xlu1 %v4588_v2, 264 }
 0x2a7   : > { %4914 = vbcast.lane.b32.xlu0 %v4567_v48, 280 }
 0x2aa   : > { %4958 = vperm.xlu1 %6644, %v9978_v33  }
 0x2ab   : > { %4604 = vbcast.lane.b32.xlu0 %v4602_v31, 256 }
 0x2ae   : > { %4597 = vbcast.lane.b32.xlu1 %v4595_v51, 256 }
 0x2af   : > { %6645 = vset.pattern.permute.xlu1 %v6769_v41  ;;  %4817 = vbcast.lane.b32.xlu0 %v4588_v2, 272 }
 0x2b2   : > { %4712 = vbcast.lane.b32.xlu1 %v4595_v51, 264 }
 0x2b3   : > { %4611 = vbcast.lane.b32.xlu0 %v4609_v38, 256 }
 0x2b6   : > { %4813 = vbcast.lane.b32.xlu1 %v4581_v30, 272 }
 0x2b7   : > { %4821 = vbcast.lane.b32.xlu0 %v4595_v51, 272 }
 0x2ba   : > { %4998 = vperm.xlu1 %6645, %v9978_v33  }
 0x2bb   : > { %4922 = vbcast.lane.b32.xlu0 %v4581_v30, 280 }
 0x2be   : > { %4716 = vbcast.lane.b32.xlu1 %v4602_v31, 264 }
 0x2bf   : > { %4926 = vbcast.lane.b32.xlu0 %v4588_v2, 280 }
 0x2c2   : > { %4918 = vbcast.lane.b32.xlu1 %v4574_v54, 280 }
 0x2c3   : > { %4930 = vbcast.lane.b32.xlu0 %v4595_v51, 280 }
 0x2c6   : > { %4720 = vbcast.lane.b32.xlu1 %v4609_v38, 264 }
 0x2c7   : > { %4938 = vbcast.lane.b32.xlu0 %v4609_v38, 280 }
 0x2ca   : > { %4910 = vbcast.lane.b32.xlu1 %v4560_v63, 280 }
 0x2ce   : > { %4825 = vbcast.lane.b32.xlu1 %v4602_v31, 272 }
 0x2d2   : > { %4829 = vbcast.lane.b32.xlu1 %v4609_v38, 272 }
 0x2d6   : > { %4934 = vbcast.lane.b32.xlu1 %v4602_v31, 280 }
 0x2f4   : > { %v8927_v23 = vpop.permute.xlu1 %4740  ;;  %v8929_v15 = vpop.permute.xlu0 %4631 }
 0x2f8   : > { %v4577_v34 = vpop.permute.xlu0 %4576 }
 0x2f9   : > { %v8931_v35 = vpop.permute.xlu1 %4760  ;;  %v4615_v59 = vadd.f32 %v4577_v34, %v9970_v9 }
 0x2fb   : > { %v4623_v60 = vmax.f32 %v4615_v59, 0.0  ;;  %v8984_v59 = vstv %s8698_s2 }
 0x2fc   : > { %v8933_v1 = vpop.permute.xlu0 %4849 }
 0x2fd   : > { %v4570_v53 = vpop.permute.xlu1 %4569  ;;  %v4636_v5 = vmul.f32 %v8929_v15, %v4623_v60 }
 0x2fe   : > { %v4614_v44 = vadd.f32 %v4570_v53, %v9970_v9 }
 0x300   : > { %v4622_v50 = vmax.f32 %v4614_v44, 0.0 }
 0x301   : > { %v4697_v0 = vpop.permute.xlu1 %4696  ;;  %v8938_v45 = vpop.permute.xlu0 %4671 }
 0x302   : > { %v4635_v40 = vmul.f32 %v8929_v15, %v4622_v50  ;;  %v4723_v43 = vadd.f32 %v4697_v0, %v8887_v24  ;;  %v4675_v7 = vmul.f32 %v8938_v45, %v4622_v50  ;;  %v4676_v52 = vmul.f32 %v8938_v45, %v4623_v60 }
 0x304   : > { %v4731_v37 = vmax.f32 %v4723_v43, 0.0 }
 0x305   : > { %v8940_v25 = vpop.permute.xlu1 %4780  ;;  %v4584_v17 = vpop.permute.xlu0 %4583 }
 0x306   : > { %v4744_v28 = vmul.f32 %v8927_v23, %v4731_v37  ;;  %v4784_v36 = vmul.f32 %v8940_v25, %v4731_v37  ;;  %v4764_v26 = vmul.f32 %v8931_v35, %v4731_v37  ;;  %v4616_v41 = vadd.f32 %v4584_v17, %v9970_v9 }
 0x308   : > { %v8946_v55 = vadd.f32 %v4744_v28, %v4635_v40  ;;  %v8948_v16 = vadd.f32 %v4784_v36, %v4675_v7  ;;  %v4624_v29 = vmax.f32 %v4616_v41, 0.0  ;;  %v8980_v40 = vstv %s8713_s0 }
 0x309   : > { %v4701_v10 = vpop.permute.xlu1 %4700  ;;  %v4705_v20 = vpop.permute.xlu0 %4704  ;;  %v8987_v28 = vstv %s8715_s28 }
 0x30a   : > { %v4724_v56 = vadd.f32 %v4701_v10, %v8887_v24  ;;  %v4725_v57 = vadd.f32 %v4705_v20, %v8887_v24  ;;  %v4677_v31 = vmul.f32 %v8938_v45, %v4624_v29  ;;  %v4637_v44 = vmul.f32 %v8929_v15, %v4624_v29 }
 0x30c   : > { %v4732_v4 = vmax.f32 %v4724_v56, 0.0  ;;  %v4733_v30 = vmax.f32 %v4725_v57, 0.0 }
 0x30d   : > { %v8951_v22 = vpop.permute.xlu1 %4869  ;;  %v8957_v8 = vpop.permute.xlu0 %4889 }
 0x30e   : > { %v4745_v12 = vmul.f32 %v8927_v23, %v4732_v4  ;;  %v4785_v13 = vmul.f32 %v8940_v25, %v4732_v4  ;;  %v4746_v51 = vmul.f32 %v8927_v23, %v4733_v30  ;;  %v4786_v19 = vmul.f32 %v8940_v25, %v4733_v30 }
 0x30f   : > { %v4765_v43 = vmul.f32 %v8931_v35, %v4732_v4  ;;  %v4766_v7 = vmul.f32 %v8931_v35, %v4733_v30 }
 0x310   : > { %v8959_v3 = vadd.f32 %v4745_v12, %v4636_v5  ;;  %v8961_v11 = vadd.f32 %v4785_v13, %v4676_v52  ;;  %v8989_v17 = vadd.f32 %v4746_v51, %v4637_v44  ;;  %v8992_v36 = vadd.f32 %v4786_v19, %v4677_v31 }
 0x311   : > { %v4563_v18 = vpop.permute.xlu1 %4562 }
 0x312   : > { %v8963_v47 = vpop.permute.xlu0 %4651  ;;  %v4613_v2 = vadd.f32 %v4563_v18, %v9970_v9 }
 0x313   : > { %v4655_v46 = vmul.f32 %v8963_v47, %v4622_v50  ;;  %v4656_v20 = vmul.f32 %v8963_v47, %v4623_v60 }
 0x314   : > { %v4621_v50 = vmax.f32 %v4613_v2, 0.0 }
 0x315   : > { %v4693_v54 = vpop.permute.xlu1 %4692  ;;  %v4772_v48 = vadd.f32 %v4764_v26, %v4655_v46  ;;  %v4657_v26 = vmul.f32 %v8963_v47, %v4624_v29  ;;  %v4773_v19 = vadd.f32 %v4765_v43, %v4656_v20 }
 0x316   : > { %v4810_v58 = vpop.permute.xlu0 %4809  ;;  %v4722_v49 = vadd.f32 %v4693_v54, %v8887_v24  ;;  %v4634_v12 = vmul.f32 %v8929_v15, %v4621_v50  ;;  %v4674_v13 = vmul.f32 %v8938_v45, %v4621_v50  ;;  %v4654_v18 = vmul.f32 %v8963_v47, %v4621_v50 }
 0x317   : > { %v4833_v38 = vadd.f32 %v4810_v58, %v8893_v27 }
 0x318   : > { %v4730_v37 = vmax.f32 %v4722_v49, 0.0 }
 0x319   : > { %v4806_v62 = vpop.permute.xlu1 %4805  ;;  %v4841_v10 = vmax.f32 %v4833_v38, 0.0 }
 0x31a   : > { %v8969_v32 = vpop.permute.xlu0 %4978  ;;  %v4832_v63 = vadd.f32 %v4806_v62, %v8893_v27  ;;  %v4743_v54 = vmul.f32 %v8927_v23, %v4730_v37  ;;  %v4763_v60 = vmul.f32 %v8931_v35, %v4730_v37  ;;  %v4783_v57 = vmul.f32 %v8940_v25, %v4730_v37 }
 0x31b   : > { %v4854_v41 = vmul.f32 %v8933_v1, %v4841_v10  ;;  %v4874_v38 = vmul.f32 %v8951_v22, %v4841_v10  ;;  %v4894_v44 = vmul.f32 %v8957_v8, %v4841_v10 }
 0x31c   : > { %v4840_v53 = vmax.f32 %v4832_v63, 0.0  ;;  %v4751_v50 = vadd.f32 %v4743_v54, %v4634_v12 }
 0x31d   : > { %v4591_v61 = vpop.permute.xlu1 %4590  ;;  %v9024_v6 = vadd.f32 %v4854_v41, %v8959_v3  ;;  %v9026_v10 = vadd.f32 %v4874_v38, %v4773_v19 }
 0x31e   : > { %v4802_v34 = vpop.permute.xlu0 %4801  ;;  %v4853_v5 = vmul.f32 %v8933_v1, %v4840_v53  ;;  %v4873_v52 = vmul.f32 %v8951_v22, %v4840_v53  ;;  %v4617_v62 = vadd.f32 %v4591_v61, %v9970_v9  ;;  %v4893_v61 = vmul.f32 %v8957_v8, %v4840_v53 }
 0x31f   : > { %v4831_v30 = vadd.f32 %v4802_v34, %v8893_v27  ;;  %v9029_v53 = vadd.f32 %v4894_v44, %v8961_v11 }
 0x320   : > { %v4861_v49 = vadd.f32 %v4853_v5, %v8946_v55  ;;  %v4881_v29 = vadd.f32 %v4873_v52, %v4772_v48  ;;  %v4771_v55 = vadd.f32 %v4763_v60, %v4654_v18  ;;  %v4791_v48 = vadd.f32 %v4783_v57, %v4674_v13 }
 0x321   : > { %v4709_v0 = vpop.permute.xlu1 %4708  ;;  %v4839_v5 = vmax.f32 %v4831_v30, 0.0  ;;  %v4625_v43 = vmax.f32 %v4617_v62, 0.0  ;;  %v9032_v12 = vadd.f32 %v4893_v61, %v8948_v16 }
 0x322   : > { %v4915_v56 = vpop.permute.xlu0 %4914  ;;  %v4726_v63 = vadd.f32 %v4709_v0, %v8887_v24 }
 0x323   : > { %v4941_v4 = vadd.f32 %v4915_v56, %v8891_v14  ;;  %v9021_v56 = vadd.f32 %v4766_v7, %v4657_v26  ;;  %v4852_v60 = vmul.f32 %v8933_v1, %v4839_v5  ;;  %v4872_v57 = vmul.f32 %v8951_v22, %v4839_v5 }
 0x324   : > { %v4734_v52 = vmax.f32 %v4726_v63, 0.0  ;;  %v4892_v41 = vmul.f32 %v8957_v8, %v4839_v5  ;;  %v4638_v16 = vmul.f32 %v8929_v15, %v4625_v43  ;;  %v4678_v19 = vmul.f32 %v8938_v45, %v4625_v43 }
 0x325   : > { %v9001_v46 = vpop.permute.xlu1 %4958  ;;  %v9007_v58 = vmax.f32 %v4941_v4, 0.0 }
 0x326   : > { %v4605_v2 = vpop.permute.xlu0 %4604  ;;  %v4747_v11 = vmul.f32 %v8927_v23, %v4734_v52 }
 0x327   : > { %v4982_v31 = vmul.f32 %v8969_v32, %v9007_v58  ;;  %v4962_v51 = vmul.f32 %v9001_v46, %v9007_v58  ;;  %v4619_v7 = vadd.f32 %v4605_v2, %v9970_v9 }
 0x328   : > { %v4755_v5 = vadd.f32 %v4747_v11, %v4638_v16 }
 0x329   : > { %v4598_v34 = vpop.permute.xlu1 %4597  ;;  %v4990_v0 = vadd.f32 %v4982_v31, %v4881_v29  ;;  %v4970_v37 = vadd.f32 %v4962_v51, %v4861_v49  ;;  %v4767_v49 = vmul.f32 %v8931_v35, %v4734_v52  ;;  %v4787_v29 = vmul.f32 %v8940_v25, %v4734_v52 }
 0x32a   : > { %v4818_v4 = vpop.permute.xlu0 %4817  ;;  %v4618_v54 = vadd.f32 %v4598_v34, %v9970_v9  ;;  %v4627_v31 = vmax.f32 %v4619_v7, 0.0  ;;  %v9047_v34 = vadd.f32 %v4852_v60, %v4751_v50 }
 0x32b   : > { %v5193_v20 = vrot.slane %v4990_v0, 4  ;;  %v5023_v21 = vrot.slane %v4970_v37, 4  ;;  %v4835_v3 = vadd.f32 %v4818_v4, %v8893_v27  ;;  %v4795_v39 = vadd.f32 %v4787_v29, %v4678_v19 }
 0x32c   : > { %v4626_v44 = vmax.f32 %v4618_v54, 0.0  ;;  %9979 = vst [vmem:[#allocation83_spill] sm:$0xff] %v9047_v34 }
 0x32d   : > { %v4713_v13 = vpop.permute.xlu1 %4712  ;;  %v5194_v18 = vadd.f32 %v5193_v20, %v4990_v0  ;;  %v5024_v26 = vadd.f32 %v5023_v21, %v4970_v37  ;;  %v4658_v21 = vmul.f32 %v8963_v47, %v4625_v43  ;;  %v4843_v61 = vmax.f32 %v4835_v3, 0.0 }
 0x32e   : > { %v4612_v62 = vpop.permute.xlu0 %4611  ;;  %v4727_v2 = vadd.f32 %v4713_v13, %v8887_v24  ;;  %v9049_v0 = vadd.f32 %v4872_v57, %v4771_v55  ;;  %v9051_v37 = vadd.f32 %v4892_v41, %v4791_v48  ;;  %v9055_v43 = vmul.f32 %v8929_v15, %v4627_v31 }
 0x32f   : > { %v5195_v30 = vrot.slane %v5194_v18, 2  ;;  %v5025_v63 = vrot.slane %v5024_v26, 2  ;;  %v4775_v7 = vadd.f32 %v4767_v49, %v4658_v21  ;;  %v9063_v48 = vmul.f32 %v8938_v45, %v4627_v31 }
 0x330   : > { %9980 = vst [vmem:[#allocation84_spill] sm:$0xff] %v9049_v0  ;;  %9981 = vst [vmem:[#allocation85_spill] sm:$0xff] %v9051_v37  ;;  %v4735_v33 = vmax.f32 %v4727_v2, 0.0  ;;  %v4639_v54 = vmul.f32 %v8929_v15, %v4626_v44  ;;  %v4659_v3 = vmul.f32 %v8963_v47, %v4626_v44  ;;  %v4876_v60 = vmul.f32 %v8951_v22, %v4843_v61 }
 0x331   : > { %v4814_v51 = vpop.permute.xlu1 %4813  ;;  %v5196_v38 = vadd.f32 %v5195_v30, %v5194_v18  ;;  %v5026_v13 = vadd.f32 %v5025_v63, %v5024_v26  ;;  %v9058_v18 = vmul.f32 %v8963_v47, %v4627_v31  ;;  %v4856_v26 = vmul.f32 %v8933_v1, %v4843_v61 }
 0x332   : > { %v4822_v4 = vpop.permute.xlu0 %4821  ;;  %v4834_v52 = vadd.f32 %v4814_v51, %v8893_v27  ;;  %v4896_v57 = vmul.f32 %v8957_v8, %v4843_v61  ;;  %v4748_v30 = vmul.f32 %v8927_v23, %v4735_v33  ;;  %v4620_v63 = vadd.f32 %v4612_v62, %v9970_v9 }
 0x333   : > { %v5197_v20 = vrot.slane %v5196_v38, 1  ;;  %v5027_v16 = vrot.slane %v5026_v13, 1  ;;  %v4679_v21 = vmul.f32 %v8938_v45, %v4626_v44  ;;  %v4768_v49 = vmul.f32 %v8931_v35, %v4735_v33 }
 0x334   : > { %v4842_v41 = vmax.f32 %v4834_v52, 0.0  ;;  %v4836_v29 = vadd.f32 %v4822_v4, %v8893_v27  ;;  %v4904_v52 = vadd.f32 %v4896_v57, %v4795_v39  ;;  %v4756_v4 = vadd.f32 %v4748_v30, %v4639_v54 }
 0x335   : > { %v9060_v50 = vpop.permute.xlu1 %4998  ;;  %v5198_v55 = vadd.f32 %v5197_v20, %v5196_v38  ;;  %v4864_v38 = vadd.f32 %v4856_v26, %v4755_v5  ;;  %v4884_v20 = vadd.f32 %v4876_v60, %v4775_v7  ;;  %v5028_v42 = vadd.f32 %v5027_v16, %v5026_v13 }
 0x336   : > { %v4923_v11 = vpop.permute.xlu0 %4922  ;;  %v5002_v2 = vmul.f32 %v9060_v50, %v9007_v58  ;;  %v4855_v61 = vmul.f32 %v8933_v1, %v4842_v41  ;;  %v4875_v62 = vmul.f32 %v8951_v22, %v4842_v41  ;;  %v4788_v58 = vmul.f32 %v8940_v25, %v4735_v33 }
 0x337   : > { %v4943_v31 = vadd.f32 %v4923_v11, %v8891_v14  ;;  %v5237_v19 = vadd.f32 %v8980_v40, %v5198_v55  ;;  %v4895_v44 = vmul.f32 %v8957_v8, %v4842_v41  ;;  %v9085_v37 = vmax.f32 %v4620_v63, 0.0 }
 0x338   : > { %v5010_v11 = vadd.f32 %v5002_v2, %v9032_v12  ;;  %v4776_v0 = vadd.f32 %v4768_v49, %v4659_v3  ;;  %v4844_v55 = vmax.f32 %v4836_v29, 0.0  ;;  %v4863_v7 = vadd.f32 %v4855_v61, %v8989_v17 }
 0x339   : > { %v9078_v51 = vpop.permute.xlu1 %4716  ;;  %v4951_v5 = vmax.f32 %v4943_v31, 0.0  ;;  %v5515_v34 = vmul.f32 -1.442695, %v5237_v19  ;;  %v4883_v39 = vadd.f32 %v4875_v62, %v9021_v56  ;;  %v4903_v60 = vadd.f32 %v4895_v44, %v8992_v36 }
 0x33a   : > { %v4927_v9 = vpop.permute.xlu0 %4926  ;;  %v5340_v33 = vrot.slane %v5010_v11, 4  ;;  %v5067_v3 = vadd.f32 %v8984_v59, %v5028_v42  ;;  %v4796_v41 = vadd.f32 %v4788_v58, %v4679_v21  ;;  %v9098_v17 = vmul.f32 %v8929_v15, %v9085_v37 }
 0x33b   : > { %v4944_v26 = vadd.f32 %v4927_v9, %v8891_v14  ;;  %v4964_v13 = vmul.f32 %v9001_v46, %v4951_v5  ;;  %v4984_v54 = vmul.f32 %v8969_v32, %v4951_v5  ;;  %v5004_v57 = vmul.f32 %v9060_v50, %v4951_v5 }
 0x33c   : > { %v5341_v16 = vadd.f32 %v5340_v33, %v5010_v11  ;;  %v9102_v36 = vmul.f32 %v8963_v47, %v9085_v37  ;;  %v4857_v2 = vmul.f32 %v8933_v1, %v4844_v55  ;;  %6647 = vpow2.f32 %v5515_v34 }
 0x33d   : > { %v4919_v12 = vpop.permute.xlu1 %4918  ;;  %v4952_v9 = vmax.f32 %v4944_v26, 0.0  ;;  %v4972_v56 = vadd.f32 %v4964_v13, %v4863_v7  ;;  %v4992_v30 = vadd.f32 %v4984_v54, %v4883_v39  ;;  %v5012_v63 = vadd.f32 %v5004_v57, %v4903_v60 }
 0x33e   : > { %v4942_v42 = vadd.f32 %v4919_v12, %v8891_v14  ;;  %v5507_v19 = vmul.f32 -1.442695, %v5067_v3  ;;  %v4877_v15 = vmul.f32 %v8951_v22, %v4844_v55  ;;  %v5342_v61 = vrot.slane %v5341_v16, 2 }
 0x33f   : > { %v4965_v49 = vmul.f32 %v9001_v46, %v4952_v9  ;;  %v5035_v21 = vrot.slane %v4972_v56, 4  ;;  %v5205_v29 = vrot.slane %v4992_v30, 4  ;;  %v5352_v31 = vrot.slane %v5012_v63, 4 }
 0x340   : > { %v4985_v47 = vmul.f32 %v8969_v32, %v4952_v9  ;;  %v4897_v5 = vmul.f32 %v8957_v8, %v4844_v55  ;;  %v5005_v26 = vmul.f32 %v9060_v50, %v4952_v9  ;;  %v4950_v39 = vmax.f32 %v4942_v42, 0.0 }
 0x341   : > { %v4973_v62 = vadd.f32 %v4965_v49, %v4864_v38  ;;  %v5036_v58 = vadd.f32 %v5035_v21, %v4972_v56  ;;  %v5206_v44 = vadd.f32 %v5205_v29, %v4992_v30  ;;  %v5353_v11 = vadd.f32 %v5352_v31, %v5012_v63  ;;  %v4931_v21 = vpop.permute.xlu0 %4930 }
 0x342   : > { %v4993_v13 = vadd.f32 %v4985_v47, %v4884_v20  ;;  %v9111_v54 = vadd.f32 %v4857_v2, %v4756_v4  ;;  %v9113_v57 = vadd.f32 %v4877_v15, %v4776_v0  ;;  %v5013_v38 = vadd.f32 %v5005_v26, %v4904_v52 }
 0x343   : > { %v5041_v7 = vrot.slane %v4973_v62, 4  ;;  %v5037_v34 = vrot.slane %v5036_v58, 2  ;;  %v5207_v33 = vrot.slane %v5206_v44, 2  ;;  %v5354_v60 = vrot.slane %v5353_v11, 2 }
 0x344   : > { %v5343_v3 = vadd.f32 %v5342_v61, %v5341_v16  ;;  %v5211_v63 = vrot.slane %v4993_v13, 4  ;;  %v9115_v49 = vadd.f32 %v4897_v5, %v4796_v41  ;;  %v5358_v9 = vrot.slane %v5013_v38, 4 }
 0x345   : > { %v5042_v12 = vadd.f32 %v5041_v7, %v4973_v62  ;;  %v5038_v56 = vadd.f32 %v5037_v34, %v5036_v58  ;;  %v5355_v30 = vadd.f32 %v5354_v60, %v5353_v11  ;;  %v4963_v42 = vmul.f32 %v9001_v46, %v4950_v39 }
 0x346   : > { %v5208_v31 = vadd.f32 %v5207_v33, %v5206_v44  ;;  %v5212_v4 = vadd.f32 %v5211_v63, %v4993_v13  ;;  %6649 = vpow2.f32 %v5507_v19  ;;  %v4728_v0 = vadd.f32 %v9078_v51, %v8887_v24 }
 0x347   : > { %v5043_v55 = vrot.slane %v5042_v12, 2  ;;  %v5039_v29 = vrot.slane %v5038_v56, 1  ;;  %v5356_v20 = vrot.slane %v5355_v30, 1  ;;  %v5359_v16 = vadd.f32 %v5358_v9, %v5013_v38 }
 0x348   : > { %v5344_v2 = vrot.slane %v5343_v3, 1  ;;  %v4945_v41 = vadd.f32 %v4931_v21, %v8891_v14  ;;  %v5213_v58 = vrot.slane %v5212_v4, 2  ;;  %v4983_v47 = vmul.f32 %v8969_v32, %v4950_v39 }
 0x349   : > { %v5044_v52 = vadd.f32 %v5043_v55, %v5042_v12  ;;  %v5040_v15 = vadd.f32 %v5039_v29, %v5038_v56  ;;  %v5357_v61 = vadd.f32 %v5356_v20, %v5355_v30  ;;  %v5360_v11 = vrot.slane %v5359_v16, 2  ;;  %v6648_v51 = vpop.eup %6647 }
 0x34a   : > { %v5209_v5 = vrot.slane %v5208_v31, 1  ;;  %v4971_v26 = vadd.f32 %v4963_v42, %v9024_v6  ;;  %v4991_v33 = vadd.f32 %v4983_v47, %v9026_v10  ;;  %v5003_v60 = vmul.f32 %v9060_v50, %v4950_v39 }
 0x34b   : > { %v5045_v62 = vrot.slane %v5044_v52, 1  ;;  %v5069_v44 = vadd.f32 %v8984_v59, %v5040_v15  ;;  %v5386_v19 = vadd.f32 %v8987_v28, %v5357_v61  ;;  %v5361_v34 = vadd.f32 %v5360_v11, %v5359_v16 }
 0x34c   : > { %v5345_v13 = vadd.f32 %v5344_v2, %v5343_v3  ;;  %v9127_v56 = vmax.f32 %v4728_v0, 0.0  ;;  %v5214_v63 = vadd.f32 %v5213_v58, %v5212_v4  ;;  %v5011_v9 = vadd.f32 %v5003_v60, %v9029_v53  ;;  %v4721_v0 = vpop.permute.xlu1 %4720 }
 0x34d   : > { %v5046_v7 = vadd.f32 %v5045_v62, %v5044_v52  ;;  %v5509_v38 = vmul.f32 -1.442695, %v5069_v44  ;;  %v5525_v12 = vmul.f32 -1.442695, %v5386_v19  ;;  %v5362_v55 = vrot.slane %v5361_v34, 1 }
 0x34e   : > { %v5269_v21 = vadd.f32 1.0, %v6648_v51  ;;  %v5029_v6 = vrot.slane %v4971_v26, 4  ;;  %v5199_v42 = vrot.slane %v4991_v33, 4  ;;  %v4953_v29 = vmax.f32 %v4945_v41, 0.0 }
 0x34f   : > { %v5070_v30 = vadd.f32 %v8984_v59, %v5046_v7  ;;  %6651 = vpow2.f32 %v5509_v38  ;;  %v5210_v20 = vadd.f32 %v5209_v5, %v5208_v31  ;;  %v5363_v52 = vadd.f32 %v5362_v55, %v5361_v34 }
 0x350   : > { %6653 = vpow2.f32 %v5525_v12  ;;  %v5030_v39 = vadd.f32 %v5029_v6, %v4971_v26  ;;  %v5200_v3 = vadd.f32 %v5199_v42, %v4991_v33  ;;  %v5346_v16 = vrot.slane %v5011_v9, 4  ;;  %v4911_v12 = vpop.permute.xlu1 %4910 }
 0x351   : > { %v5510_v10 = vmul.f32 -1.442695, %v5070_v30  ;;  %v5215_v2 = vrot.slane %v5214_v63, 1  ;;  %v5387_v4 = vadd.f32 %v8987_v28, %v5363_v52  ;;  %v4966_v15 = vmul.f32 %v9001_v46, %v4953_v29 }
 0x352   : > { %v5031_v53 = vrot.slane %v5030_v39, 2  ;;  %v5201_v61 = vrot.slane %v5200_v3, 2  ;;  %v5347_v62 = vadd.f32 %v5346_v16, %v5011_v9  ;;  %v4986_v41 = vmul.f32 %v8969_v32, %v4953_v29 }
 0x353   : > { %6655 = vpow2.f32 %v5510_v10  ;;  %v5384_v31 = vadd.f32 %v8987_v28, %v5345_v13  ;;  %v5526_v58 = vmul.f32 -1.442695, %v5387_v4  ;;  %v4974_v11 = vadd.f32 %v4966_v15, %v9111_v54  ;;  %v9137_v44 = vpop.eup %6649 }
 0x354   : > { %v5006_v47 = vmul.f32 %v9060_v50, %v4953_v29  ;;  %v5032_v5 = vadd.f32 %v5031_v53, %v5030_v39  ;;  %v5202_v19 = vadd.f32 %v5201_v61, %v5200_v3  ;;  %v5348_v26 = vrot.slane %v5347_v62, 2 }
 0x355   : > { %v4994_v51 = vadd.f32 %v4986_v41, %v9113_v57  ;;  %6657 = vrcp.f32 %v5269_v21  ;;  %v5239_v7 = vadd.f32 %v8980_v40, %v5210_v20  ;;  %v5047_v33 = vrot.slane %v4974_v11, 4  ;;  %v4826_v41 = vpop.permute.xlu1 %4825 }
 0x356   : > { %v5014_v34 = vadd.f32 %v5006_v47, %v9115_v49  ;;  %v5216_v60 = vadd.f32 %v5215_v2, %v5214_v63  ;;  %v5033_v13 = vrot.slane %v5032_v5, 1  ;;  %v5349_v38 = vadd.f32 %v5348_v26, %v5347_v62 }
 0x357   : > { %v4729_v54 = vadd.f32 %v4721_v0, %v8887_v24  ;;  %v5203_v30 = vrot.slane %v5202_v19, 1  ;;  %v5048_v55 = vadd.f32 %v5047_v33, %v4974_v11  ;;  %v5217_v9 = vrot.slane %v4994_v51, 4 }
 0x358   : > { %v5364_v6 = vrot.slane %v5014_v34, 4  ;;  %v5523_v42 = vmul.f32 -1.442695, %v5384_v31  ;;  %v4749_v57 = vmul.f32 %v8927_v23, %v9127_v56  ;;  %v4769_v21 = vmul.f32 %v8931_v35, %v9127_v56 }
 0x359   : > { %6659 = vpow2.f32 %v5526_v58  ;;  %v5350_v49 = vrot.slane %v5349_v38, 1  ;;  %v5049_v29 = vrot.slane %v5048_v55, 2  ;;  %v5218_v63 = vadd.f32 %v5217_v9, %v4994_v51 }
 0x35a   : > { %v5365_v20 = vadd.f32 %v5364_v6, %v5014_v34  ;;  %v5517_v10 = vmul.f32 -1.442695, %v5239_v7  ;;  %v5240_v52 = vadd.f32 %v8980_v40, %v5216_v60  ;;  %v5034_v39 = vadd.f32 %v5033_v13, %v5032_v5  ;;  %v4939_v34 = vpop.permute.xlu0 %4938 }
 0x35b   : > { %v4737_v3 = vmax.f32 %v4729_v54, 0.0  ;;  %v5204_v16 = vadd.f32 %v5203_v30, %v5202_v19  ;;  %v5050_v0 = vadd.f32 %v5049_v29, %v5048_v55  ;;  %v5219_v2 = vrot.slane %v5218_v63, 2 }
 0x35c   : > { %v5366_v4 = vrot.slane %v5365_v20, 2  ;;  %v6652_v15 = vpop.eup %6651  ;;  %v4681_v53 = vmul.f32 %v8938_v45, %v9085_v37  ;;  %6661 = vpow2.f32 %v5523_v42  ;;  %v9151_v61 = vadd.f32 %v4749_v57, %v9055_v43 }
 0x35d   : > { %v4789_v62 = vmul.f32 %v8940_v25, %v9127_v56  ;;  %v6654_v31 = vpop.eup %6653  ;;  %v5351_v58 = vadd.f32 %v5350_v49, %v5349_v38  ;;  %v5051_v11 = vrot.slane %v5050_v0, 1  ;;  %v5220_v47 = vadd.f32 %v5219_v2, %v5218_v63 }
 0x35e   : > { %v5367_v5 = vadd.f32 %v5366_v4, %v5365_v20  ;;  %6663 = vpow2.f32 %v5517_v10  ;;  %v9156_v26 = vadd.f32 %v4769_v21, %v9058_v18  ;;  %v5518_v51 = vmul.f32 -1.442695, %v5240_v52  ;;  %v9982_v4 = vld [vmem:[#allocation83_spill] sm:$0xff] }
 0x35f   : > { %v5068_v45 = vadd.f32 %v8984_v59, %v5034_v39  ;;  %v5101_v37 = vadd.f32 1.0, %v6652_v15  ;;  %v5238_v43 = vadd.f32 %v8980_v40, %v5204_v16  ;;  %v4750_v7 = vmul.f32 %v8927_v23, %v4737_v3 }
 0x360   : > { %v6656_v19 = vpop.eup %6655  ;;  %v4770_v56 = vmul.f32 %v8931_v35, %v4737_v3  ;;  %v5418_v33 = vadd.f32 1.0, %v6654_v31  ;;  %v5052_v60 = vadd.f32 %v5051_v11, %v5050_v0  ;;  %v5221_v13 = vrot.slane %v5220_v47, 1  ;;  %v4830_v35 = vpop.permute.xlu1 %4829 }
 0x361   : > { %v4940_v38 = vadd.f32 %v4911_v12, %v8891_v14  ;;  %v5102_v54 = vadd.f32 1.0, %v6656_v19  ;;  %v5385_v18 = vadd.f32 %v8987_v28, %v5351_v58  ;;  %v5368_v30 = vrot.slane %v5367_v5, 1 }
 0x362   : > { %v4790_v55 = vmul.f32 %v8940_v25, %v4737_v3  ;;  %v9165_v9 = vpop.eup %6657  ;;  %6665 = vpow2.f32 %v5518_v51  ;;  %v5508_v6 = vmul.f32 -1.442695, %v5068_v45  ;;  %v4947_v23 = vadd.f32 %v4939_v34, %v8891_v14 }
 0x363   : > { %v4948_v42 = vmax.f32 %v4940_v38, 0.0  ;;  %6667 = vrcp.f32 %v5101_v37  ;;  %v9169_v57 = vadd.f32 %v4789_v62, %v9063_v48  ;;  %v5516_v21 = vmul.f32 -1.442695, %v5238_v43 }
 0x364   : > { %v4758_v12 = vadd.f32 %v4750_v7, %v9098_v17  ;;  %6669 = vrcp.f32 %v5418_v33  ;;  %v5071_v49 = vadd.f32 %v8984_v59, %v5052_v60  ;;  %v5222_v29 = vadd.f32 %v5221_v13, %v5220_v47  ;;  %v4935_v31 = vpop.permute.xlu1 %4934 }
 0x365   : > { %v4778_v25 = vadd.f32 %v4770_v56, %v9102_v36  ;;  %6671 = vrcp.f32 %v5102_v54  ;;  %v5524_v20 = vmul.f32 -1.442695, %v5385_v18  ;;  %v5369_v10 = vadd.f32 %v5368_v30, %v5367_v5  ;;  %v9984_v5 = vld [vmem:[#allocation85_spill] sm:$0xff] }
 0x366   : > { %v6660_v63 = vpop.eup %6659  ;;  %v4798_v52 = vadd.f32 %v4790_v55, %v4681_v53  ;;  %6673 = vpow2.f32 %v5508_v6  ;;  %v4955_v39 = vmax.f32 %v4947_v23, 0.0  ;;  %v4961_v3 = vmul.f32 %v9001_v46, %v4948_v42  ;;  %v9983_v53 = vld [vmem:[#allocation84_spill] sm:$0xff] }
 0x367   : > { %v4981_v48 = vmul.f32 %v8969_v32, %v4948_v42  ;;  %6675 = vpow2.f32 %v5516_v21  ;;  %v5001_v17 = vmul.f32 %v9060_v50, %v4948_v42  ;;  %v4837_v16 = vadd.f32 %v4826_v41, %v8893_v27 }
 0x368   : > { %v4838_v0 = vadd.f32 %v4830_v35, %v8893_v27  ;;  %v5511_v2 = vmul.f32 -1.442695, %v5071_v49  ;;  %v9180_v36 = vadd.f32 %v8980_v40, %v5222_v29  ;;  %v4969_v15 = vadd.f32 %v4961_v3, %v9982_v4 }
 0x369   : > { %v4989_v62 = vadd.f32 %v4981_v48, %v9983_v53  ;;  %v9184_v58 = vpop.eup %6661  ;;  %v9186_v11 = vadd.f32 1.0, %v6660_v63  ;;  %6677 = vpow2.f32 %v5524_v20  ;;  %v5388_v47 = vadd.f32 %v8987_v28, %v5369_v10 }
 0x36a   : > { %v5009_v41 = vadd.f32 %v5001_v17, %v9984_v5  ;;  %v4968_v19 = vmul.f32 %v9001_v46, %v4955_v39  ;;  %v5017_v51 = vrot.slane %v4969_v15, 4  ;;  %v4846_v37 = vmax.f32 %v4838_v0, 0.0 }
 0x36b   : > { %v5187_v45 = vrot.slane %v4989_v62, 4  ;;  %v9191_v43 = vpop.eup %6663  ;;  %v4988_v7 = vmul.f32 %v8969_v32, %v4955_v39  ;;  %v5008_v56 = vmul.f32 %v9060_v50, %v4955_v39  ;;  %v4946_v33 = vadd.f32 %v4935_v31, %v8891_v14 }
 0x36c   : > { %v5334_v34 = vrot.slane %v5009_v41, 4  ;;  %v5018_v60 = vadd.f32 %v5017_v51, %v4969_v15  ;;  %v4845_v38 = vmax.f32 %v4837_v16, 0.0  ;;  %v4859_v54 = vmul.f32 %v8933_v1, %v4846_v37 }
 0x36d   : > { %v5188_v13 = vadd.f32 %v5187_v45, %v4989_v62  ;;  %v5527_v18 = vmul.f32 -1.442695, %v5388_v47  ;;  %v4879_v55 = vmul.f32 %v8951_v22, %v4846_v37  ;;  %v4899_v6 = vmul.f32 %v8957_v8, %v4846_v37 }
 0x36e   : > { %v5335_v30 = vadd.f32 %v5334_v34, %v5009_v41  ;;  %6679 = vpow2.f32 %v5511_v2  ;;  %v5019_v23 = vrot.slane %v5018_v60, 2  ;;  %v4867_v35 = vadd.f32 %v4859_v54, %v4758_v12 }
 0x36f   : > { %v5189_v42 = vrot.slane %v5188_v13, 2  ;;  %v9199_v21 = vpop.eup %6665  ;;  %v4887_v29 = vadd.f32 %v4879_v55, %v4778_v25  ;;  %v4907_v63 = vadd.f32 %v4899_v6, %v4798_v52  ;;  %v4954_v20 = vmax.f32 %v4946_v33, 0.0 }
 0x370   : > { %v5336_v49 = vrot.slane %v5335_v30, 2  ;;  %v9201_v10 = vpop.eup %6667  ;;  %v5020_v39 = vadd.f32 %v5019_v23, %v5018_v60  ;;  %v4858_v48 = vmul.f32 %v8933_v1, %v4845_v38  ;;  %v4976_v17 = vadd.f32 %v4968_v19, %v4867_v35 }
 0x371   : > { %v5190_v3 = vadd.f32 %v5189_v42, %v5188_v13  ;;  %v9204_v16 = vpop.eup %6669  ;;  %v4878_v2 = vmul.f32 %v8951_v22, %v4845_v38  ;;  %v4996_v4 = vadd.f32 %v4988_v7, %v4887_v29  ;;  %v5016_v12 = vadd.f32 %v5008_v56, %v4907_v63 }
 0x372   : > { %v5337_v0 = vadd.f32 %v5336_v49, %v5335_v30  ;;  %v9207_v15 = vpop.eup %6671  ;;  %6681 = vpow2.f32 %v5527_v18  ;;  %v5021_v25 = vrot.slane %v5020_v39, 1  ;;  %v4898_v53 = vmul.f32 %v8957_v8, %v4845_v38 }
 0x373   : > { %v5191_v52 = vrot.slane %v5190_v3, 1  ;;  %v6674_v62 = vpop.eup %6673  ;;  %v5059_v47 = vrot.slane %v4976_v17, 4  ;;  %v5229_v5 = vrot.slane %v4996_v4, 4  ;;  %v4967_v1 = vmul.f32 %v9001_v46, %v4954_v20 }
 0x374   : > { %v5338_v31 = vrot.slane %v5337_v0, 1  ;;  %v6676_v41 = vpop.eup %6675  ;;  %v5022_v19 = vadd.f32 %v5021_v25, %v5020_v39  ;;  %v4866_v22 = vadd.f32 %v4858_v48, %v9151_v61  ;;  %v5376_v45 = vrot.slane %v5016_v12, 4 }
 0x375   : > { %v5192_v51 = vadd.f32 %v5191_v52, %v5190_v3  ;;  %v4886_v7 = vadd.f32 %v4878_v2, %v9156_v26  ;;  %v5060_v56 = vadd.f32 %v5059_v47, %v4976_v17  ;;  %v5230_v34 = vadd.f32 %v5229_v5, %v4996_v4 }
 0x376   : > { %v5339_v37 = vadd.f32 %v5338_v31, %v5337_v0  ;;  %v6678_v33 = vpop.eup %6677  ;;  %v5066_v8 = vadd.f32 %v8984_v59, %v5022_v19  ;;  %v5377_v13 = vadd.f32 %v5376_v45, %v5016_v12  ;;  %v4987_v38 = vmul.f32 %v8969_v32, %v4954_v20 }
 0x377   : > { %v5236_v60 = vadd.f32 %v8980_v40, %v5192_v51  ;;  %v4906_v54 = vadd.f32 %v4898_v53, %v9169_v57  ;;  %v5061_v18 = vrot.slane %v5060_v56, 2  ;;  %v4975_v61 = vadd.f32 %v4967_v1, %v4866_v22 }
 0x378   : > { %v5383_v46 = vadd.f32 %v8987_v28, %v5339_v37  ;;  %v5100_v30 = vadd.f32 1.0, %v6674_v62  ;;  %v5506_v55 = vmul.f32 -1.442695, %v5066_v8  ;;  %v5231_v26 = vrot.slane %v5230_v34, 2 }
 0x379   : > { %v5514_v6 = vmul.f32 -1.442695, %v5236_v60  ;;  %v5270_v23 = vadd.f32 1.0, %v6676_v41  ;;  %v5062_v35 = vadd.f32 %v5061_v18, %v5060_v56  ;;  %v5378_v49 = vrot.slane %v5377_v13, 2 }
 0x37a   : > { %v5522_v42 = vmul.f32 -1.442695, %v5383_v46  ;;  %6683 = vpow2.f32 %v5506_v55  ;;  %v5232_v29 = vadd.f32 %v5231_v26, %v5230_v34  ;;  %v4995_v63 = vadd.f32 %v4987_v38, %v4886_v7 }
 0x37b   : > { %v5007_v39 = vmul.f32 %v9060_v50, %v4954_v20  ;;  %v6680_v32 = vpop.eup %6679  ;;  %6685 = vpow2.f32 %v5514_v6  ;;  %v5063_v3 = vrot.slane %v5062_v35, 1  ;;  %v5379_v48 = vadd.f32 %v5378_v49, %v5377_v13  ;;  %v9227_v6 = vld [vmem:[%s4555_s30] sm:$0xff] }
 0x37c   : > { %v5053_v57 = vrot.slane %v4975_v61, 4  ;;  %6687 = vpow2.f32 %v5522_v42  ;;  %v5233_v17 = vrot.slane %v5232_v29, 1  ;;  %v5223_v2 = vrot.slane %v4995_v63, 4 }
 0x37d   : > { %v5015_v0 = vadd.f32 %v5007_v39, %v4906_v54  ;;  %v5519_v4 = vmul.f32 -1.442695, %v9180_v36  ;;  %v5064_v12 = vadd.f32 %v5063_v3, %v5062_v35  ;;  %v5380_v25 = vrot.slane %v5379_v48, 1 }
 0x37e   : > { %v5054_v52 = vadd.f32 %v5053_v57, %v4975_v61  ;;  %6689 = vrcp.f32 %v5270_v23  ;;  %v5234_v53 = vadd.f32 %v5233_v17, %v5232_v29  ;;  %v5224_v62 = vadd.f32 %v5223_v2, %v4995_v63 }
 0x37f   : > { %v5370_v31 = vrot.slane %v5015_v0, 4  ;;  %v6682_v47 = vpop.eup %6681  ;;  %v5103_v50 = vadd.f32 1.0, %v6680_v32  ;;  %v5073_v20 = vadd.f32 %v8984_v59, %v5064_v12  ;;  %v5381_v5 = vadd.f32 %v5380_v25, %v5379_v48 }
 0x380   : > { %v5055_v1 = vrot.slane %v5054_v52, 2  ;;  %6691 = vrcp.f32 %v5100_v30  ;;  %v5243_v41 = vadd.f32 %v8980_v40, %v5234_v53  ;;  %v5225_v19 = vrot.slane %v5224_v62, 2 }
 0x381   : > { %v5371_v51 = vadd.f32 %v5370_v31, %v5015_v0  ;;  %6693 = vrcp.f32 %v9186_v11  ;;  %v5513_v36 = vmul.f32 -1.442695, %v5073_v20  ;;  %v5390_v22 = vadd.f32 %v8987_v28, %v5381_v5  ;;  %v9985_v5 = vld [vmem:[#allocation45_spill] sm:$0xff] }
 0x382   : > { %v5056_v45 = vadd.f32 %v5055_v1, %v5054_v52  ;;  %6695 = vpow2.f32 %v5519_v4  ;;  %v5521_v37 = vmul.f32 -1.442695, %v5243_v41  ;;  %v5226_v7 = vadd.f32 %v5225_v19, %v5224_v62 }
 0x383   : > { %v5372_v56 = vrot.slane %v5371_v51, 2  ;;  %v5417_v34 = vadd.f32 1.0, %v6678_v33  ;;  %6697 = vrcp.f32 %v5103_v50  ;;  %v5529_v8 = vmul.f32 -1.442695, %v5390_v22 }
 0x384   : > { %v5057_v60 = vrot.slane %v5056_v45, 1  ;;  %v5420_v13 = vadd.f32 1.0, %v6682_v47  ;;  %6699 = vpow2.f32 %v5513_v36  ;;  %v5227_v38 = vrot.slane %v5226_v7, 1  ;;  %v9986_v36 = vld [vmem:[#allocation34_spill] sm:$0xff] }
 0x385   : > { %v5373_v46 = vadd.f32 %v5372_v56, %v5371_v51  ;;  %6701 = vpow2.f32 %v5521_v37  ;;  %v5099_v55 = vadd.f32 1.0, %v9137_v44  ;;  %v9232_v44 = vrot.slane %v9227_v6, 1 }
 0x386   : > { %v5058_v54 = vadd.f32 %v5057_v60, %v5056_v45  ;;  %6703 = vpow2.f32 %v5529_v8  ;;  %v5228_v11 = vadd.f32 %v5227_v38, %v5226_v7  ;;  %v9235_v3 = vrot.slane %v9227_v6, 2 }
 0x387   : > { %v5374_v18 = vrot.slane %v5373_v46, 1  ;;  %v6684_v61 = vpop.eup %6683  ;;  %6705 = vrcp.f32 %v5417_v34  ;;  %v5271_v57 = vadd.f32 1.0, %v9191_v43  ;;  %v9239_v17 = vrot.slane %v9227_v6, 3 }
 0x388   : > { %v5072_v30 = vadd.f32 %v8984_v59, %v5058_v54  ;;  %v6686_v33 = vpop.eup %6685  ;;  %6707 = vrcp.f32 %v5420_v13  ;;  %v5098_v26 = vadd.f32 1.0, %v6684_v61  ;;  %v5242_v23 = vadd.f32 %v8980_v40, %v5228_v11 }
 0x389   : > { %v5375_v42 = vadd.f32 %v5374_v18, %v5373_v46  ;;  %v6688_v35 = vpop.eup %6687  ;;  %v5268_v49 = vadd.f32 1.0, %v6686_v33  ;;  %6709 = vrcp.f32 %v5099_v55  ;;  %v5416_v0 = vadd.f32 1.0, %v9184_v58 }
 0x38a   : > { %v5512_v29 = vmul.f32 -1.442695, %v5072_v30  ;;  %6711 = vrcp.f32 %v5098_v26  ;;  %v5415_v63 = vadd.f32 1.0, %v6688_v35  ;;  %v5520_v39 = vmul.f32 -1.442695, %v5242_v23 }
 0x38b   : > { %v5389_v59 = vadd.f32 %v8987_v28, %v5375_v42  ;;  %v6690_v32 = vpop.eup %6689  ;;  %6713 = vrcp.f32 %v5268_v49  ;;  %v9245_v2 = vrot.slane %v9227_v6, 4  ;;  %v5293_v12 = vmul.f32 %v9165_v9, %v9232_v44 }
 0x38c   : > { %6715 = vrcp.f32 %v5415_v63  ;;  %v5294_v25 = vmul.f32 %v6690_v32, %v9235_v3  ;;  %v5272_v52 = vadd.f32 1.0, %v9199_v21  ;;  %v9252_v53 = vrot.slane %v9227_v6, 5 }
 0x38d   : > { %v5528_v40 = vmul.f32 -1.442695, %v5389_v59  ;;  %v6692_v48 = vpop.eup %6691  ;;  %6717 = vpow2.f32 %v5512_v29  ;;  %v5141_v31 = vmul.f32 %v9201_v10, %v9239_v17  ;;  %v5142_v9 = vmul.f32 %v9207_v15, %v9245_v2 }
 0x38e   : > { %v9242_v28 = vpop.eup %6693  ;;  %6719 = vpow2.f32 %v5520_v39  ;;  %v5140_v58 = vmul.f32 %v6692_v48, %v9235_v3  ;;  %v5301_v21 = vmul.f32 %v5293_v12, %v9985_v5  ;;  %v5302_v1 = vmul.f32 %v5294_v25, %v9985_v5 }
 0x38f   : > { %v6696_v4 = vpop.eup %6695  ;;  %6721 = vpow2.f32 %v5528_v40  ;;  %v5149_v15 = vmul.f32 %v5141_v31, %v9986_v36  ;;  %v5150_v7 = vmul.f32 %v5142_v9, %v9986_v36  ;;  %v5442_v39 = vmul.f32 %v9204_v16, %v9239_v17 }
 0x390   : > { %v6698_v43 = vpop.eup %6697  ;;  %6723 = vrcp.f32 %v5416_v0  ;;  %v5273_v20 = vadd.f32 1.0, %v6696_v4  ;;  %v5148_v22 = vmul.f32 %v5140_v58, %v9986_v36  ;;  %v5316_v8 = vrot.slane %v5301_v21, 7 }
 0x391   : > { %v6700_v62 = vpop.eup %6699  ;;  %6725 = vrcp.f32 %v5271_v57  ;;  %v5143_v51 = vmul.f32 %v6698_v43, %v9252_v53  ;;  %v5318_v60 = vrot.slane %v5302_v1, 6  ;;  %v5168_v55 = vrot.slane %v5149_v15, 5 }
 0x392   : > { %v6702_v47 = vpop.eup %6701  ;;  %6727 = vrcp.f32 %v5272_v52  ;;  %v5105_v19 = vadd.f32 1.0, %v6700_v62  ;;  %v5165_v11 = vrot.slane %v5148_v22, 6  ;;  %v5171_v23 = vrot.slane %v5150_v7, 4  ;;  %v9987_v62 = vld [vmem:[#allocation46_spill] sm:$0xff] }
 0x393   : > { %v6704_v50 = vpop.eup %6703  ;;  %v5275_v10 = vadd.f32 1.0, %v6702_v47  ;;  %6729 = vrcp.f32 %v5273_v20  ;;  %v5151_v54 = vmul.f32 %v5143_v51, %v9986_v36  ;;  %v5443_v48 = vmul.f32 %v9242_v28, %v9245_v2 }
 0x394   : > { %v6706_v41 = vpop.eup %6705  ;;  %v5422_v56 = vadd.f32 1.0, %v6704_v50  ;;  %6731 = vrcp.f32 %v5105_v19  ;;  %v5450_v20 = vmul.f32 %v5442_v39, %v9987_v62 }
 0x395   : > { %v6708_v45 = vpop.eup %6707  ;;  %6733 = vrcp.f32 %v5275_v10  ;;  %v5441_v42 = vmul.f32 %v6706_v41, %v9235_v3  ;;  %v5174_v58 = vrot.slane %v5151_v54, 3  ;;  %v5129_v10 = vrot.slane %v9227_v6, 7 }
 0x396   : > { %v6710_v37 = vpop.eup %6709  ;;  %6735 = vrcp.f32 %v5422_v56  ;;  %v5444_v57 = vmul.f32 %v6708_v45, %v9252_v53  ;;  %v5467_v7 = vrot.slane %v5450_v20, 5  ;;  %v5128_v54 = vrot.slane %v9227_v6, 6 }
 0x397   : > { %v6712_v34 = vpop.eup %6711  ;;  %v5139_v13 = vmul.f32 %v6710_v37, %v9232_v44  ;;  %v5449_v31 = vmul.f32 %v5441_v42, %v9987_v62 }
 0x398   : > { %v6714_v38 = vpop.eup %6713  ;;  %v5138_v46 = vmul.f32 %v6712_v34, %v9227_v6  ;;  %v5452_v19 = vmul.f32 %v5444_v57, %v9987_v62 }
 0x399   : > { %v6716_v18 = vpop.eup %6715  ;;  %v5292_v61 = vmul.f32 %v6714_v38, %v9227_v6  ;;  %v5147_v30 = vmul.f32 %v5139_v13, %v9986_v36  ;;  %v5465_v22 = vrot.slane %v5449_v31, 6 }
 0x39a   : > { %v6718_v33 = vpop.eup %6717  ;;  %v5146_v26 = vmul.f32 %v5138_v46, %v9986_v36  ;;  %v5439_v40 = vmul.f32 %v6716_v18, %v9227_v6  ;;  %v5471_v38 = vrot.slane %v5452_v19, 3 }
 0x39b   : > { %v6720_v35 = vpop.eup %6719  ;;  %v5104_v49 = vadd.f32 1.0, %v6718_v33  ;;  %v5300_v29 = vmul.f32 %v5292_v61, %v9985_v5  ;;  %v5162_v63 = vrot.slane %v5147_v30, 7 }
 0x39c   : > { %v6722_v59 = vpop.eup %6721  ;;  %v5274_v32 = vadd.f32 1.0, %v6720_v35  ;;  %v5447_v9 = vmul.f32 %v5439_v40, %v9987_v62 }
 0x39d   : > { %v6724_v0 = vpop.eup %6723  ;;  %6737 = vrcp.f32 %v5104_v49  ;;  %v5421_v3 = vadd.f32 1.0, %v6722_v59  ;;  %v5317_v4 = vsel %vm5163_vm4, %v5316_v8, %v5300_v29  ;;  %v5164_v12 = vsel %vm5163_vm4, %v5162_v63, %v5146_v26 }
 0x39e   : > { %v6726_v25 = vpop.eup %6725  ;;  %6739 = vrcp.f32 %v5274_v32  ;;  %v5319_v16 = vsel %vm5166_vm5, %v5318_v60, %v5317_v4  ;;  %v5167_v43 = vsel %vm5166_vm5, %v5165_v11, %v5164_v12  ;;  %v5440_v52 = vmul.f32 %v6724_v0, %v9232_v44 }
 0x39f   : > { %6741 = vrcp.f32 %v5421_v3  ;;  %v5170_v28 = vsel %vm5169_vm6, %v5168_v55, %v5167_v43  ;;  %v6728_v21 = vpop.eup %6727  ;;  %v5295_v1 = vmul.f32 %v6726_v25, %v9239_v17  ;;  %v5451_v44 = vmul.f32 %v5443_v48, %v9987_v62 }
 0x3a0   : > { %v5173_v47 = vsel %vm5172_vm7, %v5171_v23, %v5170_v28  ;;  %v5448_v50 = vmul.f32 %v5440_v52, %v9987_v62  ;;  %v6730_v45 = vpop.eup %6729  ;;  %v5296_v15 = vmul.f32 %v6728_v21, %v9245_v2 }
 0x3a1   : > { %v5176_v41 = vsel %vm5175_vm8, %v5174_v58, %v5173_v47  ;;  %v6732_v56 = vpop.eup %6731  ;;  %v5303_v34 = vmul.f32 %v5295_v1, %v9985_v5  ;;  %v5469_v8 = vrot.slane %v5451_v44, 4  ;;  %v5297_v11 = vmul.f32 %v6730_v45, %v9252_v53 }
 0x3a2   : > { %v5463_v51 = vrot.slane %v5448_v50, 7  ;;  %v6734_v60 = vpop.eup %6733  ;;  %v5304_v18 = vmul.f32 %v5296_v15, %v9985_v5  ;;  %v5145_v61 = vmul.f32 %v6732_v56, %v5129_v10 }
 0x3a3   : > { %v6736_v46 = vpop.eup %6735  ;;  %v5299_v55 = vmul.f32 %v6734_v60, %v5129_v10  ;;  %v5320_v33 = vrot.slane %v5303_v34, 5  ;;  %v5305_v35 = vmul.f32 %v5297_v11, %v9985_v5 }
 0x3a4   : > { %v5464_v37 = vsel %vm5163_vm4, %v5463_v51, %v5447_v9  ;;  %v5446_v23 = vmul.f32 %v6736_v46, %v5129_v10  ;;  %v5322_v53 = vrot.slane %v5304_v18, 4  ;;  %v5153_v39 = vmul.f32 %v5145_v61, %v9986_v36 }
 0x3a5   : > { %v5466_v17 = vsel %vm5166_vm5, %v5465_v22, %v5464_v37  ;;  %v5321_v49 = vsel %vm5169_vm6, %v5320_v33, %v5319_v16  ;;  %v5307_v59 = vmul.f32 %v5299_v55, %v9985_v5  ;;  %v5324_v3 = vrot.slane %v5305_v35, 3 }
 0x3a6   : > { %v5468_v13 = vsel %vm5169_vm6, %v5467_v7, %v5466_v17  ;;  %v5323_v57 = vsel %vm5172_vm7, %v5322_v53, %v5321_v49  ;;  %v5454_v0 = vmul.f32 %v5446_v23, %v9987_v62  ;;  %v5180_v16 = vrot.slane %v5153_v39, 1 }
 0x3a7   : > { %v5470_v2 = vsel %vm5172_vm7, %v5469_v8, %v5468_v13  ;;  %v5325_v43 = vsel %vm5175_vm8, %v5324_v3, %v5323_v57  ;;  %v5328_v52 = vrot.slane %v5307_v59, 1 }
 0x3a8   : > { %v5472_v30 = vsel %vm5175_vm8, %v5471_v38, %v5470_v2  ;;  %v5475_v9 = vrot.slane %v5454_v0, 1 }
 0x3aa   : > { %v6738_v26 = vpop.eup %6737 }
 0x3ab   : > { %v6740_v42 = vpop.eup %6739  ;;  %v5144_v29 = vmul.f32 %v6738_v26, %v5128_v54 }
 0x3ac   : > { %v6742_v6 = vpop.eup %6741  ;;  %v5298_v63 = vmul.f32 %v6740_v42, %v5128_v54 }
 0x3ad   : > { %v5152_v32 = vmul.f32 %v5144_v29, %v9986_v36  ;;  %v5445_v40 = vmul.f32 %v6742_v6, %v5128_v54 }
 0x3ae   : > { %v5306_v48 = vmul.f32 %v5298_v63, %v9985_v5 }
 0x3af   : > { %v5177_v4 = vrot.slane %v5152_v32, 2  ;;  %v5453_v12 = vmul.f32 %v5445_v40, %v9987_v62 }
 0x3b0   : > { %v5326_v25 = vrot.slane %v5306_v48, 2 }
 0x3b1   : > { %v5179_v28 = vsel %vm5178_vm9, %v5177_v4, %v5176_v41  ;;  %v5473_v58 = vrot.slane %v5453_v12, 2 }
 0x3b2   : > { %v5327_v31 = vsel %vm5178_vm9, %v5326_v25, %v5325_v43  ;;  %v5182_v47 = vsel %vm5181_vm10, %v5180_v16, %v5179_v28 }
 0x3b3   : > { %v5329_v50 = vsel %vm5181_vm10, %v5328_v52, %v5327_v31  ;;  %5184 = vadd.xlane.f32.xlu1 %v5182_v47  ;;  %v5474_v20 = vsel %vm5178_vm9, %v5473_v58, %v5472_v30 }
 0x3b4   : > { %5331 = vadd.xlane.f32.xlu0 %v5329_v50  ;;  %v5476_v21 = vsel %vm5181_vm10, %v5475_v9, %v5474_v20 }
 0x3b8   : > { %5478 = vadd.xlane.f32.xlu0 %v5476_v21 }
 0x43c   : > { %v5185_v1 = vpop.xlane.xlu1 %5184 }
 0x43d   : > { %v5332_v44 = vpop.xlane.xlu0 %5331  ;;  %v5186_v41 = vmul.f32 0.049087387, %v5185_v1 }
 0x43e   : > { %v5333_v19 = vmul.f32 0.049087387, %v5332_v44 }
 0x440   : > { %v5482_v45 = vsel %vm5481_vm11, %v5186_v41, %v5333_v19 }
 0x441   : > { %v5479_v51 = vpop.xlane.xlu0 %5478  ;;  %4550 = sbr.rel (!%p4548_p5) target bundleno = 631 (0x277), region = 66 }
 0x442   : > { %v5480_v22 = vmul.f32 0.049087387, %v5479_v51 }
 0x444   : > { %v5484_v10 = vsel %vm5483_vm12, %v5482_v45, %v5480_v22 }
 0x445   : > { %5486 = vst.msk [vmem:[%s5485_s11] sm:$0xff] %vm1999_vm2, %v5484_v10 }
 0x446   :  { %5491 = vsyncpa [#allocation5], 1 }

</bundles_post_ra>
